<compile_context>
chip_gen: v5e
topology: v5e:2x2
jax: 0.10.0
libtpu: 0.0.40
codegen_flags: <defaults>
</compile_context>

<pallas_src>
import jax
import jax.numpy as jnp
from jax.experimental import pallas as pl
from jax.experimental.pallas import tpu as pltpu

_SQRT_HALF = 0.7071067811865476
_GN_EPS = 1e-5
_ERF_P = 0.3275911
_ERF_A = (0.254829592, -0.284496736, 1.421413741, -1.453152027, 1.061405429)


# ----------------------------------------------------------------------------
# in-kernel math helpers
# ----------------------------------------------------------------------------
def _gelu(x):
    # exact-GELU via Abramowitz & Stegun 7.1.26 erf polynomial (|err|<=1.5e-7).
    # TODO(synk): nn.GELU() uses exact erf; this polynomial + EUP reciprocal is
    # the closest Mosaic-friendly equivalent.
    z = x * _SQRT_HALF
    sgn = jnp.where(z >= 0.0, 1.0, -1.0)
    az = jnp.abs(z)
    t = pl.reciprocal(1.0 + _ERF_P * az, approx=True)   # EUP slot, ~free
    a1, a2, a3, a4, a5 = _ERF_A
    poly = ((((a5 * t + a4) * t + a3) * t + a2) * t + a1) * t
    erf = sgn * (1.0 - poly * jnp.exp(-(az * az)))
    return 0.5 * x * (1.0 + erf)


# ----------------------------------------------------------------------------
# fused kernel
# ----------------------------------------------------------------------------
def _make_up_kernel(C_low, C_skip, E, C_out, H, W):
    Cin1 = C_low + C_skip
    HW = H * W
    base = W + 1          # offset of flat index 0 inside the zero-gutter buffer

    def conv3x3_gn(x2d, w_ref, g_ref, b_ref, pad_ref, col_ref, mask_ref):
        """x2d: (cin, HW) f32 -> GroupNorm(1, cout)(conv3x3(x)) as (cout, HW)."""
        cin = x2d.shape[0]
        cout = w_ref.shape[0]
        # interior of the zero-gutter padded buffer <- current activation
        pad_ref[0:cin, base:base + HW] = x2d
        # im2col: nine lane-dense (cin, HW) slabs (static lane-shifted slices,
        # out-of-range taps zeroed by the precomputed border masks).
        for kh in range(3):
            for kw in range(3):
                tap = kh * 3 + kw
                off = base + (kh - 1) * W + (kw - 1)
                col_ref[tap * cin:(tap + 1) * cin, :] = (
                    pad_ref[0:cin, off:off + HW] * mask_ref[tap:tap + 1, :])
        # one big-K MXU matmul per stage, output lane-dense (cout, HW)
        acc = jnp.dot(w_ref[...], col_ref[0:9 * cin, :],
                      preferred_element_type=jnp.float32)
        # GroupNorm(num_groups=1): one-pass stats over the whole (cout, HW) block
        inv_n = 1.0 / float(cout * HW)
        s = jnp.sum(acc, keepdims=True)                     # (1, 1)
        ss = jnp.sum(acc * acc, keepdims=True)              # (1, 1)
        mean = s * inv_n
        var = jnp.maximum(ss * inv_n - mean * mean, 0.0)
        y = (acc - mean) * jax.lax.rsqrt(var + _GN_EPS)
        return y * g_ref[...] + b_ref[...]                  # (cout, HW)

    def kernel(x_ref, skip_ref, kt_ref, mask_ref, t_ref,
               w1_ref, g1_ref, b1_ref, w2_ref, g2_ref, b2_ref,
               w3_ref, g3_ref, b3_ref, w4_ref, g4_ref, b4_ref,
               lwt_ref, lb_ref,
               o_ref, act_ref, pad_ref, col_ref):
        # zero once per sample: only the never-written gutters must stay zero.
        pad_ref[...] = jnp.zeros_like(pad_ref)

        # fused bilinear 2x upsample (align_corners=True) + channel concat:
        # x_up_flat = x_flat @ kron(Ah, Aw)^T  -- one lane-dense matmul.
        x_up = jnp.dot(x_ref[...].astype(jnp.float32), kt_ref[...],
                       preferred_element_type=jnp.float32)        # (C_low, HW)
        act_ref[0:C_low, :] = x_up
        act_ref[C_low:Cin1, :] = skip_ref[...].astype(jnp.float32)
        xin = act_ref[...]                                        # (Cin1, HW)

        # DoubleConv #1 (residual=True): GELU(x + GN(conv(GELU(GN(conv(x))))))
        h1 = _gelu(conv3x3_gn(xin, w1_ref, g1_ref, b1_ref,
                              pad_ref, col_ref, mask_ref))        # (E, HW)
        h2 = _gelu(xin + conv3x3_gn(h1, w2_ref, g2_ref, b2_ref,
                                    pad_ref, col_ref, mask_ref))  # (C_out, HW)
        # DoubleConv #2 (residual = in_ch // 2, truthy)
        h3 = _gelu(conv3x3_gn(h2, w3_ref, g3_ref, b3_ref,
                              pad_ref, col_ref, mask_ref))        # (E, HW)
        h4 = _gelu(h2 + conv3x3_gn(h3, w4_ref, g4_ref, b4_ref,
                                   pad_ref, col_ref, mask_ref))   # (C_out, HW)

        # time-embedding epilogue: emb = Linear(SiLU(t)); the Linear weights /
        # bias arrive pre-tiled over H so emb is directly a lane-dense (1, HW)
        # row broadcast over channels (emb varies only with w, since E == W).
        te = t_ref[...].astype(jnp.float32)                       # (1, E)
        silu = te * jax.nn.sigmoid(te)
        emb = jnp.dot(silu, lwt_ref[...],
                      preferred_element_type=jnp.float32) + lb_ref[...]  # (1, HW)
        o_ref[...] = (h4 + emb).astype(o_ref.dtype)

    return kernel


# ----------------------------------------------------------------------------
# wrapper glue (constant operators, parameter packing, BlockSpecs)
# ----------------------------------------------------------------------------
def _interp_matrix(n_in, n_out):
    """Bilinear interpolation matrix (n_out, n_in) with align_corners=True."""
    idx = jnp.arange(n_out, dtype=jnp.float32)
    src = idx * (n_in - 1) / max(n_out - 1, 1)
    i0 = jnp.clip(jnp.floor(src).astype(jnp.int32), 0, n_in - 1)
    i1 = jnp.clip(i0 + 1, 0, n_in - 1)
    frac = src - i0.astype(jnp.float32)
    rows = jnp.arange(n_out)
    A = jnp.zeros((n_out, n_in), jnp.float32)
    A = A.at[rows, i0].add(1.0 - frac)
    A = A.at[rows, i1].add(frac)
    return A


def _halo_masks(H, W):
    """(9, H*W) {0,1} masks: mask[kh*3+kw] kills out-of-range 3x3 taps."""
    idx = jnp.arange(H * W, dtype=jnp.int32)
    hh = idx // W
    ww = idx % W
    rows = []
    for kh in range(3):
        for kw in range(3):
            dh, dw = kh - 1, kw - 1
            ok = ((hh + dh >= 0) & (hh + dh < H) &
                  (ww + dw >= 0) & (ww + dw < W))
            rows.append(ok.astype(jnp.float32))
    return jnp.stack(rows, axis=0)


def _pack_conv(w):
    # (O, I, 3, 3) -> (O, 9*I); column index = (kh*3 + kw)*I + i
    o, i, _, _ = w.shape
    return jnp.transpose(w, (0, 2, 3, 1)).reshape(o, 9 * i)


def _bcast_spec(shape):
    return pl.BlockSpec(shape, lambda b, _n=len(shape): (0,) * _n)


def up_forward(x, skip_x, t, params):
    """Pallas implementation of Up.forward. x, skip_x: NCHW; t: (embed_dim,)."""
    B, C_low, h, w = x.shape
    _, C_skip, H, W = skip_x.shape
    E = t.shape[-1]
    HW = H * W
    Cin1 = C_low + C_skip
    C_out = params["w2"].shape[0]
    assert E == W, "x + emb broadcasts emb over the last (W) axis, needs E == W"

    # constant operators (computed once per shape, tiny)
    Ah = _interp_matrix(h, H)                       # (H, h)
    Aw = _interp_matrix(w, W)                       # (W, w)
    KT = jnp.kron(Ah, Aw).T                         # (h*w, H*W)
    masks = _halo_masks(H, W)                       # (9, HW)
    lwt_rep = jnp.tile(params["lw"].T, (1, H))      # (E, HW): col h*W+w -> lw.T[:, w]
    lb_rep = jnp.tile(params["lb"].reshape(1, E), (1, H))   # (1, HW)

    x_flat = x.reshape(B, C_low, h * w)             # metadata-only reshapes
    skip_flat = skip_x.reshape(B, C_skip, HW)
    t2 = t.reshape(1, E).astype(jnp.float32)

    def col(name):
        return params[name].reshape(-1, 1)

    in_specs = [
        pl.BlockSpec((None, C_low, h * w), lambda b: (b, 0, 0)),
        pl.BlockSpec((None, C_skip, HW), lambda b: (b, 0, 0)),
        _bcast_spec((h * w, HW)),
        _bcast_spec((9, HW)),
        _bcast_spec((1, E)),
        _bcast_spec((E, 9 * Cin1)), _bcast_spec((E, 1)), _bcast_spec((E, 1)),
        _bcast_spec((C_out, 9 * E)), _bcast_spec((C_out, 1)), _bcast_spec((C_out, 1)),
        _bcast_spec((E, 9 * C_out)), _bcast_spec((E, 1)), _bcast_spec((E, 1)),
        _bcast_spec((C_out, 9 * E)), _bcast_spec((C_out, 1)), _bcast_spec((C_out, 1)),
        _bcast_spec((E, HW)),
        _bcast_spec((1, HW)),
    ]
    out_spec = pl.BlockSpec((None, C_out, HW), lambda b: (b, 0, 0))

    Cmax = max(Cin1, E, C_out)
    scratch = [
        pltpu.VMEM((Cin1, HW), jnp.float32),              # concat(x_up, skip)
        pltpu.VMEM((Cmax, HW + 2 * W + 2), jnp.float32),  # zero-gutter buffer
        pltpu.VMEM((9 * Cmax, HW), jnp.float32),          # im2col
    ]

    kernel = _make_up_kernel(C_low, C_skip, E, C_out, H, W)
    out_flat = pl.pallas_call(
        kernel,
        out_shape=jax.ShapeDtypeStruct((B, C_out, HW), x.dtype),
        grid=(B,),
        in_specs=in_specs,
        out_specs=out_spec,
        scratch_shapes=scratch,
        compiler_params=pltpu.CompilerParams(
            dimension_semantics=("parallel",),
            vmem_limit_bytes=64 * 1024 * 1024),
    )(x_flat, skip_flat, KT, masks, t2,
      params["w1_k"], col("g1"), col("b1"),
      params["w2_k"], col("g2"), col("b2"),
      params["w3_k"], col("g3"), col("b3"),
      params["w4_k"], col("g4"), col("b4"),
      lwt_rep, lb_rep)
    return out_flat.reshape(B, C_out, H, W)


# ----------------------------------------------------------------------------
# Up module parameters
# ----------------------------------------------------------------------------
def init_up_params(key, in_ch, out_ch, embed_dim):
    ks = jax.random.split(key, 14)

    def conv_w(k, o, i):
        return 0.2 * jax.random.normal(k, (o, i, 3, 3), jnp.float32)

    def gn(kg, kb, c):
        return (1.0 + 0.05 * jax.random.normal(kg, (c,), jnp.float32),
                0.05 * jax.random.normal(kb, (c,), jnp.float32))

    p = {}
    # DoubleConv(in_ch, out_ch, mid=embed_dim, residual=True)
    p["w1"] = conv_w(ks[0], embed_dim, in_ch)
    p["g1"], p["b1"] = gn(ks[1], ks[2], embed_dim)
    p["w2"] = conv_w(ks[3], out_ch, embed_dim)
    p["g2"], p["b2"] = gn(ks[4], ks[5], out_ch)
    # DoubleConv(out_ch, out_ch, mid=embed_dim, residual=in_ch//2 (truthy))
    p["w3"] = conv_w(ks[6], embed_dim, out_ch)
    p["g3"], p["b3"] = gn(ks[7], ks[8], embed_dim)
    p["w4"] = conv_w(ks[9], out_ch, embed_dim)
    p["g4"], p["b4"] = gn(ks[10], ks[11], out_ch)
    # embed_layer: SiLU -> Linear(embed_dim, embed_dim)
    p["lw"] = 0.2 * jax.random.normal(ks[12], (embed_dim, embed_dim), jnp.float32)
    p["lb"] = 0.1 * jax.random.normal(ks[13], (embed_dim,), jnp.float32)
    # kernel-layout packed conv weights: (O, 9*I), tap = kh*3 + kw
    for n in ("w1", "w2", "w3", "w4"):
        p[n + "_k"] = _pack_conv(p[n])
    return p


# ----------------------------------------------------------------------------
# pure-JAX reference (for self-check)
# ----------------------------------------------------------------------------
def reference_forward(x, skip_x, t, params):
    hi = jax.lax.Precision.HIGHEST
    _, _, h, w = x.shape
    _, _, H, W = skip_x.shape
    Ah, Aw = _interp_matrix(h, H), _interp_matrix(w, W)
    xu = jnp.einsum("Hh,bchw->bcHw", Ah, x, precision=hi)
    xu = jnp.einsum("Ww,bcHw->bcHW", Aw, xu, precision=hi)
    xin = jnp.concatenate([xu, skip_x], axis=1)

    def conv(z, wgt):
        return jax.lax.conv_general_dilated(
            z, wgt, (1, 1), "SAME",
            dimension_numbers=("NCHW", "OIHW", "NCHW"), precision=hi)

    def gn(z, g, b):
        m = jnp.mean(z, axis=(1, 2, 3), keepdims=True)
        v = jnp.mean((z - m) ** 2, axis=(1, 2, 3), keepdims=True)
        zn = (z - m) * jax.lax.rsqrt(v + _GN_EPS)
        return zn * g.reshape(1, -1, 1, 1) + b.reshape(1, -1, 1, 1)

    gelu = lambda z: jax.nn.gelu(z, approximate=False)

    hh = xin
    y = gelu(gn(conv(hh, params["w1"]), params["g1"], params["b1"]))
    y = gn(conv(y, params["w2"]), params["g2"], params["b2"])
    hh = gelu(hh + y)
    y = gelu(gn(conv(hh, params["w3"]), params["g3"], params["b3"]))
    y = gn(conv(y, params["w4"]), params["g4"], params["b4"])
    hh = gelu(hh + y)
    emb = jnp.dot(jax.nn.silu(t), params["lw"].T, precision=hi) + params["lb"]
    return hh + emb   # broadcasts over the last (W) axis, as in PyTorch


# ----------------------------------------------------------------------------
if __name__ == "__main__":
    key = jax.random.PRNGKey(0)
    k_x, k_s, k_t, k_p = jax.random.split(key, 4)

    B = 2
    C_low, C_skip = 4, 4            # channels of low-res map / skip connection
    in_ch = C_low + C_skip          # channels after torch.cat  (Up's in_ch)
    out_ch = in_ch                  # residual DoubleConv requires in_ch == out_ch
    h = w = 8                       # low-res spatial size
    H, W = 2 * h, 2 * w             # after 2x bilinear upsample
    embed_dim = W                   # `x + emb` broadcasts emb over the W axis

    x = jax.random.normal(k_x, (B, C_low, h, w), jnp.float32)
    skip_x = jax.random.normal(k_s, (B, C_skip, H, W), jnp.float32)
    t = jax.random.normal(k_t, (embed_dim,), jnp.float32)
    params = init_up_params(k_p, in_ch, out_ch, embed_dim)

    out = jax.block_until_ready(up_forward(x, skip_x, t, params))
    assert out.shape == (B, out_ch, H, W), out.shape

    ref = reference_forward(x, skip_x, t, params)
    err = float(jnp.max(jnp.abs(out - ref)))
    if not (err < 2e-2):
        raise AssertionError(f"kernel/reference mismatch: max abs err = {err}")
    print("KERNEL_OK")
</pallas_src>

<mosaic_0001>
module attributes {stable_mosaic.version = 11 : i64} {
  func.func @kernel(%arg0: i32, %arg1: memref<1x4x64xf32, #tpu.memory_space<vmem>>, %arg2: memref<1x4x256xf32, #tpu.memory_space<vmem>>, %arg3: memref<64x256xf32, #tpu.memory_space<vmem>>, %arg4: memref<9x256xf32, #tpu.memory_space<vmem>>, %arg5: memref<1x16xf32, #tpu.memory_space<vmem>>, %arg6: memref<16x72xf32, #tpu.memory_space<vmem>>, %arg7: memref<16x1xf32, #tpu.memory_space<vmem>>, %arg8: memref<16x1xf32, #tpu.memory_space<vmem>>, %arg9: memref<8x144xf32, #tpu.memory_space<vmem>>, %arg10: memref<8x1xf32, #tpu.memory_space<vmem>>, %arg11: memref<8x1xf32, #tpu.memory_space<vmem>>, %arg12: memref<16x72xf32, #tpu.memory_space<vmem>>, %arg13: memref<16x1xf32, #tpu.memory_space<vmem>>, %arg14: memref<16x1xf32, #tpu.memory_space<vmem>>, %arg15: memref<8x144xf32, #tpu.memory_space<vmem>>, %arg16: memref<8x1xf32, #tpu.memory_space<vmem>>, %arg17: memref<8x1xf32, #tpu.memory_space<vmem>>, %arg18: memref<16x256xf32, #tpu.memory_space<vmem>>, %arg19: memref<1x256xf32, #tpu.memory_space<vmem>>, %arg20: memref<1x8x256xf32, #tpu.memory_space<vmem>>, %arg21: memref<8x256xf32, #tpu.memory_space<vmem>>, %arg22: memref<16x290xf32, #tpu.memory_space<vmem>>, %arg23: memref<144x256xf32, #tpu.memory_space<vmem>>) attributes {dimension_semantics = [#tpu.dimension_semantics<parallel>], iteration_bounds = array<i64: 2>, scalar_prefetch = 0 : i64, scratch_operands = 3 : i64, tpu.core_type = #tpu.core_type<tc>, window_params = [{transform_indices = @transform_0, window_bounds = array<i64: 1, 4, 64>}, {transform_indices = @transform_1, window_bounds = array<i64: 1, 4, 256>}, {pipeline_mode = #tpu.pipeline_mode<synchronous>, transform_indices = @transform_2, window_bounds = array<i64: 64, 256>}, {pipeline_mode = #tpu.pipeline_mode<synchronous>, transform_indices = @transform_3, window_bounds = array<i64: 9, 256>}, {pipeline_mode = #tpu.pipeline_mode<synchronous>, transform_indices = @transform_4, window_bounds = array<i64: 1, 16>}, {pipeline_mode = #tpu.pipeline_mode<synchronous>, transform_indices = @transform_5, window_bounds = array<i64: 16, 72>}, {pipeline_mode = #tpu.pipeline_mode<synchronous>, transform_indices = @transform_6, window_bounds = array<i64: 16, 1>}, {pipeline_mode = #tpu.pipeline_mode<synchronous>, transform_indices = @transform_7, window_bounds = array<i64: 16, 1>}, {pipeline_mode = #tpu.pipeline_mode<synchronous>, transform_indices = @transform_8, window_bounds = array<i64: 8, 144>}, {pipeline_mode = #tpu.pipeline_mode<synchronous>, transform_indices = @transform_9, window_bounds = array<i64: 8, 1>}, {pipeline_mode = #tpu.pipeline_mode<synchronous>, transform_indices = @transform_10, window_bounds = array<i64: 8, 1>}, {pipeline_mode = #tpu.pipeline_mode<synchronous>, transform_indices = @transform_11, window_bounds = array<i64: 16, 72>}, {pipeline_mode = #tpu.pipeline_mode<synchronous>, transform_indices = @transform_12, window_bounds = array<i64: 16, 1>}, {pipeline_mode = #tpu.pipeline_mode<synchronous>, transform_indices = @transform_13, window_bounds = array<i64: 16, 1>}, {pipeline_mode = #tpu.pipeline_mode<synchronous>, transform_indices = @transform_14, window_bounds = array<i64: 8, 144>}, {pipeline_mode = #tpu.pipeline_mode<synchronous>, transform_indices = @transform_15, window_bounds = array<i64: 8, 1>}, {pipeline_mode = #tpu.pipeline_mode<synchronous>, transform_indices = @transform_16, window_bounds = array<i64: 8, 1>}, {pipeline_mode = #tpu.pipeline_mode<synchronous>, transform_indices = @transform_17, window_bounds = array<i64: 16, 256>}, {pipeline_mode = #tpu.pipeline_mode<synchronous>, transform_indices = @transform_18, window_bounds = array<i64: 1, 256>}, {transform_indices = @transform_19, window_bounds = array<i64: 1, 8, 256>}]} {
    %cst = arith.constant 0.000000e+00 : f32
    %0 = vector.broadcast %cst : f32 to vector<16x290xf32>
    %c0 = arith.constant 0 : index
    %c0_0 = arith.constant 0 : index
    %1 = vector.load %arg22[%c0, %c0_0] : memref<16x290xf32, #tpu.memory_space<vmem>>, vector<16x290xf32>
    tpu.vector_store %arg22[%c0, %c0_0], %0 {strides = array<i32>} : memref<16x290xf32, #tpu.memory_space<vmem>>, vector<16x290xf32>,
    %c0_1 = arith.constant 0 : index
    %c0_2 = arith.constant 0 : index
    %c0_3 = arith.constant 0 : index
    %2 = vector.load %arg1[%c0_1, %c0_2, %c0_3] : memref<1x4x64xf32, #tpu.memory_space<vmem>>, vector<1x4x64xf32>
    %3 = vector.shape_cast %2 : vector<1x4x64xf32> to vector<4x64xf32>
    %c0_4 = arith.constant 0 : index
    %c0_5 = arith.constant 0 : index
    %4 = vector.load %arg3[%c0_4, %c0_5] : memref<64x256xf32, #tpu.memory_space<vmem>>, vector<64x256xf32>
    %cst_6 = arith.constant dense<0.000000e+00> : vector<4x256xf32>
    %5 = tpu.matmul %3, %4, %cst_6 {dimension_numbers = #tpu.dot_dimension_numbers<[1], [0], [0], [1], [0, 0, 1, 1], [], []>} : vector<4x64xf32>, vector<64x256xf32>, vector<4x256xf32> -> vector<4x256xf32>
    %c0_7 = arith.constant 0 : index
    %c0_8 = arith.constant 0 : index
    %6 = vector.load %arg21[%c0_7, %c0_8] : memref<8x256xf32, #tpu.memory_space<vmem>>, vector<4x256xf32>
    tpu.vector_store %arg21[%c0_7, %c0_8], %5 {strides = array<i32>} : memref<8x256xf32, #tpu.memory_space<vmem>>, vector<4x256xf32>,
    %c0_9 = arith.constant 0 : index
    %c0_10 = arith.constant 0 : index
    %c0_11 = arith.constant 0 : index
    %7 = vector.load %arg2[%c0_9, %c0_10, %c0_11] : memref<1x4x256xf32, #tpu.memory_space<vmem>>, vector<1x4x256xf32>
    %8 = vector.shape_cast %7 : vector<1x4x256xf32> to vector<4x256xf32>
    %c4 = arith.constant 4 : index
    %c0_12 = arith.constant 0 : index
    %9 = vector.load %arg21[%c4, %c0_12] : memref<8x256xf32, #tpu.memory_space<vmem>>, vector<4x256xf32>
    tpu.vector_store %arg21[%c4, %c0_12], %8 {strides = array<i32>} : memref<8x256xf32, #tpu.memory_space<vmem>>, vector<4x256xf32>,
    %c0_13 = arith.constant 0 : index
    %c0_14 = arith.constant 0 : index
    %10 = vector.load %arg21[%c0_13, %c0_14] : memref<8x256xf32, #tpu.memory_space<vmem>>, vector<8x256xf32>
    %c0_15 = arith.constant 0 : index
    %c17 = arith.constant 17 : index
    %11 = vector.load %arg22[%c0_15, %c17] : memref<16x290xf32, #tpu.memory_space<vmem>>, vector<8x256xf32>
    tpu.vector_store %arg22[%c0_15, %c17], %10 {strides = array<i32>} : memref<16x290xf32, #tpu.memory_space<vmem>>, vector<8x256xf32>,
    %c0_16 = arith.constant 0 : index
    %c0_17 = arith.constant 0 : index
    %12 = vector.load %arg22[%c0_16, %c0_17] : memref<16x290xf32, #tpu.memory_space<vmem>>, vector<8x256xf32>
    %c0_18 = arith.constant 0 : index
    %c0_19 = arith.constant 0 : index
    %13 = vector.load %arg4[%c0_18, %c0_19] : memref<9x256xf32, #tpu.memory_space<vmem>>, vector<1x256xf32>
    %14 = vector.broadcast %13 : vector<1x256xf32> to vector<8x256xf32>
    %15 = arith.mulf %12, %14 : vector<8x256xf32>
    %c0_20 = arith.constant 0 : index
    %c0_21 = arith.constant 0 : index
    %16 = vector.load %arg23[%c0_20, %c0_21] : memref<144x256xf32, #tpu.memory_space<vmem>>, vector<8x256xf32>
    tpu.vector_store %arg23[%c0_20, %c0_21], %15 {strides = array<i32>} : memref<144x256xf32, #tpu.memory_space<vmem>>, vector<8x256xf32>,
    %c0_22 = arith.constant 0 : index
    %c1 = arith.constant 1 : index
    %17 = vector.load %arg22[%c0_22, %c1] : memref<16x290xf32, #tpu.memory_space<vmem>>, vector<8x256xf32>
    %c1_23 = arith.constant 1 : index
    %c0_24 = arith.constant 0 : index
    %18 = vector.load %arg4[%c1_23, %c0_24] : memref<9x256xf32, #tpu.memory_space<vmem>>, vector<1x256xf32>
    %19 = vector.broadcast %18 : vector<1x256xf32> to vector<8x256xf32>
    %20 = arith.mulf %17, %19 : vector<8x256xf32>
    %c8 = arith.constant 8 : index
    %c0_25 = arith.constant 0 : index
    %21 = vector.load %arg23[%c8, %c0_25] : memref<144x256xf32, #tpu.memory_space<vmem>>, vector<8x256xf32>
    tpu.vector_store %arg23[%c8, %c0_25], %20 {strides = array<i32>} : memref<144x256xf32, #tpu.memory_space<vmem>>, vector<8x256xf32>,
    %c0_26 = arith.constant 0 : index
    %c2 = arith.constant 2 : index
    %22 = vector.load %arg22[%c0_26, %c2] : memref<16x290xf32, #tpu.memory_space<vmem>>, vector<8x256xf32>
    %c2_27 = arith.constant 2 : index
    %c0_28 = arith.constant 0 : index
    %23 = vector.load %arg4[%c2_27, %c0_28] : memref<9x256xf32, #tpu.memory_space<vmem>>, vector<1x256xf32>
    %24 = vector.broadcast %23 : vector<1x256xf32> to vector<8x256xf32>
    %25 = arith.mulf %22, %24 : vector<8x256xf32>
    %c16 = arith.constant 16 : index
    %c0_29 = arith.constant 0 : index
    %26 = vector.load %arg23[%c16, %c0_29] : memref<144x256xf32, #tpu.memory_space<vmem>>, vector<8x256xf32>
    tpu.vector_store %arg23[%c16, %c0_29], %25 {strides = array<i32>} : memref<144x256xf32, #tpu.memory_space<vmem>>, vector<8x256xf32>,
    %c0_30 = arith.constant 0 : index
    %c16_31 = arith.constant 16 : index
    %27 = vector.load %arg22[%c0_30, %c16_31] : memref<16x290xf32, #tpu.memory_space<vmem>>, vector<8x256xf32>
    %c3 = arith.constant 3 : index
    %c0_32 = arith.constant 0 : index
    %28 = vector.load %arg4[%c3, %c0_32] : memref<9x256xf32, #tpu.memory_space<vmem>>, vector<1x256xf32>
    %29 = vector.broadcast %28 : vector<1x256xf32> to vector<8x256xf32>
    %30 = arith.mulf %27, %29 : vector<8x256xf32>
    %c24 = arith.constant 24 : index
    %c0_33 = arith.constant 0 : index
    %31 = vector.load %arg23[%c24, %c0_33] : memref<144x256xf32, #tpu.memory_space<vmem>>, vector<8x256xf32>
    tpu.vector_store %arg23[%c24, %c0_33], %30 {strides = array<i32>} : memref<144x256xf32, #tpu.memory_space<vmem>>, vector<8x256xf32>,
    %c0_34 = arith.constant 0 : index
    %c17_35 = arith.constant 17 : index
    %32 = vector.load %arg22[%c0_34, %c17_35] : memref<16x290xf32, #tpu.memory_space<vmem>>, vector<8x256xf32>
    %c4_36 = arith.constant 4 : index
    %c0_37 = arith.constant 0 : index
    %33 = vector.load %arg4[%c4_36, %c0_37] : memref<9x256xf32, #tpu.memory_space<vmem>>, vector<1x256xf32>
    %34 = vector.broadcast %33 : vector<1x256xf32> to vector<8x256xf32>
    %35 = arith.mulf %32, %34 : vector<8x256xf32>
    %c32 = arith.constant 32 : index
    %c0_38 = arith.constant 0 : index
    %36 = vector.load %arg23[%c32, %c0_38] : memref<144x256xf32, #tpu.memory_space<vmem>>, vector<8x256xf32>
    tpu.vector_store %arg23[%c32, %c0_38], %35 {strides = array<i32>} : memref<144x256xf32, #tpu.memory_space<vmem>>, vector<8x256xf32>,
    %c0_39 = arith.constant 0 : index
    %c18 = arith.constant 18 : index
    %37 = vector.load %arg22[%c0_39, %c18] : memref<16x290xf32, #tpu.memory_space<vmem>>, vector<8x256xf32>
    %c5 = arith.constant 5 : index
    %c0_40 = arith.constant 0 : index
    %38 = vector.load %arg4[%c5, %c0_40] : memref<9x256xf32, #tpu.memory_space<vmem>>, vector<1x256xf32>
    %39 = vector.broadcast %38 : vector<1x256xf32> to vector<8x256xf32>
    %40 = arith.mulf %37, %39 : vector<8x256xf32>
    %c40 = arith.constant 40 : index
    %c0_41 = arith.constant 0 : index
    %41 = vector.load %arg23[%c40, %c0_41] : memref<144x256xf32, #tpu.memory_space<vmem>>, vector<8x256xf32>
    tpu.vector_store %arg23[%c40, %c0_41], %40 {strides = array<i32>} : memref<144x256xf32, #tpu.memory_space<vmem>>, vector<8x256xf32>,
    %c0_42 = arith.constant 0 : index
    %c32_43 = arith.constant 32 : index
    %42 = vector.load %arg22[%c0_42, %c32_43] : memref<16x290xf32, #tpu.memory_space<vmem>>, vector<8x256xf32>
    %c6 = arith.constant 6 : index
    %c0_44 = arith.constant 0 : index
    %43 = vector.load %arg4[%c6, %c0_44] : memref<9x256xf32, #tpu.memory_space<vmem>>, vector<1x256xf32>
    %44 = vector.broadcast %43 : vector<1x256xf32> to vector<8x256xf32>
    %45 = arith.mulf %42, %44 : vector<8x256xf32>
    %c48 = arith.constant 48 : index
    %c0_45 = arith.constant 0 : index
    %46 = vector.load %arg23[%c48, %c0_45] : memref<144x256xf32, #tpu.memory_space<vmem>>, vector<8x256xf32>
    tpu.vector_store %arg23[%c48, %c0_45], %45 {strides = array<i32>} : memref<144x256xf32, #tpu.memory_space<vmem>>, vector<8x256xf32>,
    %c0_46 = arith.constant 0 : index
    %c33 = arith.constant 33 : index
    %47 = vector.load %arg22[%c0_46, %c33] : memref<16x290xf32, #tpu.memory_space<vmem>>, vector<8x256xf32>
    %c7 = arith.constant 7 : index
    %c0_47 = arith.constant 0 : index
    %48 = vector.load %arg4[%c7, %c0_47] : memref<9x256xf32, #tpu.memory_space<vmem>>, vector<1x256xf32>
    %49 = vector.broadcast %48 : vector<1x256xf32> to vector<8x256xf32>
    %50 = arith.mulf %47, %49 : vector<8x256xf32>
    %c56 = arith.constant 56 : index
    %c0_48 = arith.constant 0 : index
    %51 = vector.load %arg23[%c56, %c0_48] : memref<144x256xf32, #tpu.memory_space<vmem>>, vector<8x256xf32>
    tpu.vector_store %arg23[%c56, %c0_48], %50 {strides = array<i32>} : memref<144x256xf32, #tpu.memory_space<vmem>>, vector<8x256xf32>,
    %c0_49 = arith.constant 0 : index
    %c34 = arith.constant 34 : index
    %52 = vector.load %arg22[%c0_49, %c34] : memref<16x290xf32, #tpu.memory_space<vmem>>, vector<8x256xf32>
    %c8_50 = arith.constant 8 : index
    %c0_51 = arith.constant 0 : index
    %53 = vector.load %arg4[%c8_50, %c0_51] : memref<9x256xf32, #tpu.memory_space<vmem>>, vector<1x256xf32>
    %54 = vector.broadcast %53 : vector<1x256xf32> to vector<8x256xf32>
    %55 = arith.mulf %52, %54 : vector<8x256xf32>
    %c64 = arith.constant 64 : index
    %c0_52 = arith.constant 0 : index
    %56 = vector.load %arg23[%c64, %c0_52] : memref<144x256xf32, #tpu.memory_space<vmem>>, vector<8x256xf32>
    tpu.vector_store %arg23[%c64, %c0_52], %55 {strides = array<i32>} : memref<144x256xf32, #tpu.memory_space<vmem>>, vector<8x256xf32>,
    %c0_53 = arith.constant 0 : index
    %c0_54 = arith.constant 0 : index
    %57 = vector.load %arg6[%c0_53, %c0_54] : memref<16x72xf32, #tpu.memory_space<vmem>>, vector<16x72xf32>
    %c0_55 = arith.constant 0 : index
    %c0_56 = arith.constant 0 : index
    %58 = vector.load %arg23[%c0_55, %c0_56] : memref<144x256xf32, #tpu.memory_space<vmem>>, vector<72x256xf32>
    %cst_57 = arith.constant dense<0.000000e+00> : vector<16x256xf32>
    %59 = tpu.matmul %57, %58, %cst_57 {dimension_numbers = #tpu.dot_dimension_numbers<[1], [0], [0], [1], [0, 0, 1, 1], [], []>} : vector<16x72xf32>, vector<72x256xf32>, vector<16x256xf32> -> vector<16x256xf32>
    %60 = vector.shape_cast %59 : vector<16x256xf32> to vector<1x16x256xf32>
    %cst_58 = arith.constant dense<0.000000e+00> : vector<1xf32>
    %61 = vector.multi_reduction <add>, %60, %cst_58 [1, 2] : vector<1x16x256xf32> to vector<1xf32>
    %62 = vector.shape_cast %61 : vector<1xf32> to vector<1x1x1xf32>
    %63 = vector.extract %62[0, 0, 0] : f32 from vector<1x1x1xf32>
    %64 = vector.broadcast %63 : f32 to vector<1x1xf32>
    %65 = arith.mulf %59, %59 : vector<16x256xf32>
    %66 = vector.shape_cast %65 : vector<16x256xf32> to vector<1x16x256xf32>
    %cst_59 = arith.constant dense<0.000000e+00> : vector<1xf32>
    %67 = vector.multi_reduction <add>, %66, %cst_59 [1, 2] : vector<1x16x256xf32> to vector<1xf32>
    %68 = vector.shape_cast %67 : vector<1xf32> to vector<1x1x1xf32>
    %69 = vector.extract %68[0, 0, 0] : f32 from vector<1x1x1xf32>
    %70 = vector.broadcast %69 : f32 to vector<1x1xf32>
    %cst_60 = arith.constant 2.44140625E-4 : f32
    %71 = vector.broadcast %cst_60 : f32 to vector<1x1xf32>
    %72 = arith.mulf %64, %71 : vector<1x1xf32>
    %cst_61 = arith.constant 2.44140625E-4 : f32
    %73 = vector.broadcast %cst_61 : f32 to vector<1x1xf32>
    %74 = arith.mulf %70, %73 : vector<1x1xf32>
    %75 = arith.mulf %72, %72 : vector<1x1xf32>
    %76 = arith.subf %74, %75 : vector<1x1xf32>
    %cst_62 = arith.constant 0.000000e+00 : f32
    %77 = vector.broadcast %cst_62 : f32 to vector<1x1xf32>
    %78 = arith.maximumf %76, %77 : vector<1x1xf32>
    %79 = vector.broadcast %72 : vector<1x1xf32> to vector<16x256xf32>
    %80 = arith.subf %59, %79 : vector<16x256xf32>
    %cst_63 = arith.constant 9.99999974E-6 : f32
    %81 = vector.broadcast %cst_63 : f32 to vector<1x1xf32>
    %82 = arith.addf %78, %81 : vector<1x1xf32>
    %83 = math.rsqrt %82 : vector<1x1xf32>
    %84 = vector.broadcast %83 : vector<1x1xf32> to vector<16x256xf32>
    %85 = arith.mulf %80, %84 : vector<16x256xf32>
    %c0_64 = arith.constant 0 : index
    %c0_65 = arith.constant 0 : index
    %86 = vector.load %arg7[%c0_64, %c0_65] : memref<16x1xf32, #tpu.memory_space<vmem>>, vector<16x1xf32>
    %87 = vector.broadcast %86 : vector<16x1xf32> to vector<16x256xf32>
    %88 = arith.mulf %85, %87 : vector<16x256xf32>
    %c0_66 = arith.constant 0 : index
    %c0_67 = arith.constant 0 : index
    %89 = vector.load %arg8[%c0_66, %c0_67] : memref<16x1xf32, #tpu.memory_space<vmem>>, vector<16x1xf32>
    %90 = vector.broadcast %89 : vector<16x1xf32> to vector<16x256xf32>
    %91 = arith.addf %88, %90 : vector<16x256xf32>
    %cst_68 = arith.constant 0.707106769 : f32
    %92 = vector.broadcast %cst_68 : f32 to vector<16x256xf32>
    %93 = arith.mulf %91, %92 : vector<16x256xf32>
    %cst_69 = arith.constant 0.000000e+00 : f32
    %94 = vector.broadcast %cst_69 : f32 to vector<16x256xf32>
    %95 = arith.cmpf oge, %93, %94 : vector<16x256xf32>
    %cst_70 = arith.constant 1.000000e+00 : f32
    %cst_71 = arith.constant -1.000000e+00 : f32
    %96 = vector.broadcast %cst_70 : f32 to vector<16x256xf32>
    %97 = vector.broadcast %cst_71 : f32 to vector<16x256xf32>
    %98 = arith.select %95, %96, %97 : vector<16x256xi1>, vector<16x256xf32>
    %99 = math.absf %93 : vector<16x256xf32>
    %cst_72 = arith.constant 0.327591091 : f32
    %100 = vector.broadcast %cst_72 : f32 to vector<16x256xf32>
    %101 = arith.mulf %100, %99 : vector<16x256xf32>
    %cst_73 = arith.constant 1.000000e+00 : f32
    %102 = vector.broadcast %cst_73 : f32 to vector<16x256xf32>
    %103 = arith.addf %102, %101 : vector<16x256xf32>
    %104 = tpu.reciprocal %103 {approx = true} : vector<16x256xf32> -> vector<16x256xf32>
    %cst_74 = arith.constant 1.06140542 : f32
    %105 = vector.broadcast %cst_74 : f32 to vector<16x256xf32>
    %106 = arith.mulf %105, %104 : vector<16x256xf32>
    %cst_75 = arith.constant -1.45315206 : f32
    %107 = vector.broadcast %cst_75 : f32 to vector<16x256xf32>
    %108 = arith.addf %106, %107 : vector<16x256xf32>
    %109 = arith.mulf %108, %104 : vector<16x256xf32>
    %cst_76 = arith.constant 1.42141378 : f32
    %110 = vector.broadcast %cst_76 : f32 to vector<16x256xf32>
    %111 = arith.addf %109, %110 : vector<16x256xf32>
    %112 = arith.mulf %111, %104 : vector<16x256xf32>
    %cst_77 = arith.constant -0.284496725 : f32
    %113 = vector.broadcast %cst_77 : f32 to vector<16x256xf32>
    %114 = arith.addf %112, %113 : vector<16x256xf32>
    %115 = arith.mulf %114, %104 : vector<16x256xf32>
    %cst_78 = arith.constant 0.254829586 : f32
    %116 = vector.broadcast %cst_78 : f32 to vector<16x256xf32>
    %117 = arith.addf %115, %116 : vector<16x256xf32>
    %118 = arith.mulf %117, %104 : vector<16x256xf32>
    %119 = arith.mulf %99, %99 : vector<16x256xf32>
    %cst_79 = arith.constant 0.000000e+00 : f32
    %120 = vector.broadcast %cst_79 : f32 to vector<16x256xf32>
    %121 = arith.subf %120, %119 : vector<16x256xf32>
    %122 = math.exp %121 : vector<16x256xf32>
    %123 = arith.mulf %118, %122 : vector<16x256xf32>
    %cst_80 = arith.constant 1.000000e+00 : f32
    %124 = vector.broadcast %cst_80 : f32 to vector<16x256xf32>
    %125 = arith.subf %124, %123 : vector<16x256xf32>
    %126 = arith.mulf %98, %125 : vector<16x256xf32>
    %cst_81 = arith.constant 5.000000e-01 : f32
    %127 = vector.broadcast %cst_81 : f32 to vector<16x256xf32>
    %128 = arith.mulf %127, %91 : vector<16x256xf32>
    %cst_82 = arith.constant 1.000000e+00 : f32
    %129 = vector.broadcast %cst_82 : f32 to vector<16x256xf32>
    %130 = arith.addf %129, %126 : vector<16x256xf32>
    %131 = arith.mulf %128, %130 : vector<16x256xf32>
    %c0_83 = arith.constant 0 : index
    %c17_84 = arith.constant 17 : index
    %132 = vector.load %arg22[%c0_83, %c17_84] : memref<16x290xf32, #tpu.memory_space<vmem>>, vector<16x256xf32>
    tpu.vector_store %arg22[%c0_83, %c17_84], %131 {strides = array<i32>} : memref<16x290xf32, #tpu.memory_space<vmem>>, vector<16x256xf32>,
    %c0_85 = arith.constant 0 : index
    %c0_86 = arith.constant 0 : index
    %133 = vector.load %arg22[%c0_85, %c0_86] : memref<16x290xf32, #tpu.memory_space<vmem>>, vector<16x256xf32>
    %c0_87 = arith.constant 0 : index
    %c0_88 = arith.constant 0 : index
    %134 = vector.load %arg4[%c0_87, %c0_88] : memref<9x256xf32, #tpu.memory_space<vmem>>, vector<1x256xf32>
    %135 = vector.broadcast %134 : vector<1x256xf32> to vector<16x256xf32>
    %136 = arith.mulf %133, %135 : vector<16x256xf32>
    %c0_89 = arith.constant 0 : index
    %c0_90 = arith.constant 0 : index
    %137 = vector.load %arg23[%c0_89, %c0_90] : memref<144x256xf32, #tpu.memory_space<vmem>>, vector<16x256xf32>
    tpu.vector_store %arg23[%c0_89, %c0_90], %136 {strides = array<i32>} : memref<144x256xf32, #tpu.memory_space<vmem>>, vector<16x256xf32>,
    %c0_91 = arith.constant 0 : index
    %c1_92 = arith.constant 1 : index
    %138 = vector.load %arg22[%c0_91, %c1_92] : memref<16x290xf32, #tpu.memory_space<vmem>>, vector<16x256xf32>
    %c1_93 = arith.constant 1 : index
    %c0_94 = arith.constant 0 : index
    %139 = vector.load %arg4[%c1_93, %c0_94] : memref<9x256xf32, #tpu.memory_space<vmem>>, vector<1x256xf32>
    %140 = vector.broadcast %139 : vector<1x256xf32> to vector<16x256xf32>
    %141 = arith.mulf %138, %140 : vector<16x256xf32>
    %c16_95 = arith.constant 16 : index
    %c0_96 = arith.constant 0 : index
    %142 = vector.load %arg23[%c16_95, %c0_96] : memref<144x256xf32, #tpu.memory_space<vmem>>, vector<16x256xf32>
    tpu.vector_store %arg23[%c16_95, %c0_96], %141 {strides = array<i32>} : memref<144x256xf32, #tpu.memory_space<vmem>>, vector<16x256xf32>,
    %c0_97 = arith.constant 0 : index
    %c2_98 = arith.constant 2 : index
    %143 = vector.load %arg22[%c0_97, %c2_98] : memref<16x290xf32, #tpu.memory_space<vmem>>, vector<16x256xf32>
    %c2_99 = arith.constant 2 : index
    %c0_100 = arith.constant 0 : index
    %144 = vector.load %arg4[%c2_99, %c0_100] : memref<9x256xf32, #tpu.memory_space<vmem>>, vector<1x256xf32>
    %145 = vector.broadcast %144 : vector<1x256xf32> to vector<16x256xf32>
    %146 = arith.mulf %143, %145 : vector<16x256xf32>
    %c32_101 = arith.constant 32 : index
    %c0_102 = arith.constant 0 : index
    %147 = vector.load %arg23[%c32_101, %c0_102] : memref<144x256xf32, #tpu.memory_space<vmem>>, vector<16x256xf32>
    tpu.vector_store %arg23[%c32_101, %c0_102], %146 {strides = array<i32>} : memref<144x256xf32, #tpu.memory_space<vmem>>, vector<16x256xf32>,
    %c0_103 = arith.constant 0 : index
    %c16_104 = arith.constant 16 : index
    %148 = vector.load %arg22[%c0_103, %c16_104] : memref<16x290xf32, #tpu.memory_space<vmem>>, vector<16x256xf32>
    %c3_105 = arith.constant 3 : index
    %c0_106 = arith.constant 0 : index
    %149 = vector.load %arg4[%c3_105, %c0_106] : memref<9x256xf32, #tpu.memory_space<vmem>>, vector<1x256xf32>
    %150 = vector.broadcast %149 : vector<1x256xf32> to vector<16x256xf32>
    %151 = arith.mulf %148, %150 : vector<16x256xf32>
    %c48_107 = arith.constant 48 : index
    %c0_108 = arith.constant 0 : index
    %152 = vector.load %arg23[%c48_107, %c0_108] : memref<144x256xf32, #tpu.memory_space<vmem>>, vector<16x256xf32>
    tpu.vector_store %arg23[%c48_107, %c0_108], %151 {strides = array<i32>} : memref<144x256xf32, #tpu.memory_space<vmem>>, vector<16x256xf32>,
    %c0_109 = arith.constant 0 : index
    %c17_110 = arith.constant 17 : index
    %153 = vector.load %arg22[%c0_109, %c17_110] : memref<16x290xf32, #tpu.memory_space<vmem>>, vector<16x256xf32>
    %c4_111 = arith.constant 4 : index
    %c0_112 = arith.constant 0 : index
    %154 = vector.load %arg4[%c4_111, %c0_112] : memref<9x256xf32, #tpu.memory_space<vmem>>, vector<1x256xf32>
    %155 = vector.broadcast %154 : vector<1x256xf32> to vector<16x256xf32>
    %156 = arith.mulf %153, %155 : vector<16x256xf32>
    %c64_113 = arith.constant 64 : index
    %c0_114 = arith.constant 0 : index
    %157 = vector.load %arg23[%c64_113, %c0_114] : memref<144x256xf32, #tpu.memory_space<vmem>>, vector<16x256xf32>
    tpu.vector_store %arg23[%c64_113, %c0_114], %156 {strides = array<i32>} : memref<144x256xf32, #tpu.memory_space<vmem>>, vector<16x256xf32>,
    %c0_115 = arith.constant 0 : index
    %c18_116 = arith.constant 18 : index
    %158 = vector.load %arg22[%c0_115, %c18_116] : memref<16x290xf32, #tpu.memory_space<vmem>>, vector<16x256xf32>
    %c5_117 = arith.constant 5 : index
    %c0_118 = arith.constant 0 : index
    %159 = vector.load %arg4[%c5_117, %c0_118] : memref<9x256xf32, #tpu.memory_space<vmem>>, vector<1x256xf32>
    %160 = vector.broadcast %159 : vector<1x256xf32> to vector<16x256xf32>
    %161 = arith.mulf %158, %160 : vector<16x256xf32>
    %c80 = arith.constant 80 : index
    %c0_119 = arith.constant 0 : index
    %162 = vector.load %arg23[%c80, %c0_119] : memref<144x256xf32, #tpu.memory_space<vmem>>, vector<16x256xf32>
    tpu.vector_store %arg23[%c80, %c0_119], %161 {strides = array<i32>} : memref<144x256xf32, #tpu.memory_space<vmem>>, vector<16x256xf32>,
    %c0_120 = arith.constant 0 : index
    %c32_121 = arith.constant 32 : index
    %163 = vector.load %arg22[%c0_120, %c32_121] : memref<16x290xf32, #tpu.memory_space<vmem>>, vector<16x256xf32>
    %c6_122 = arith.constant 6 : index
    %c0_123 = arith.constant 0 : index
    %164 = vector.load %arg4[%c6_122, %c0_123] : memref<9x256xf32, #tpu.memory_space<vmem>>, vector<1x256xf32>
    %165 = vector.broadcast %164 : vector<1x256xf32> to vector<16x256xf32>
    %166 = arith.mulf %163, %165 : vector<16x256xf32>
    %c96 = arith.constant 96 : index
    %c0_124 = arith.constant 0 : index
    %167 = vector.load %arg23[%c96, %c0_124] : memref<144x256xf32, #tpu.memory_space<vmem>>, vector<16x256xf32>
    tpu.vector_store %arg23[%c96, %c0_124], %166 {strides = array<i32>} : memref<144x256xf32, #tpu.memory_space<vmem>>, vector<16x256xf32>,
    %c0_125 = arith.constant 0 : index
    %c33_126 = arith.constant 33 : index
    %168 = vector.load %arg22[%c0_125, %c33_126] : memref<16x290xf32, #tpu.memory_space<vmem>>, vector<16x256xf32>
    %c7_127 = arith.constant 7 : index
    %c0_128 = arith.constant 0 : index
    %169 = vector.load %arg4[%c7_127, %c0_128] : memref<9x256xf32, #tpu.memory_space<vmem>>, vector<1x256xf32>
    %170 = vector.broadcast %169 : vector<1x256xf32> to vector<16x256xf32>
    %171 = arith.mulf %168, %170 : vector<16x256xf32>
    %c112 = arith.constant 112 : index
    %c0_129 = arith.constant 0 : index
    %172 = vector.load %arg23[%c112, %c0_129] : memref<144x256xf32, #tpu.memory_space<vmem>>, vector<16x256xf32>
    tpu.vector_store %arg23[%c112, %c0_129], %171 {strides = array<i32>} : memref<144x256xf32, #tpu.memory_space<vmem>>, vector<16x256xf32>,
    %c0_130 = arith.constant 0 : index
    %c34_131 = arith.constant 34 : index
    %173 = vector.load %arg22[%c0_130, %c34_131] : memref<16x290xf32, #tpu.memory_space<vmem>>, vector<16x256xf32>
    %c8_132 = arith.constant 8 : index
    %c0_133 = arith.constant 0 : index
    %174 = vector.load %arg4[%c8_132, %c0_133] : memref<9x256xf32, #tpu.memory_space<vmem>>, vector<1x256xf32>
    %175 = vector.broadcast %174 : vector<1x256xf32> to vector<16x256xf32>
    %176 = arith.mulf %173, %175 : vector<16x256xf32>
    %c128 = arith.constant 128 : index
    %c0_134 = arith.constant 0 : index
    %177 = vector.load %arg23[%c128, %c0_134] : memref<144x256xf32, #tpu.memory_space<vmem>>, vector<16x256xf32>
    tpu.vector_store %arg23[%c128, %c0_134], %176 {strides = array<i32>} : memref<144x256xf32, #tpu.memory_space<vmem>>, vector<16x256xf32>,
    %c0_135 = arith.constant 0 : index
    %c0_136 = arith.constant 0 : index
    %178 = vector.load %arg9[%c0_135, %c0_136] : memref<8x144xf32, #tpu.memory_space<vmem>>, vector<8x144xf32>
    %c0_137 = arith.constant 0 : index
    %c0_138 = arith.constant 0 : index
    %179 = vector.load %arg23[%c0_137, %c0_138] : memref<144x256xf32, #tpu.memory_space<vmem>>, vector<144x256xf32>
    %cst_139 = arith.constant dense<0.000000e+00> : vector<8x256xf32>
    %180 = tpu.matmul %178, %179, %cst_139 {dimension_numbers = #tpu.dot_dimension_numbers<[1], [0], [0], [1], [0, 0, 1, 1], [], []>} : vector<8x144xf32>, vector<144x256xf32>, vector<8x256xf32> -> vector<8x256xf32>
    %181 = vector.shape_cast %180 : vector<8x256xf32> to vector<1x8x256xf32>
    %cst_140 = arith.constant dense<0.000000e+00> : vector<1xf32>
    %182 = vector.multi_reduction <add>, %181, %cst_140 [1, 2] : vector<1x8x256xf32> to vector<1xf32>
    %183 = vector.shape_cast %182 : vector<1xf32> to vector<1x1x1xf32>
    %184 = vector.extract %183[0, 0, 0] : f32 from vector<1x1x1xf32>
    %185 = vector.broadcast %184 : f32 to vector<1x1xf32>
    %186 = arith.mulf %180, %180 : vector<8x256xf32>
    %187 = vector.shape_cast %186 : vector<8x256xf32> to vector<1x8x256xf32>
    %cst_141 = arith.constant dense<0.000000e+00> : vector<1xf32>
    %188 = vector.multi_reduction <add>, %187, %cst_141 [1, 2] : vector<1x8x256xf32> to vector<1xf32>
    %189 = vector.shape_cast %188 : vector<1xf32> to vector<1x1x1xf32>
    %190 = vector.extract %189[0, 0, 0] : f32 from vector<1x1x1xf32>
    %191 = vector.broadcast %190 : f32 to vector<1x1xf32>
    %cst_142 = arith.constant 4.8828125E-4 : f32
    %192 = vector.broadcast %cst_142 : f32 to vector<1x1xf32>
    %193 = arith.mulf %185, %192 : vector<1x1xf32>
    %cst_143 = arith.constant 4.8828125E-4 : f32
    %194 = vector.broadcast %cst_143 : f32 to vector<1x1xf32>
    %195 = arith.mulf %191, %194 : vector<1x1xf32>
    %196 = arith.mulf %193, %193 : vector<1x1xf32>
    %197 = arith.subf %195, %196 : vector<1x1xf32>
    %cst_144 = arith.constant 0.000000e+00 : f32
    %198 = vector.broadcast %cst_144 : f32 to vector<1x1xf32>
    %199 = arith.maximumf %197, %198 : vector<1x1xf32>
    %200 = vector.broadcast %193 : vector<1x1xf32> to vector<8x256xf32>
    %201 = arith.subf %180, %200 : vector<8x256xf32>
    %cst_145 = arith.constant 9.99999974E-6 : f32
    %202 = vector.broadcast %cst_145 : f32 to vector<1x1xf32>
    %203 = arith.addf %199, %202 : vector<1x1xf32>
    %204 = math.rsqrt %203 : vector<1x1xf32>
    %205 = vector.broadcast %204 : vector<1x1xf32> to vector<8x256xf32>
    %206 = arith.mulf %201, %205 : vector<8x256xf32>
    %c0_146 = arith.constant 0 : index
    %c0_147 = arith.constant 0 : index
    %207 = vector.load %arg10[%c0_146, %c0_147] : memref<8x1xf32, #tpu.memory_space<vmem>>, vector<8x1xf32>
    %208 = vector.broadcast %207 : vector<8x1xf32> to vector<8x256xf32>
    %209 = arith.mulf %206, %208 : vector<8x256xf32>
    %c0_148 = arith.constant 0 : index
    %c0_149 = arith.constant 0 : index
    %210 = vector.load %arg11[%c0_148, %c0_149] : memref<8x1xf32, #tpu.memory_space<vmem>>, vector<8x1xf32>
    %211 = vector.broadcast %210 : vector<8x1xf32> to vector<8x256xf32>
    %212 = arith.addf %209, %211 : vector<8x256xf32>
    %213 = arith.addf %10, %212 : vector<8x256xf32>
    %cst_150 = arith.constant 0.707106769 : f32
    %214 = vector.broadcast %cst_150 : f32 to vector<8x256xf32>
    %215 = arith.mulf %213, %214 : vector<8x256xf32>
    %cst_151 = arith.constant 0.000000e+00 : f32
    %216 = vector.broadcast %cst_151 : f32 to vector<8x256xf32>
    %217 = arith.cmpf oge, %215, %216 : vector<8x256xf32>
    %cst_152 = arith.constant 1.000000e+00 : f32
    %cst_153 = arith.constant -1.000000e+00 : f32
    %218 = vector.broadcast %cst_152 : f32 to vector<8x256xf32>
    %219 = vector.broadcast %cst_153 : f32 to vector<8x256xf32>
    %220 = arith.select %217, %218, %219 : vector<8x256xi1>, vector<8x256xf32>
    %221 = math.absf %215 : vector<8x256xf32>
    %cst_154 = arith.constant 0.327591091 : f32
    %222 = vector.broadcast %cst_154 : f32 to vector<8x256xf32>
    %223 = arith.mulf %222, %221 : vector<8x256xf32>
    %cst_155 = arith.constant 1.000000e+00 : f32
    %224 = vector.broadcast %cst_155 : f32 to vector<8x256xf32>
    %225 = arith.addf %224, %223 : vector<8x256xf32>
    %226 = tpu.reciprocal %225 {approx = true} : vector<8x256xf32> -> vector<8x256xf32>
    %cst_156 = arith.constant 1.06140542 : f32
    %227 = vector.broadcast %cst_156 : f32 to vector<8x256xf32>
    %228 = arith.mulf %227, %226 : vector<8x256xf32>
    %cst_157 = arith.constant -1.45315206 : f32
    %229 = vector.broadcast %cst_157 : f32 to vector<8x256xf32>
    %230 = arith.addf %228, %229 : vector<8x256xf32>
    %231 = arith.mulf %230, %226 : vector<8x256xf32>
    %cst_158 = arith.constant 1.42141378 : f32
    %232 = vector.broadcast %cst_158 : f32 to vector<8x256xf32>
    %233 = arith.addf %231, %232 : vector<8x256xf32>
    %234 = arith.mulf %233, %226 : vector<8x256xf32>
    %cst_159 = arith.constant -0.284496725 : f32
    %235 = vector.broadcast %cst_159 : f32 to vector<8x256xf32>
    %236 = arith.addf %234, %235 : vector<8x256xf32>
    %237 = arith.mulf %236, %226 : vector<8x256xf32>
    %cst_160 = arith.constant 0.254829586 : f32
    %238 = vector.broadcast %cst_160 : f32 to vector<8x256xf32>
    %239 = arith.addf %237, %238 : vector<8x256xf32>
    %240 = arith.mulf %239, %226 : vector<8x256xf32>
    %241 = arith.mulf %221, %221 : vector<8x256xf32>
    %cst_161 = arith.constant 0.000000e+00 : f32
    %242 = vector.broadcast %cst_161 : f32 to vector<8x256xf32>
    %243 = arith.subf %242, %241 : vector<8x256xf32>
    %244 = math.exp %243 : vector<8x256xf32>
    %245 = arith.mulf %240, %244 : vector<8x256xf32>
    %cst_162 = arith.constant 1.000000e+00 : f32
    %246 = vector.broadcast %cst_162 : f32 to vector<8x256xf32>
    %247 = arith.subf %246, %245 : vector<8x256xf32>
    %248 = arith.mulf %220, %247 : vector<8x256xf32>
    %cst_163 = arith.constant 5.000000e-01 : f32
    %249 = vector.broadcast %cst_163 : f32 to vector<8x256xf32>
    %250 = arith.mulf %249, %213 : vector<8x256xf32>
    %cst_164 = arith.constant 1.000000e+00 : f32
    %251 = vector.broadcast %cst_164 : f32 to vector<8x256xf32>
    %252 = arith.addf %251, %248 : vector<8x256xf32>
    %253 = arith.mulf %250, %252 : vector<8x256xf32>
    %c0_165 = arith.constant 0 : index
    %c17_166 = arith.constant 17 : index
    %254 = vector.load %arg22[%c0_165, %c17_166] : memref<16x290xf32, #tpu.memory_space<vmem>>, vector<8x256xf32>
    tpu.vector_store %arg22[%c0_165, %c17_166], %253 {strides = array<i32>} : memref<16x290xf32, #tpu.memory_space<vmem>>, vector<8x256xf32>,
    %c0_167 = arith.constant 0 : index
    %c0_168 = arith.constant 0 : index
    %255 = vector.load %arg22[%c0_167, %c0_168] : memref<16x290xf32, #tpu.memory_space<vmem>>, vector<8x256xf32>
    %c0_169 = arith.constant 0 : index
    %c0_170 = arith.constant 0 : index
    %256 = vector.load %arg4[%c0_169, %c0_170] : memref<9x256xf32, #tpu.memory_space<vmem>>, vector<1x256xf32>
    %257 = vector.broadcast %256 : vector<1x256xf32> to vector<8x256xf32>
    %258 = arith.mulf %255, %257 : vector<8x256xf32>
    %c0_171 = arith.constant 0 : index
    %c0_172 = arith.constant 0 : index
    %259 = vector.load %arg23[%c0_171, %c0_172] : memref<144x256xf32, #tpu.memory_space<vmem>>, vector<8x256xf32>
    tpu.vector_store %arg23[%c0_171, %c0_172], %258 {strides = array<i32>} : memref<144x256xf32, #tpu.memory_space<vmem>>, vector<8x256xf32>,
    %c0_173 = arith.constant 0 : index
    %c1_174 = arith.constant 1 : index
    %260 = vector.load %arg22[%c0_173, %c1_174] : memref<16x290xf32, #tpu.memory_space<vmem>>, vector<8x256xf32>
    %c1_175 = arith.constant 1 : index
    %c0_176 = arith.constant 0 : index
    %261 = vector.load %arg4[%c1_175, %c0_176] : memref<9x256xf32, #tpu.memory_space<vmem>>, vector<1x256xf32>
    %262 = vector.broadcast %261 : vector<1x256xf32> to vector<8x256xf32>
    %263 = arith.mulf %260, %262 : vector<8x256xf32>
    %c8_177 = arith.constant 8 : index
    %c0_178 = arith.constant 0 : index
    %264 = vector.load %arg23[%c8_177, %c0_178] : memref<144x256xf32, #tpu.memory_space<vmem>>, vector<8x256xf32>
    tpu.vector_store %arg23[%c8_177, %c0_178], %263 {strides = array<i32>} : memref<144x256xf32, #tpu.memory_space<vmem>>, vector<8x256xf32>,
    %c0_179 = arith.constant 0 : index
    %c2_180 = arith.constant 2 : index
    %265 = vector.load %arg22[%c0_179, %c2_180] : memref<16x290xf32, #tpu.memory_space<vmem>>, vector<8x256xf32>
    %c2_181 = arith.constant 2 : index
    %c0_182 = arith.constant 0 : index
    %266 = vector.load %arg4[%c2_181, %c0_182] : memref<9x256xf32, #tpu.memory_space<vmem>>, vector<1x256xf32>
    %267 = vector.broadcast %266 : vector<1x256xf32> to vector<8x256xf32>
    %268 = arith.mulf %265, %267 : vector<8x256xf32>
    %c16_183 = arith.constant 16 : index
    %c0_184 = arith.constant 0 : index
    %269 = vector.load %arg23[%c16_183, %c0_184] : memref<144x256xf32, #tpu.memory_space<vmem>>, vector<8x256xf32>
    tpu.vector_store %arg23[%c16_183, %c0_184], %268 {strides = array<i32>} : memref<144x256xf32, #tpu.memory_space<vmem>>, vector<8x256xf32>,
    %c0_185 = arith.constant 0 : index
    %c16_186 = arith.constant 16 : index
    %270 = vector.load %arg22[%c0_185, %c16_186] : memref<16x290xf32, #tpu.memory_space<vmem>>, vector<8x256xf32>
    %c3_187 = arith.constant 3 : index
    %c0_188 = arith.constant 0 : index
    %271 = vector.load %arg4[%c3_187, %c0_188] : memref<9x256xf32, #tpu.memory_space<vmem>>, vector<1x256xf32>
    %272 = vector.broadcast %271 : vector<1x256xf32> to vector<8x256xf32>
    %273 = arith.mulf %270, %272 : vector<8x256xf32>
    %c24_189 = arith.constant 24 : index
    %c0_190 = arith.constant 0 : index
    %274 = vector.load %arg23[%c24_189, %c0_190] : memref<144x256xf32, #tpu.memory_space<vmem>>, vector<8x256xf32>
    tpu.vector_store %arg23[%c24_189, %c0_190], %273 {strides = array<i32>} : memref<144x256xf32, #tpu.memory_space<vmem>>, vector<8x256xf32>,
    %c0_191 = arith.constant 0 : index
    %c17_192 = arith.constant 17 : index
    %275 = vector.load %arg22[%c0_191, %c17_192] : memref<16x290xf32, #tpu.memory_space<vmem>>, vector<8x256xf32>
    %c4_193 = arith.constant 4 : index
    %c0_194 = arith.constant 0 : index
    %276 = vector.load %arg4[%c4_193, %c0_194] : memref<9x256xf32, #tpu.memory_space<vmem>>, vector<1x256xf32>
    %277 = vector.broadcast %276 : vector<1x256xf32> to vector<8x256xf32>
    %278 = arith.mulf %275, %277 : vector<8x256xf32>
    %c32_195 = arith.constant 32 : index
    %c0_196 = arith.constant 0 : index
    %279 = vector.load %arg23[%c32_195, %c0_196] : memref<144x256xf32, #tpu.memory_space<vmem>>, vector<8x256xf32>
    tpu.vector_store %arg23[%c32_195, %c0_196], %278 {strides = array<i32>} : memref<144x256xf32, #tpu.memory_space<vmem>>, vector<8x256xf32>,
    %c0_197 = arith.constant 0 : index
    %c18_198 = arith.constant 18 : index
    %280 = vector.load %arg22[%c0_197, %c18_198] : memref<16x290xf32, #tpu.memory_space<vmem>>, vector<8x256xf32>
    %c5_199 = arith.constant 5 : index
    %c0_200 = arith.constant 0 : index
    %281 = vector.load %arg4[%c5_199, %c0_200] : memref<9x256xf32, #tpu.memory_space<vmem>>, vector<1x256xf32>
    %282 = vector.broadcast %281 : vector<1x256xf32> to vector<8x256xf32>
    %283 = arith.mulf %280, %282 : vector<8x256xf32>
    %c40_201 = arith.constant 40 : index
    %c0_202 = arith.constant 0 : index
    %284 = vector.load %arg23[%c40_201, %c0_202] : memref<144x256xf32, #tpu.memory_space<vmem>>, vector<8x256xf32>
    tpu.vector_store %arg23[%c40_201, %c0_202], %283 {strides = array<i32>} : memref<144x256xf32, #tpu.memory_space<vmem>>, vector<8x256xf32>,
    %c0_203 = arith.constant 0 : index
    %c32_204 = arith.constant 32 : index
    %285 = vector.load %arg22[%c0_203, %c32_204] : memref<16x290xf32, #tpu.memory_space<vmem>>, vector<8x256xf32>
    %c6_205 = arith.constant 6 : index
    %c0_206 = arith.constant 0 : index
    %286 = vector.load %arg4[%c6_205, %c0_206] : memref<9x256xf32, #tpu.memory_space<vmem>>, vector<1x256xf32>
    %287 = vector.broadcast %286 : vector<1x256xf32> to vector<8x256xf32>
    %288 = arith.mulf %285, %287 : vector<8x256xf32>
    %c48_207 = arith.constant 48 : index
    %c0_208 = arith.constant 0 : index
    %289 = vector.load %arg23[%c48_207, %c0_208] : memref<144x256xf32, #tpu.memory_space<vmem>>, vector<8x256xf32>
    tpu.vector_store %arg23[%c48_207, %c0_208], %288 {strides = array<i32>} : memref<144x256xf32, #tpu.memory_space<vmem>>, vector<8x256xf32>,
    %c0_209 = arith.constant 0 : index
    %c33_210 = arith.constant 33 : index
    %290 = vector.load %arg22[%c0_209, %c33_210] : memref<16x290xf32, #tpu.memory_space<vmem>>, vector<8x256xf32>
    %c7_211 = arith.constant 7 : index
    %c0_212 = arith.constant 0 : index
    %291 = vector.load %arg4[%c7_211, %c0_212] : memref<9x256xf32, #tpu.memory_space<vmem>>, vector<1x256xf32>
    %292 = vector.broadcast %291 : vector<1x256xf32> to vector<8x256xf32>
    %293 = arith.mulf %290, %292 : vector<8x256xf32>
    %c56_213 = arith.constant 56 : index
    %c0_214 = arith.constant 0 : index
    %294 = vector.load %arg23[%c56_213, %c0_214] : memref<144x256xf32, #tpu.memory_space<vmem>>, vector<8x256xf32>
    tpu.vector_store %arg23[%c56_213, %c0_214], %293 {strides = array<i32>} : memref<144x256xf32, #tpu.memory_space<vmem>>, vector<8x256xf32>,
    %c0_215 = arith.constant 0 : index
    %c34_216 = arith.constant 34 : index
    %295 = vector.load %arg22[%c0_215, %c34_216] : memref<16x290xf32, #tpu.memory_space<vmem>>, vector<8x256xf32>
    %c8_217 = arith.constant 8 : index
    %c0_218 = arith.constant 0 : index
    %296 = vector.load %arg4[%c8_217, %c0_218] : memref<9x256xf32, #tpu.memory_space<vmem>>, vector<1x256xf32>
    %297 = vector.broadcast %296 : vector<1x256xf32> to vector<8x256xf32>
    %298 = arith.mulf %295, %297 : vector<8x256xf32>
    %c64_219 = arith.constant 64 : index
    %c0_220 = arith.constant 0 : index
    %299 = vector.load %arg23[%c64_219, %c0_220] : memref<144x256xf32, #tpu.memory_space<vmem>>, vector<8x256xf32>
    tpu.vector_store %arg23[%c64_219, %c0_220], %298 {strides = array<i32>} : memref<144x256xf32, #tpu.memory_space<vmem>>, vector<8x256xf32>,
    %c0_221 = arith.constant 0 : index
    %c0_222 = arith.constant 0 : index
    %300 = vector.load %arg12[%c0_221, %c0_222] : memref<16x72xf32, #tpu.memory_space<vmem>>, vector<16x72xf32>
    %c0_223 = arith.constant 0 : index
    %c0_224 = arith.constant 0 : index
    %301 = vector.load %arg23[%c0_223, %c0_224] : memref<144x256xf32, #tpu.memory_space<vmem>>, vector<72x256xf32>
    %cst_225 = arith.constant dense<0.000000e+00> : vector<16x256xf32>
    %302 = tpu.matmul %300, %301, %cst_225 {dimension_numbers = #tpu.dot_dimension_numbers<[1], [0], [0], [1], [0, 0, 1, 1], [], []>} : vector<16x72xf32>, vector<72x256xf32>, vector<16x256xf32> -> vector<16x256xf32>
    %303 = vector.shape_cast %302 : vector<16x256xf32> to vector<1x16x256xf32>
    %cst_226 = arith.constant dense<0.000000e+00> : vector<1xf32>
    %304 = vector.multi_reduction <add>, %303, %cst_226 [1, 2] : vector<1x16x256xf32> to vector<1xf32>
    %305 = vector.shape_cast %304 : vector<1xf32> to vector<1x1x1xf32>
    %306 = vector.extract %305[0, 0, 0] : f32 from vector<1x1x1xf32>
    %307 = vector.broadcast %306 : f32 to vector<1x1xf32>
    %308 = arith.mulf %302, %302 : vector<16x256xf32>
    %309 = vector.shape_cast %308 : vector<16x256xf32> to vector<1x16x256xf32>
    %cst_227 = arith.constant dense<0.000000e+00> : vector<1xf32>
    %310 = vector.multi_reduction <add>, %309, %cst_227 [1, 2] : vector<1x16x256xf32> to vector<1xf32>
    %311 = vector.shape_cast %310 : vector<1xf32> to vector<1x1x1xf32>
    %312 = vector.extract %311[0, 0, 0] : f32 from vector<1x1x1xf32>
    %313 = vector.broadcast %312 : f32 to vector<1x1xf32>
    %cst_228 = arith.constant 2.44140625E-4 : f32
    %314 = vector.broadcast %cst_228 : f32 to vector<1x1xf32>
    %315 = arith.mulf %307, %314 : vector<1x1xf32>
    %cst_229 = arith.constant 2.44140625E-4 : f32
    %316 = vector.broadcast %cst_229 : f32 to vector<1x1xf32>
    %317 = arith.mulf %313, %316 : vector<1x1xf32>
    %318 = arith.mulf %315, %315 : vector<1x1xf32>
    %319 = arith.subf %317, %318 : vector<1x1xf32>
    %cst_230 = arith.constant 0.000000e+00 : f32
    %320 = vector.broadcast %cst_230 : f32 to vector<1x1xf32>
    %321 = arith.maximumf %319, %320 : vector<1x1xf32>
    %322 = vector.broadcast %315 : vector<1x1xf32> to vector<16x256xf32>
    %323 = arith.subf %302, %322 : vector<16x256xf32>
    %cst_231 = arith.constant 9.99999974E-6 : f32
    %324 = vector.broadcast %cst_231 : f32 to vector<1x1xf32>
    %325 = arith.addf %321, %324 : vector<1x1xf32>
    %326 = math.rsqrt %325 : vector<1x1xf32>
    %327 = vector.broadcast %326 : vector<1x1xf32> to vector<16x256xf32>
    %328 = arith.mulf %323, %327 : vector<16x256xf32>
    %c0_232 = arith.constant 0 : index
    %c0_233 = arith.constant 0 : index
    %329 = vector.load %arg13[%c0_232, %c0_233] : memref<16x1xf32, #tpu.memory_space<vmem>>, vector<16x1xf32>
    %330 = vector.broadcast %329 : vector<16x1xf32> to vector<16x256xf32>
    %331 = arith.mulf %328, %330 : vector<16x256xf32>
    %c0_234 = arith.constant 0 : index
    %c0_235 = arith.constant 0 : index
    %332 = vector.load %arg14[%c0_234, %c0_235] : memref<16x1xf32, #tpu.memory_space<vmem>>, vector<16x1xf32>
    %333 = vector.broadcast %332 : vector<16x1xf32> to vector<16x256xf32>
    %334 = arith.addf %331, %333 : vector<16x256xf32>
    %cst_236 = arith.constant 0.707106769 : f32
    %335 = vector.broadcast %cst_236 : f32 to vector<16x256xf32>
    %336 = arith.mulf %334, %335 : vector<16x256xf32>
    %cst_237 = arith.constant 0.000000e+00 : f32
    %337 = vector.broadcast %cst_237 : f32 to vector<16x256xf32>
    %338 = arith.cmpf oge, %336, %337 : vector<16x256xf32>
    %cst_238 = arith.constant 1.000000e+00 : f32
    %cst_239 = arith.constant -1.000000e+00 : f32
    %339 = vector.broadcast %cst_238 : f32 to vector<16x256xf32>
    %340 = vector.broadcast %cst_239 : f32 to vector<16x256xf32>
    %341 = arith.select %338, %339, %340 : vector<16x256xi1>, vector<16x256xf32>
    %342 = math.absf %336 : vector<16x256xf32>
    %cst_240 = arith.constant 0.327591091 : f32
    %343 = vector.broadcast %cst_240 : f32 to vector<16x256xf32>
    %344 = arith.mulf %343, %342 : vector<16x256xf32>
    %cst_241 = arith.constant 1.000000e+00 : f32
    %345 = vector.broadcast %cst_241 : f32 to vector<16x256xf32>
    %346 = arith.addf %345, %344 : vector<16x256xf32>
    %347 = tpu.reciprocal %346 {approx = true} : vector<16x256xf32> -> vector<16x256xf32>
    %cst_242 = arith.constant 1.06140542 : f32
    %348 = vector.broadcast %cst_242 : f32 to vector<16x256xf32>
    %349 = arith.mulf %348, %347 : vector<16x256xf32>
    %cst_243 = arith.constant -1.45315206 : f32
    %350 = vector.broadcast %cst_243 : f32 to vector<16x256xf32>
    %351 = arith.addf %349, %350 : vector<16x256xf32>
    %352 = arith.mulf %351, %347 : vector<16x256xf32>
    %cst_244 = arith.constant 1.42141378 : f32
    %353 = vector.broadcast %cst_244 : f32 to vector<16x256xf32>
    %354 = arith.addf %352, %353 : vector<16x256xf32>
    %355 = arith.mulf %354, %347 : vector<16x256xf32>
    %cst_245 = arith.constant -0.284496725 : f32
    %356 = vector.broadcast %cst_245 : f32 to vector<16x256xf32>
    %357 = arith.addf %355, %356 : vector<16x256xf32>
    %358 = arith.mulf %357, %347 : vector<16x256xf32>
    %cst_246 = arith.constant 0.254829586 : f32
    %359 = vector.broadcast %cst_246 : f32 to vector<16x256xf32>
    %360 = arith.addf %358, %359 : vector<16x256xf32>
    %361 = arith.mulf %360, %347 : vector<16x256xf32>
    %362 = arith.mulf %342, %342 : vector<16x256xf32>
    %cst_247 = arith.constant 0.000000e+00 : f32
    %363 = vector.broadcast %cst_247 : f32 to vector<16x256xf32>
    %364 = arith.subf %363, %362 : vector<16x256xf32>
    %365 = math.exp %364 : vector<16x256xf32>
    %366 = arith.mulf %361, %365 : vector<16x256xf32>
    %cst_248 = arith.constant 1.000000e+00 : f32
    %367 = vector.broadcast %cst_248 : f32 to vector<16x256xf32>
    %368 = arith.subf %367, %366 : vector<16x256xf32>
    %369 = arith.mulf %341, %368 : vector<16x256xf32>
    %cst_249 = arith.constant 5.000000e-01 : f32
    %370 = vector.broadcast %cst_249 : f32 to vector<16x256xf32>
    %371 = arith.mulf %370, %334 : vector<16x256xf32>
    %cst_250 = arith.constant 1.000000e+00 : f32
    %372 = vector.broadcast %cst_250 : f32 to vector<16x256xf32>
    %373 = arith.addf %372, %369 : vector<16x256xf32>
    %374 = arith.mulf %371, %373 : vector<16x256xf32>
    %c0_251 = arith.constant 0 : index
    %c17_252 = arith.constant 17 : index
    %375 = vector.load %arg22[%c0_251, %c17_252] : memref<16x290xf32, #tpu.memory_space<vmem>>, vector<16x256xf32>
    tpu.vector_store %arg22[%c0_251, %c17_252], %374 {strides = array<i32>} : memref<16x290xf32, #tpu.memory_space<vmem>>, vector<16x256xf32>,
    %c0_253 = arith.constant 0 : index
    %c0_254 = arith.constant 0 : index
    %376 = vector.load %arg22[%c0_253, %c0_254] : memref<16x290xf32, #tpu.memory_space<vmem>>, vector<16x256xf32>
    %c0_255 = arith.constant 0 : index
    %c0_256 = arith.constant 0 : index
    %377 = vector.load %arg4[%c0_255, %c0_256] : memref<9x256xf32, #tpu.memory_space<vmem>>, vector<1x256xf32>
    %378 = vector.broadcast %377 : vector<1x256xf32> to vector<16x256xf32>
    %379 = arith.mulf %376, %378 : vector<16x256xf32>
    %c0_257 = arith.constant 0 : index
    %c0_258 = arith.constant 0 : index
    %380 = vector.load %arg23[%c0_257, %c0_258] : memref<144x256xf32, #tpu.memory_space<vmem>>, vector<16x256xf32>
    tpu.vector_store %arg23[%c0_257, %c0_258], %379 {strides = array<i32>} : memref<144x256xf32, #tpu.memory_space<vmem>>, vector<16x256xf32>,
    %c0_259 = arith.constant 0 : index
    %c1_260 = arith.constant 1 : index
    %381 = vector.load %arg22[%c0_259, %c1_260] : memref<16x290xf32, #tpu.memory_space<vmem>>, vector<16x256xf32>
    %c1_261 = arith.constant 1 : index
    %c0_262 = arith.constant 0 : index
    %382 = vector.load %arg4[%c1_261, %c0_262] : memref<9x256xf32, #tpu.memory_space<vmem>>, vector<1x256xf32>
    %383 = vector.broadcast %382 : vector<1x256xf32> to vector<16x256xf32>
    %384 = arith.mulf %381, %383 : vector<16x256xf32>
    %c16_263 = arith.constant 16 : index
    %c0_264 = arith.constant 0 : index
    %385 = vector.load %arg23[%c16_263, %c0_264] : memref<144x256xf32, #tpu.memory_space<vmem>>, vector<16x256xf32>
    tpu.vector_store %arg23[%c16_263, %c0_264], %384 {strides = array<i32>} : memref<144x256xf32, #tpu.memory_space<vmem>>, vector<16x256xf32>,
    %c0_265 = arith.constant 0 : index
    %c2_266 = arith.constant 2 : index
    %386 = vector.load %arg22[%c0_265, %c2_266] : memref<16x290xf32, #tpu.memory_space<vmem>>, vector<16x256xf32>
    %c2_267 = arith.constant 2 : index
    %c0_268 = arith.constant 0 : index
    %387 = vector.load %arg4[%c2_267, %c0_268] : memref<9x256xf32, #tpu.memory_space<vmem>>, vector<1x256xf32>
    %388 = vector.broadcast %387 : vector<1x256xf32> to vector<16x256xf32>
    %389 = arith.mulf %386, %388 : vector<16x256xf32>
    %c32_269 = arith.constant 32 : index
    %c0_270 = arith.constant 0 : index
    %390 = vector.load %arg23[%c32_269, %c0_270] : memref<144x256xf32, #tpu.memory_space<vmem>>, vector<16x256xf32>
    tpu.vector_store %arg23[%c32_269, %c0_270], %389 {strides = array<i32>} : memref<144x256xf32, #tpu.memory_space<vmem>>, vector<16x256xf32>,
    %c0_271 = arith.constant 0 : index
    %c16_272 = arith.constant 16 : index
    %391 = vector.load %arg22[%c0_271, %c16_272] : memref<16x290xf32, #tpu.memory_space<vmem>>, vector<16x256xf32>
    %c3_273 = arith.constant 3 : index
    %c0_274 = arith.constant 0 : index
    %392 = vector.load %arg4[%c3_273, %c0_274] : memref<9x256xf32, #tpu.memory_space<vmem>>, vector<1x256xf32>
    %393 = vector.broadcast %392 : vector<1x256xf32> to vector<16x256xf32>
    %394 = arith.mulf %391, %393 : vector<16x256xf32>
    %c48_275 = arith.constant 48 : index
    %c0_276 = arith.constant 0 : index
    %395 = vector.load %arg23[%c48_275, %c0_276] : memref<144x256xf32, #tpu.memory_space<vmem>>, vector<16x256xf32>
    tpu.vector_store %arg23[%c48_275, %c0_276], %394 {strides = array<i32>} : memref<144x256xf32, #tpu.memory_space<vmem>>, vector<16x256xf32>,
    %c0_277 = arith.constant 0 : index
    %c17_278 = arith.constant 17 : index
    %396 = vector.load %arg22[%c0_277, %c17_278] : memref<16x290xf32, #tpu.memory_space<vmem>>, vector<16x256xf32>
    %c4_279 = arith.constant 4 : index
    %c0_280 = arith.constant 0 : index
    %397 = vector.load %arg4[%c4_279, %c0_280] : memref<9x256xf32, #tpu.memory_space<vmem>>, vector<1x256xf32>
    %398 = vector.broadcast %397 : vector<1x256xf32> to vector<16x256xf32>
    %399 = arith.mulf %396, %398 : vector<16x256xf32>
    %c64_281 = arith.constant 64 : index
    %c0_282 = arith.constant 0 : index
    %400 = vector.load %arg23[%c64_281, %c0_282] : memref<144x256xf32, #tpu.memory_space<vmem>>, vector<16x256xf32>
    tpu.vector_store %arg23[%c64_281, %c0_282], %399 {strides = array<i32>} : memref<144x256xf32, #tpu.memory_space<vmem>>, vector<16x256xf32>,
    %c0_283 = arith.constant 0 : index
    %c18_284 = arith.constant 18 : index
    %401 = vector.load %arg22[%c0_283, %c18_284] : memref<16x290xf32, #tpu.memory_space<vmem>>, vector<16x256xf32>
    %c5_285 = arith.constant 5 : index
    %c0_286 = arith.constant 0 : index
    %402 = vector.load %arg4[%c5_285, %c0_286] : memref<9x256xf32, #tpu.memory_space<vmem>>, vector<1x256xf32>
    %403 = vector.broadcast %402 : vector<1x256xf32> to vector<16x256xf32>
    %404 = arith.mulf %401, %403 : vector<16x256xf32>
    %c80_287 = arith.constant 80 : index
    %c0_288 = arith.constant 0 : index
    %405 = vector.load %arg23[%c80_287, %c0_288] : memref<144x256xf32, #tpu.memory_space<vmem>>, vector<16x256xf32>
    tpu.vector_store %arg23[%c80_287, %c0_288], %404 {strides = array<i32>} : memref<144x256xf32, #tpu.memory_space<vmem>>, vector<16x256xf32>,
    %c0_289 = arith.constant 0 : index
    %c32_290 = arith.constant 32 : index
    %406 = vector.load %arg22[%c0_289, %c32_290] : memref<16x290xf32, #tpu.memory_space<vmem>>, vector<16x256xf32>
    %c6_291 = arith.constant 6 : index
    %c0_292 = arith.constant 0 : index
    %407 = vector.load %arg4[%c6_291, %c0_292] : memref<9x256xf32, #tpu.memory_space<vmem>>, vector<1x256xf32>
    %408 = vector.broadcast %407 : vector<1x256xf32> to vector<16x256xf32>
    %409 = arith.mulf %406, %408 : vector<16x256xf32>
    %c96_293 = arith.constant 96 : index
    %c0_294 = arith.constant 0 : index
    %410 = vector.load %arg23[%c96_293, %c0_294] : memref<144x256xf32, #tpu.memory_space<vmem>>, vector<16x256xf32>
    tpu.vector_store %arg23[%c96_293, %c0_294], %409 {strides = array<i32>} : memref<144x256xf32, #tpu.memory_space<vmem>>, vector<16x256xf32>,
    %c0_295 = arith.constant 0 : index
    %c33_296 = arith.constant 33 : index
    %411 = vector.load %arg22[%c0_295, %c33_296] : memref<16x290xf32, #tpu.memory_space<vmem>>, vector<16x256xf32>
    %c7_297 = arith.constant 7 : index
    %c0_298 = arith.constant 0 : index
    %412 = vector.load %arg4[%c7_297, %c0_298] : memref<9x256xf32, #tpu.memory_space<vmem>>, vector<1x256xf32>
    %413 = vector.broadcast %412 : vector<1x256xf32> to vector<16x256xf32>
    %414 = arith.mulf %411, %413 : vector<16x256xf32>
    %c112_299 = arith.constant 112 : index
    %c0_300 = arith.constant 0 : index
    %415 = vector.load %arg23[%c112_299, %c0_300] : memref<144x256xf32, #tpu.memory_space<vmem>>, vector<16x256xf32>
    tpu.vector_store %arg23[%c112_299, %c0_300], %414 {strides = array<i32>} : memref<144x256xf32, #tpu.memory_space<vmem>>, vector<16x256xf32>,
    %c0_301 = arith.constant 0 : index
    %c34_302 = arith.constant 34 : index
    %416 = vector.load %arg22[%c0_301, %c34_302] : memref<16x290xf32, #tpu.memory_space<vmem>>, vector<16x256xf32>
    %c8_303 = arith.constant 8 : index
    %c0_304 = arith.constant 0 : index
    %417 = vector.load %arg4[%c8_303, %c0_304] : memref<9x256xf32, #tpu.memory_space<vmem>>, vector<1x256xf32>
    %418 = vector.broadcast %417 : vector<1x256xf32> to vector<16x256xf32>
    %419 = arith.mulf %416, %418 : vector<16x256xf32>
    %c128_305 = arith.constant 128 : index
    %c0_306 = arith.constant 0 : index
    %420 = vector.load %arg23[%c128_305, %c0_306] : memref<144x256xf32, #tpu.memory_space<vmem>>, vector<16x256xf32>
    tpu.vector_store %arg23[%c128_305, %c0_306], %419 {strides = array<i32>} : memref<144x256xf32, #tpu.memory_space<vmem>>, vector<16x256xf32>,
    %c0_307 = arith.constant 0 : index
    %c0_308 = arith.constant 0 : index
    %421 = vector.load %arg15[%c0_307, %c0_308] : memref<8x144xf32, #tpu.memory_space<vmem>>, vector<8x144xf32>
    %c0_309 = arith.constant 0 : index
    %c0_310 = arith.constant 0 : index
    %422 = vector.load %arg23[%c0_309, %c0_310] : memref<144x256xf32, #tpu.memory_space<vmem>>, vector<144x256xf32>
    %cst_311 = arith.constant dense<0.000000e+00> : vector<8x256xf32>
    %423 = tpu.matmul %421, %422, %cst_311 {dimension_numbers = #tpu.dot_dimension_numbers<[1], [0], [0], [1], [0, 0, 1, 1], [], []>} : vector<8x144xf32>, vector<144x256xf32>, vector<8x256xf32> -> vector<8x256xf32>
    %424 = vector.shape_cast %423 : vector<8x256xf32> to vector<1x8x256xf32>
    %cst_312 = arith.constant dense<0.000000e+00> : vector<1xf32>
    %425 = vector.multi_reduction <add>, %424, %cst_312 [1, 2] : vector<1x8x256xf32> to vector<1xf32>
    %426 = vector.shape_cast %425 : vector<1xf32> to vector<1x1x1xf32>
    %427 = vector.extract %426[0, 0, 0] : f32 from vector<1x1x1xf32>
    %428 = vector.broadcast %427 : f32 to vector<1x1xf32>
    %429 = arith.mulf %423, %423 : vector<8x256xf32>
    %430 = vector.shape_cast %429 : vector<8x256xf32> to vector<1x8x256xf32>
    %cst_313 = arith.constant dense<0.000000e+00> : vector<1xf32>
    %431 = vector.multi_reduction <add>, %430, %cst_313 [1, 2] : vector<1x8x256xf32> to vector<1xf32>
    %432 = vector.shape_cast %431 : vector<1xf32> to vector<1x1x1xf32>
    %433 = vector.extract %432[0, 0, 0] : f32 from vector<1x1x1xf32>
    %434 = vector.broadcast %433 : f32 to vector<1x1xf32>
    %cst_314 = arith.constant 4.8828125E-4 : f32
    %435 = vector.broadcast %cst_314 : f32 to vector<1x1xf32>
    %436 = arith.mulf %428, %435 : vector<1x1xf32>
    %cst_315 = arith.constant 4.8828125E-4 : f32
    %437 = vector.broadcast %cst_315 : f32 to vector<1x1xf32>
    %438 = arith.mulf %434, %437 : vector<1x1xf32>
    %439 = arith.mulf %436, %436 : vector<1x1xf32>
    %440 = arith.subf %438, %439 : vector<1x1xf32>
    %cst_316 = arith.constant 0.000000e+00 : f32
    %441 = vector.broadcast %cst_316 : f32 to vector<1x1xf32>
    %442 = arith.maximumf %440, %441 : vector<1x1xf32>
    %443 = vector.broadcast %436 : vector<1x1xf32> to vector<8x256xf32>
    %444 = arith.subf %423, %443 : vector<8x256xf32>
    %cst_317 = arith.constant 9.99999974E-6 : f32
    %445 = vector.broadcast %cst_317 : f32 to vector<1x1xf32>
    %446 = arith.addf %442, %445 : vector<1x1xf32>
    %447 = math.rsqrt %446 : vector<1x1xf32>
    %448 = vector.broadcast %447 : vector<1x1xf32> to vector<8x256xf32>
    %449 = arith.mulf %444, %448 : vector<8x256xf32>
    %c0_318 = arith.constant 0 : index
    %c0_319 = arith.constant 0 : index
    %450 = vector.load %arg16[%c0_318, %c0_319] : memref<8x1xf32, #tpu.memory_space<vmem>>, vector<8x1xf32>
    %451 = vector.broadcast %450 : vector<8x1xf32> to vector<8x256xf32>
    %452 = arith.mulf %449, %451 : vector<8x256xf32>
    %c0_320 = arith.constant 0 : index
    %c0_321 = arith.constant 0 : index
    %453 = vector.load %arg17[%c0_320, %c0_321] : memref<8x1xf32, #tpu.memory_space<vmem>>, vector<8x1xf32>
    %454 = vector.broadcast %453 : vector<8x1xf32> to vector<8x256xf32>
    %455 = arith.addf %452, %454 : vector<8x256xf32>
    %456 = arith.addf %253, %455 : vector<8x256xf32>
    %cst_322 = arith.constant 0.707106769 : f32
    %457 = vector.broadcast %cst_322 : f32 to vector<8x256xf32>
    %458 = arith.mulf %456, %457 : vector<8x256xf32>
    %cst_323 = arith.constant 0.000000e+00 : f32
    %459 = vector.broadcast %cst_323 : f32 to vector<8x256xf32>
    %460 = arith.cmpf oge, %458, %459 : vector<8x256xf32>
    %cst_324 = arith.constant 1.000000e+00 : f32
    %cst_325 = arith.constant -1.000000e+00 : f32
    %461 = vector.broadcast %cst_324 : f32 to vector<8x256xf32>
    %462 = vector.broadcast %cst_325 : f32 to vector<8x256xf32>
    %463 = arith.select %460, %461, %462 : vector<8x256xi1>, vector<8x256xf32>
    %464 = math.absf %458 : vector<8x256xf32>
    %cst_326 = arith.constant 0.327591091 : f32
    %465 = vector.broadcast %cst_326 : f32 to vector<8x256xf32>
    %466 = arith.mulf %465, %464 : vector<8x256xf32>
    %cst_327 = arith.constant 1.000000e+00 : f32
    %467 = vector.broadcast %cst_327 : f32 to vector<8x256xf32>
    %468 = arith.addf %467, %466 : vector<8x256xf32>
    %469 = tpu.reciprocal %468 {approx = true} : vector<8x256xf32> -> vector<8x256xf32>
    %cst_328 = arith.constant 1.06140542 : f32
    %470 = vector.broadcast %cst_328 : f32 to vector<8x256xf32>
    %471 = arith.mulf %470, %469 : vector<8x256xf32>
    %cst_329 = arith.constant -1.45315206 : f32
    %472 = vector.broadcast %cst_329 : f32 to vector<8x256xf32>
    %473 = arith.addf %471, %472 : vector<8x256xf32>
    %474 = arith.mulf %473, %469 : vector<8x256xf32>
    %cst_330 = arith.constant 1.42141378 : f32
    %475 = vector.broadcast %cst_330 : f32 to vector<8x256xf32>
    %476 = arith.addf %474, %475 : vector<8x256xf32>
    %477 = arith.mulf %476, %469 : vector<8x256xf32>
    %cst_331 = arith.constant -0.284496725 : f32
    %478 = vector.broadcast %cst_331 : f32 to vector<8x256xf32>
    %479 = arith.addf %477, %478 : vector<8x256xf32>
    %480 = arith.mulf %479, %469 : vector<8x256xf32>
    %cst_332 = arith.constant 0.254829586 : f32
    %481 = vector.broadcast %cst_332 : f32 to vector<8x256xf32>
    %482 = arith.addf %480, %481 : vector<8x256xf32>
    %483 = arith.mulf %482, %469 : vector<8x256xf32>
    %484 = arith.mulf %464, %464 : vector<8x256xf32>
    %cst_333 = arith.constant 0.000000e+00 : f32
    %485 = vector.broadcast %cst_333 : f32 to vector<8x256xf32>
    %486 = arith.subf %485, %484 : vector<8x256xf32>
    %487 = math.exp %486 : vector<8x256xf32>
    %488 = arith.mulf %483, %487 : vector<8x256xf32>
    %cst_334 = arith.constant 1.000000e+00 : f32
    %489 = vector.broadcast %cst_334 : f32 to vector<8x256xf32>
    %490 = arith.subf %489, %488 : vector<8x256xf32>
    %491 = arith.mulf %463, %490 : vector<8x256xf32>
    %cst_335 = arith.constant 5.000000e-01 : f32
    %492 = vector.broadcast %cst_335 : f32 to vector<8x256xf32>
    %493 = arith.mulf %492, %456 : vector<8x256xf32>
    %cst_336 = arith.constant 1.000000e+00 : f32
    %494 = vector.broadcast %cst_336 : f32 to vector<8x256xf32>
    %495 = arith.addf %494, %491 : vector<8x256xf32>
    %496 = arith.mulf %493, %495 : vector<8x256xf32>
    %c0_337 = arith.constant 0 : index
    %c0_338 = arith.constant 0 : index
    %497 = vector.load %arg5[%c0_337, %c0_338] : memref<1x16xf32, #tpu.memory_space<vmem>>, vector<1x16xf32>
    %498 = arith.negf %497 : vector<1x16xf32>
    %499 = math.exp %498 : vector<1x16xf32>
    %cst_339 = arith.constant 1.000000e+00 : f32
    %500 = vector.broadcast %cst_339 : f32 to vector<1x16xf32>
    %501 = arith.addf %500, %499 : vector<1x16xf32>
    %502 = arith.divf %500, %501 : vector<1x16xf32>
    %503 = arith.mulf %497, %502 : vector<1x16xf32>
    %c0_340 = arith.constant 0 : index
    %c0_341 = arith.constant 0 : index
    %504 = vector.load %arg18[%c0_340, %c0_341] : memref<16x256xf32, #tpu.memory_space<vmem>>, vector<16x256xf32>
    %cst_342 = arith.constant dense<0.000000e+00> : vector<1x256xf32>
    %505 = tpu.matmul %503, %504, %cst_342 {dimension_numbers = #tpu.dot_dimension_numbers<[1], [0], [0], [1], [0, 0, 1, 1], [], []>} : vector<1x16xf32>, vector<16x256xf32>, vector<1x256xf32> -> vector<1x256xf32>
    %c0_343 = arith.constant 0 : index
    %c0_344 = arith.constant 0 : index
    %506 = vector.load %arg19[%c0_343, %c0_344] : memref<1x256xf32, #tpu.memory_space<vmem>>, vector<1x256xf32>
    %507 = arith.addf %505, %506 : vector<1x256xf32>
    %508 = vector.broadcast %507 : vector<1x256xf32> to vector<8x256xf32>
    %509 = arith.addf %496, %508 : vector<8x256xf32>
    %c0_345 = arith.constant 0 : index
    %c0_346 = arith.constant 0 : index
    %c0_347 = arith.constant 0 : index
    %510 = vector.load %arg20[%c0_345, %c0_346, %c0_347] : memref<1x8x256xf32, #tpu.memory_space<vmem>>, vector<1x8x256xf32>
    %511 = vector.shape_cast %510 : vector<1x8x256xf32> to vector<8x256xf32>
    %512 = vector.shape_cast %509 : vector<8x256xf32> to vector<1x8x256xf32>
    tpu.vector_store %arg20[%c0_345, %c0_346, %c0_347], %512 {strides = array<i32>} : memref<1x8x256xf32, #tpu.memory_space<vmem>>, vector<1x8x256xf32>,
    return
  }
  func.func @transform_0(%arg0: i32) -> (i32, i32, i32) {
    %c0_i32 = arith.constant 0 : i32
    %c0_i32_0 = arith.constant 0 : i32
    %c0_i32_1 = arith.constant 0 : i32
    return %arg0, %c0_i32, %c0_i32_0 : i32, i32, i32
  }
  func.func @transform_1(%arg0: i32) -> (i32, i32, i32) {
    %c0_i32 = arith.constant 0 : i32
    %c0_i32_0 = arith.constant 0 : i32
    %c0_i32_1 = arith.constant 0 : i32
    return %arg0, %c0_i32, %c0_i32_0 : i32, i32, i32
  }
  func.func @transform_2(%arg0: i32) -> (i32, i32) {
    %c0_i32 = arith.constant 0 : i32
    %c0_i32_0 = arith.constant 0 : i32
    %c0_i32_1 = arith.constant 0 : i32
    return %c0_i32, %c0_i32_0 : i32, i32
  }
  func.func @transform_3(%arg0: i32) -> (i32, i32) {
    %c0_i32 = arith.constant 0 : i32
    %c0_i32_0 = arith.constant 0 : i32
    %c0_i32_1 = arith.constant 0 : i32
    return %c0_i32, %c0_i32_0 : i32, i32
  }
  func.func @transform_4(%arg0: i32) -> (i32, i32) {
    %c0_i32 = arith.constant 0 : i32
    %c0_i32_0 = arith.constant 0 : i32
    %c0_i32_1 = arith.constant 0 : i32
    return %c0_i32, %c0_i32_0 : i32, i32
  }
  func.func @transform_5(%arg0: i32) -> (i32, i32) {
    %c0_i32 = arith.constant 0 : i32
    %c0_i32_0 = arith.constant 0 : i32
    %c0_i32_1 = arith.constant 0 : i32
    return %c0_i32, %c0_i32_0 : i32, i32
  }
  func.func @transform_6(%arg0: i32) -> (i32, i32) {
    %c0_i32 = arith.constant 0 : i32
    %c0_i32_0 = arith.constant 0 : i32
    %c0_i32_1 = arith.constant 0 : i32
    return %c0_i32, %c0_i32_0 : i32, i32
  }
  func.func @transform_7(%arg0: i32) -> (i32, i32) {
    %c0_i32 = arith.constant 0 : i32
    %c0_i32_0 = arith.constant 0 : i32
    %c0_i32_1 = arith.constant 0 : i32
    return %c0_i32, %c0_i32_0 : i32, i32
  }
  func.func @transform_8(%arg0: i32) -> (i32, i32) {
    %c0_i32 = arith.constant 0 : i32
    %c0_i32_0 = arith.constant 0 : i32
    %c0_i32_1 = arith.constant 0 : i32
    return %c0_i32, %c0_i32_0 : i32, i32
  }
  func.func @transform_9(%arg0: i32) -> (i32, i32) {
    %c0_i32 = arith.constant 0 : i32
    %c0_i32_0 = arith.constant 0 : i32
    %c0_i32_1 = arith.constant 0 : i32
    return %c0_i32, %c0_i32_0 : i32, i32
  }
  func.func @transform_10(%arg0: i32) -> (i32, i32) {
    %c0_i32 = arith.constant 0 : i32
    %c0_i32_0 = arith.constant 0 : i32
    %c0_i32_1 = arith.constant 0 : i32
    return %c0_i32, %c0_i32_0 : i32, i32
  }
  func.func @transform_11(%arg0: i32) -> (i32, i32) {
    %c0_i32 = arith.constant 0 : i32
    %c0_i32_0 = arith.constant 0 : i32
    %c0_i32_1 = arith.constant 0 : i32
    return %c0_i32, %c0_i32_0 : i32, i32
  }
  func.func @transform_12(%arg0: i32) -> (i32, i32) {
    %c0_i32 = arith.constant 0 : i32
    %c0_i32_0 = arith.constant 0 : i32
    %c0_i32_1 = arith.constant 0 : i32
    return %c0_i32, %c0_i32_0 : i32, i32
  }
  func.func @transform_13(%arg0: i32) -> (i32, i32) {
    %c0_i32 = arith.constant 0 : i32
    %c0_i32_0 = arith.constant 0 : i32
    %c0_i32_1 = arith.constant 0 : i32
    return %c0_i32, %c0_i32_0 : i32, i32
  }
  func.func @transform_14(%arg0: i32) -> (i32, i32) {
    %c0_i32 = arith.constant 0 : i32
    %c0_i32_0 = arith.constant 0 : i32
    %c0_i32_1 = arith.constant 0 : i32
    return %c0_i32, %c0_i32_0 : i32, i32
  }
  func.func @transform_15(%arg0: i32) -> (i32, i32) {
    %c0_i32 = arith.constant 0 : i32
    %c0_i32_0 = arith.constant 0 : i32
    %c0_i32_1 = arith.constant 0 : i32
    return %c0_i32, %c0_i32_0 : i32, i32
  }
  func.func @transform_16(%arg0: i32) -> (i32, i32) {
    %c0_i32 = arith.constant 0 : i32
    %c0_i32_0 = arith.constant 0 : i32
    %c0_i32_1 = arith.constant 0 : i32
    return %c0_i32, %c0_i32_0 : i32, i32
  }
  func.func @transform_17(%arg0: i32) -> (i32, i32) {
    %c0_i32 = arith.constant 0 : i32
    %c0_i32_0 = arith.constant 0 : i32
    %c0_i32_1 = arith.constant 0 : i32
    return %c0_i32, %c0_i32_0 : i32, i32
  }
  func.func @transform_18(%arg0: i32) -> (i32, i32) {
    %c0_i32 = arith.constant 0 : i32
    %c0_i32_0 = arith.constant 0 : i32
    %c0_i32_1 = arith.constant 0 : i32
    return %c0_i32, %c0_i32_0 : i32, i32
  }
  func.func @transform_19(%arg0: i32) -> (i32, i32, i32) {
    %c0_i32 = arith.constant 0 : i32
    %c0_i32_0 = arith.constant 0 : i32
    %c0_i32_1 = arith.constant 0 : i32
    return %arg0, %c0_i32, %c0_i32_0 : i32, i32, i32
  }
}

</mosaic_0001>

<bundles_post_ra>
// kernel: tpu_custom_call.1
= control target key start
LH: loop header
LB: loop body
LE: loop exit
PB: predicated region body
PF: predicated region fallthrough
CT: control target
= control target key end

     0   :  { %s5590_s0 = inlined_call_operand.hbm [shape: f32[2,4,64], index: 0, kind: input, shape index: {}]   ;;  %s5591_s1 = inlined_call_operand.vmem [shape: f32[2,4,256], index: 1, kind: input, shape index: {}]   ;;  %s5592_s2 = inlined_call_operand.hbm [shape: f32[64,256], index: 2, kind: input, shape index: {}]   ;;  %s5593_s3 = inlined_call_operand.vmem [shape: f32[9,256], index: 3, kind: input, shape index: {}]   ;;  %s5594_s4 = inlined_call_operand.vmem [shape: f32[1,16], index: 4, kind: input, shape index: {}]   ;;  %s5595_s5 = inlined_call_operand.vmem [shape: f32[16,72], index: 5, kind: input, shape index: {}]   ;;  %s5596_s6 = inlined_call_operand.vmem [shape: f32[16,1], index: 6, kind: input, shape index: {}]   ;;  %s5597_s7 = inlined_call_operand.vmem [shape: f32[16,1], index: 7, kind: input, shape index: {}]   ;;  %s5598_s8 = inlined_call_operand.hbm [shape: f32[8,144], index: 8, kind: input, shape index: {}]   ;;  %s5599_s9 = inlined_call_operand.vmem [shape: f32[8,1], index: 9, kind: input, shape index: {}]   ;;  %s5600_s10 = inlined_call_operand.vmem [shape: f32[8,1], index: 10, kind: input, shape index: {}]   ;;  %s5601_s11 = inlined_call_operand.hbm [shape: f32[16,72], index: 11, kind: input, shape index: {}]   ;;  %s5602_s12 = inlined_call_operand.vmem [shape: f32[16,1], index: 12, kind: input, shape index: {}]   ;;  %s5603_s13 = inlined_call_operand.vmem [shape: f32[16,1], index: 13, kind: input, shape index: {}]   ;;  %s5604_s14 = inlined_call_operand.hbm [shape: f32[8,144], index: 14, kind: input, shape index: {}]   ;;  %s5605_s15 = inlined_call_operand.vmem [shape: f32[8,1], index: 15, kind: input, shape index: {}]   ;;  %s5606_s16 = inlined_call_operand.vmem [shape: f32[8,1], index: 16, kind: input, shape index: {}]   ;;  %s5607_s17 = inlined_call_operand.vmem [shape: f32[16,256], index: 17, kind: input, shape index: {}]   ;;  %s5608_s18 = inlined_call_operand.vmem [shape: f32[1,256], index: 18, kind: input, shape index: {}]   ;;  %s5609_s19 = inlined_call_operand.hbm [shape: f32[2,8,256], index: 19, kind: output, shape index: {}]  }
   0x1   :  { %5661 = sst [smem:[#allocation25_spill]] %s5590_s0 }
   0x2   :  { %5662 = sst [smem:[#allocation26_spill]] %s5591_s1 }
   0x3   :  { %5663 = sst [smem:[#allocation27_spill]] %s5592_s2 }
   0x4   :  { %5664 = sst [smem:[#allocation28_spill]] %s5593_s3 }
   0x5   :  { %5665 = sst [smem:[#allocation29_spill]] %s5595_s5 }
   0x6   :  { %5666 = sst [smem:[#allocation30_spill]] %s5596_s6 }
   0x7   :  { %5667 = sst [smem:[#allocation31_spill]] %s5597_s7 }
   0x8   :  { %5668 = sst [smem:[#allocation32_spill]] %s5598_s8 }
   0x9   :  { %5669 = sst [smem:[#allocation33_spill]] %s5599_s9 }
   0xa   :  { %5670 = sst [smem:[#allocation34_spill]] %s5600_s10 }
   0xb   :  { %5671 = sst [smem:[#allocation35_spill]] %s5601_s11 }
   0xc   :  { %5672 = sst [smem:[#allocation36_spill]] %s5604_s14 }
   0xd   :  { %5673 = sst [smem:[#allocation37_spill]] %s5607_s17 }
   0xe   :  { %5674 = sst [smem:[#allocation38_spill]] %s5608_s18 }
   0xf   :  { %5675 = sst [smem:[#allocation39_spill]] %s5609_s19 }
  0x10   :  { %24 = vsyncpa [#allocation6], 0 }
  0x11   :  { %26 = vsyncpa [#allocation6 + $0x1], 0 }
  0x12   :  { %27 = vsyncpa [#allocation9], 0 }
  0x13   :  { %28 = vsyncpa [#allocation12], 0 }
  0x14   :  { %29 = vsyncpa [#allocation7], 0 }
  0x15   :  { %31 = vsyncpa [#allocation7 + $0x1], 0  ;;  %s4488_s0 = smov 0   ;;  %s4490_s30 = smov 0  }
  0x16   :  { %s4492_s20 = smov 0   ;;  %s4494_s21 = smov 0  }
  0x17 LB: > { %5676 = sst [smem:[#allocation19_spill]] %s4347_s0  ;;  %s4512_s24 = sadd.s32 4294967295, %s4359_s21   ;;  %s4359_s21 = sphi %s4494_s21, %s5782_s21   ;;  %s4355_s20 = sphi %s4492_s20, %s5785_s20   ;;  %s4351_s30 = sphi %s4490_s30, %s5784_s30   ;;  %s4347_s0 = sphi %s4488_s0, %s5783_s0  }
  0x18   : > { %5677 = sst [smem:[#allocation20_spill]] %s4351_s30  ;;  %p3551_p0 = scmp.ge.s32.totalorder %s4359_s21, 1 }
  0x19   : > { %5678 = sst [smem:[#allocation21_spill]] %s4355_s20  ;;  %p58_p1 = scmp.eq.s32.totalorder %s4512_s24, 0 }
  0x1a   : > { %s5679_s2 = sld [smem:[#allocation27_spill]]  ;;  %p477_p2 = scmp.lt.s32.totalorder %s4359_s21, 3 }
  0x1b   : > { %s4361_s3 = smov [#allocation8]   ;;  %s5681_s11 = sld [smem:[#allocation35_spill]] }
  0x1c   : > { %p4517_p3 = pnand %p3551_p0, %p477_p2  ;;  %s490_s26 = sshll.u32 %s4361_s3, 4  ;;  %s491_s26 = int_to_ptr.vmem [resolvable:$true] %s490_s26 }
  0x1d   : > { %s4362_s22 = smov [#allocation11]   ;;  %s4363_s3 = smov 256  }
  0x1e   : > { %p3660_p4 = pneg %p4517_p3  ;;  %s4364_s19 = smov 16  }
  0x1f   : > { %s4365_s27 = smov 128   ;;  %s4366_s28 = smov 8  }
  0x20   : > { %s488_s23 = sshll.u32 %s5679_s2, 4  ;;  %p4529_p6 = pnand %p3660_p4, %p58_p1  ;;  %s489_s23 = int_to_ptr.hbm [resolvable:$true] %s488_s23 }
  0x21   : > { %s535_s29 = sshll.u32 %s5681_s11, 4  ;;  %s537_s2 = sshll.u32 %s4362_s22, 4  ;;  %s536_s29 = int_to_ptr.hbm [resolvable:$true] %s535_s29  ;;  %s538_s2 = int_to_ptr.vmem [resolvable:$true] %s537_s2 }
  0x22   : > { %3663 = dma.hbm_to_vmem [thread:$0]  (!%p4529_p6), %s489_s23, 2048, %s491_s26, [#allocation9], %s4363_s3, %s4363_s3, %s4364_s19  }
  0x23   : > { %3669 = dma.hbm_to_vmem [thread:$0]  (!%p4529_p6), %s536_s29, 256, %s538_s2, [#allocation12], %s4365_s27, %s4365_s27, %s4366_s28  }
  0x24   : > { %s5683_s8 = sld [smem:[#allocation32_spill]]  ;;  %s4367_s22 = smov [#allocation10]  }
  0x25   : > { %s520_s19 = sshll.u32 %s4367_s22, 4  ;;  %s5684_s14 = sld [smem:[#allocation36_spill]]  ;;  %s521_s19 = int_to_ptr.vmem [resolvable:$true] %s520_s19 }
  0x26   : > { %s4368_s11 = smov [#allocation13]   ;;  %s3550_s29 = sadd.s32 4294967294, %s4359_s21  }
  0x27   : > { %s558_s18 = sshll.u32 %s4368_s11, 4  ;;  %s4549_s2 = sadd.s32 1, %s4359_s21   ;;  %s559_s18 = int_to_ptr.vmem [resolvable:$true] %s558_s18 }
  0x28   : > { %5685 = sst [smem:[#allocation22_spill]] %s4549_s2  ;;  %s41_s27 = ssub.s32 %s4359_s21, %s4549_s2 }
  0x29   : > { %s44_s28 = sadd.s32 1, %s4355_s20  ;;  %p42_p7 = scmp.eq.s32.totalorder %s41_s27, 0 }
  0x2a   : > { %s518_s17 = sshll.u32 %s5683_s8, 4  ;;  %p51_p8 = scmp.ne.s32.totalorder %s4355_s20, %s4351_s30  ;;  %s519_s17 = int_to_ptr.hbm [resolvable:$true] %s518_s17 }
  0x2b   : > { %s556_s3 = sshll.u32 %s5684_s14, 4  ;;  %p52_p9 = scmp.eq.s32.totalorder %s4359_s21, 0  ;;  %s557_s3 = int_to_ptr.hbm [resolvable:$true] %s556_s3 }
  0x2c   : > { %3666 = dma.hbm_to_vmem [thread:$0]  (!%p4529_p6), %s519_s17, 256, %s521_s19, [#allocation9]  }
  0x2d   : > { %3672 = dma.hbm_to_vmem [thread:$0]  (!%p4529_p6), %s557_s3, 256, %s559_s18, [#allocation12]  }
  0x2e   : > { %p57_p10 = scmp.ne.s32.totalorder %s4351_s30, %s4347_s0  ;;  %p4562_p11 = por %p52_p9, %p51_p8 }
  0x2f   : > { %s4560_s17 = scalar_select %p42_p7, %s4355_s20, %s44_s28  }
  0x30   : > { %p4568_p12 = por %p58_p1, %p57_p10  ;;  %p464_p13 = scmp.eq.s32.totalorder %s4512_s24, 1 }
  0x31   : > { %5686 = sst [smem:[#allocation23_spill]] %s4560_s17  ;;  %p470_p0 = scmp.eq.s32.totalorder %s3550_s29, 1 }
  0x32   : > { %p3685_p2 = scmp.lt.s32.totalorder %s4359_s21, 2  ;;  %s581_s19 = sand.u32 1, %s4355_s20  }
  0x33   : > { %p4575_p4 = por %p464_p13, %p51_p8  ;;  %p4579_p6 = por %p470_p0, %p57_p10 }
  0x34   : > { %s3557_s3 = sshll.u32 %s581_s19, 2  ;;  %s3558_s11 = sshll.u32 %s4359_s21, 2 }
  0x35   : > { %s5690_s26 = scalar_select %p4579_p6, 1, 0 }
  0x36   : > { %s5692_s28 = sld [smem:[#allocation25_spill]]  ;;  %s585_s14 = scalar_lea.vmem [#allocation5], %s3557_s3 }
  0x37   : > { %5691 = sst [smem:[#allocation24_spill]] %s5690_s26  ;;  %s593_s17 = sshll.u32 %s585_s14, 4  ;;  %s594_s17 = int_to_ptr.vmem [resolvable:$true] %s593_s17 }
  0x38   : > { %p4589_p7 = pnand %p3685_p2, %p4562_p11  ;;  %s582_s20 = scalar_lea.sflag [#allocation6], %s581_s19 }
  0x3a   : > { %p4259_p9 = pneg %p4589_p7 }
  0x3c   : > { %s589_s8 = scalar_lea.hbm %s5692_s28, %s3558_s11 }
  0x3d   : > { %s591_s2 = sshll.u32 %s589_s8, 4  ;;  %s4262_s8 = scalar_lea.hbm %s5692_s28, 8  ;;  %s592_s2 = int_to_ptr.hbm [resolvable:$true] %s591_s2 }
  0x3e   : > { %s4255_s0 = sshra.s32 %s592_s2, 4  ;;  %s4256_s0 = int_to_ptr.hbm [resolvable:$true] %s4255_s0 }
  0x3f   : > { %s4257_s26 = scalar_lea.hbm %s4256_s0, 4  ;;  %p4263_p11 = scmp.lt.s32.totalorder %s4256_s0, %s5692_s28 }
  0x40   : > { %p4258_p8 = scmp.ne.s32.totalorder %s4256_s0, %s4257_s26  ;;  %p4264_p0 = scmp.lt.s32.totalorder %s4262_s8, %s4257_s26 }
  0x42   : > { %p4260_p10 = pnand %p4259_p9, %p4258_p8  ;;  %p4265_p2 = por %p4264_p0, %p4263_p11 }
  0x44   : > { %p4261_p13 = pneg %p4260_p10 }
  0x46   : > { %p4266_p5 = pnand %p4265_p2, %p4261_p13 }
  0x48   : > { %4269 = shalt.err (!%p4266_p5)
}
  0x49   : > { %3676 = dma.hbm_to_vmem [thread:$0]  (!%p4589_p7), %s592_s2, 64, %s594_s17, %s582_s20  }
  0x4a   : > { %610 = sbr.rel (%p4517_p3) target bundleno = 3023 (0xbcf), region = 96  ;;  %s4606_s19 = sand.u32 (!%p4517_p3), 1, %s4351_s30  }
  0x4b   : > { %s3560_s18 = sshll.u32 (!%p4517_p3), %s4606_s19, 2  ;;  %s613_s27 = scalar_lea.sflag (!%p4517_p3), [#allocation6], %s4606_s19 }
  0x4c   : > { %s4610_s3 = scalar_lea.vmem (!%p4517_p3), [#allocation5], %s3560_s18 }
  0x4f   : > { %4330 = dma.done.wait (%p4568_p12), %s613_s27, 64  }
  0x50   : > { %4332 = vsyncadd (%p4568_p12), %s613_s27, 4294967232 }
  0x51   : > { %4334 = dma.done.wait (%p58_p1), [#allocation9], 2304  }
  0x52   : > { %4336 = vsyncadd (%p58_p1), [#allocation9], 4294964992 }
  0x53   : > { %4338 = dma.done.wait (%p58_p1), [#allocation12], 512  }
  0x54   : > { %4340 = vsyncadd (%p58_p1), [#allocation12], 4294966784  ;;  %v724_v0 = vld [vmem:[#allocation8 + $0x70] sm:$0xff]  ;;  %v722_v1 = vld [vmem:[#allocation8 + $0x60] sm:$0xff]  ;;  %s5694_s25 = sld [smem:[#allocation28_spill]]  ;;  %s5656_s2 = smov 34  }
  0x55   : > { %738 = vmatpush.msra.mxu0 %v724_v0  ;;  %v725_v2 = vld [vmem:[#allocation8 + $0x78] sm:$0xff]  ;;  %v720_v3 = vld [vmem:[#allocation8 + $0x50] sm:$0xff]  ;;  %v723_v4 = vld [vmem:[#allocation8 + $0x68] sm:$0xff]  ;;  %vm726_vm0 = vcmask 523264   ;;  %s5649_s26 = smov 32   ;;  %p697_p1 = scmp.lt.s32.totalorder %s4512_s24, 1 }
  0x56   : > { %758 = vmatpush.msra.mxu1 %v725_v2  ;;  %v721_v5 = vld [vmem:[#allocation8 + $0x58] sm:$0xff]  ;;  %v718_v6 = vld [vmem:[#allocation8 + $0x40] sm:$0xff]  ;;  %v719_v7 = vld [vmem:[#allocation8 + $0x48] sm:$0xff]  ;;  %s5695_s22 = sld [smem:[#allocation26_spill]]  ;;  %s5643_s17 = smov 17   ;;  %vm704_vm1 = vcmask 277504  }
  0x57   : > { %739 = vmatpush.msra.mxu0 %v722_v1  ;;  %v716_v9 = vld [vmem:[#allocation8 + $0x30] sm:$0xff]  ;;  %v717_v11 = vld [vmem:[#allocation8 + $0x38] sm:$0xff]  ;;  %v714_v12 = vld [vmem:[#allocation8 + $0x20] sm:$0xff]  ;;  %s698_s29 = scalar_select %p697_p1, %s4512_s24, 1  ;;  %v4377_v48 = vmov 0.0   ;;  %vm795_vm2 = vcmask 1047688  }
  0x58   : > { %759 = vmatpush.msra.mxu1 %v723_v4  ;;  %v715_v13 = vld [vmem:[#allocation8 + $0x28] sm:$0xff]  ;;  %v712_v14 = vld [vmem:[#allocation8 + $0x10] sm:$0xff]  ;;  %v713_v15 = vld [vmem:[#allocation8 + $0x18] sm:$0xff]  ;;  %s5654_s1 = smov 33   ;;  %s5647_s8 = smov 16   ;;  %702 = vst [vmem:[#allocation3] sm:$0xff] %v4377_v48 }
  0x59   : > { %740 = vmatpush.msra.mxu0 %v720_v3  ;;  %v710_v16 = vld [vmem:[#allocation8] sm:$0xff]  ;;  %v709_v17 = vld [vmem:[%s4610_s3] sm:$0xf]  ;;  %v711_v18 = vld [vmem:[#allocation8 + $0x8] sm:$0xff]  ;;  %s3622_s14 = sshll.u32 %s698_s29, 3  ;;  %s5641_s3 = smov 1  }
  0x5a   : > { %v3577_v8 = vld [vmem:[%s5694_s25 + $0x10] ss:$8 sm:$0x3]  ;;  %760 = vmatpush.msra.mxu1 %v721_v5  ;;  %v3575_v20 = vld [vmem:[%s5694_s25 + $0x6] ss:$8 sm:$0x3] }
  0x5b   : > { %v1068_v10 = vperm.slane %v3577_v8, 0  ;;  %741 = vmatpush.msra.mxu0 %v718_v6  ;;  %v1069_v19 = vperm.slane %v3577_v8, 1  ;;  %v997_v21 = vperm.slane %v3575_v20, 1  ;;  %v3573_v23 = vld [vmem:[%s5694_s25 + $0x4] ss:$8 sm:$0x3] }
  0x5c   : > { %761 = vmatpush.msra.mxu1 %v719_v7  ;;  %s701_s18 = scalar_lea.vmem %s5695_s22, %s3622_s14  ;;  %v3576_v24 = vld [vmem:[%s5694_s25 + $0x7] ss:$8 sm:$0x3]  ;;  %v996_v25 = vperm.slane %v3575_v20, 0  ;;  %v925_v26 = vperm.slane %v3573_v23, 0  ;;  %s5651_s0 = smov 18  }
  0x5d   : > { %1070 = vrot.lane.b32.xlu1 %v1068_v10, %s5656_s2  ;;  %742 = vmatpush.msra.mxu0 %v716_v9  ;;  %v772_v22 = vld [vmem:[%s701_s18] sm:$0xff]  ;;  %v1032_v27 = vperm.slane %v3576_v24, 0  ;;  %v1033_v31 = vperm.slane %v3576_v24, 1  ;;  %v926_v37 = vperm.slane %v3573_v23, 1  ;;  %s5645_s14 = smov 2   ;;  %705 = vst.msk [vmem:[#allocation3 + $0x10] sm:$0xff] %vm704_vm1, %v4377_v48 }
  0x5e   : > { %762 = vmatpush.msra.mxu1 %v717_v11  ;;  %775 = vst [vmem:[#allocation1 + $0x1] ss:$2 sm:$0xff] %v772_v22  ;;  %998 = vrot.lane.b32.xlu0 %v996_v25, %s5649_s26  ;;  %v3572_v29 = vld [vmem:[%s5694_s25 + $0x3] ss:$8 sm:$0x3]  ;;  %vm790_vm3 = vcmask 138240  }
  0x5f   : > { %743 = vmatpush.msra.mxu0 %v714_v12  ;;  %1034 = vrot.lane.b32.xlu2 %v1032_v27, %s5654_s1  ;;  %v890_v30 = vperm.slane %v3572_v29, 1  ;;  %v3570_v33 = vld [vmem:[%s5694_s25 + $0x1] ss:$8 sm:$0x3]  ;;  %v889_v46 = vperm.slane %v3572_v29, 0  ;;  %706 = vst [vmem:[#allocation3 + $0x18] sm:$0xff] %v4377_v48 }
  0x60   : > { %763 = vmatpush.msra.mxu1 %v715_v13  ;;  %v817_v34 = vperm.slane %v3570_v33, 0  ;;  %v3574_v35 = vld [vmem:[%s5694_s25 + $0x5] ss:$8 sm:$0x3]  ;;  %v818_v42 = vperm.slane %v3570_v33, 1  ;;  %708 = vst.msk [vmem:[#allocation3 + $0x28] sm:$0xff] %vm704_vm1, %v4377_v48 }
  0x61   : > { %744 = vmatpush.msra.mxu0 %v712_v14  ;;  %v960_v36 = vperm.slane %v3574_v35, 0  ;;  %v3571_v38 = vld [vmem:[%s5694_s25 + $0x2] ss:$8 sm:$0x3]  ;;  %v961_v45 = vperm.slane %v3574_v35, 1  ;;  %s5619_s11 = smov 94  }
  0x62   : > { %764 = vmatpush.msra.mxu1 %v713_v15  ;;  %v853_v39 = vperm.slane %v3571_v38, 0  ;;  %v854_v47 = vperm.slane %v3571_v38, 1  ;;  %s5635_s22 = smov 95   ;;  %s5633_s18 = smov 96   ;;  %vm966_vm4 = vcmask 146432   ;;  %vm1038_vm5 = vcmask 269312  }
  0x63   : > { %745 = vmatpush.msra.mxu0 %v710_v16  ;;  %s5621_s27 = smov 110   ;;  %s5631_s20 = smov 111   ;;  %vm859_vm6 = vcmask 15360   ;;  %vm1002_vm7 = vcmask 261120   ;;  %vm823_vm8 = vcmask 7168   ;;  %vm895_vm9 = vcmask 130048  }
  0x64   : > { %3568 = vmatmul.msk.f32.vlgmr.msra.gmra.mxu0 %vm726_vm0, %v709_v17  ;;  %765 = vmatpush.msra.mxu1 %v711_v18  ;;  %s5629_s29 = smov 112   ;;  %vm5627_vm10 = vcmask 769024   ;;  %vm1055_vm11 = vcmask 777216   ;;  %vm5658_vm12 = vcmask 785408   ;;  %vm5653_vm13 = vcmask 900096   ;;  %s5696_s5 = sld [smem:[#allocation29_spill]] }
  0x65   : > { %3569 = vmatmul.msk.f32.vlgmr.msra.gmra.mxu1 %vm726_vm0, %v709_v17  ;;  %1072 = vrot.lane.b32.xlu1 %v1069_v19, %s5656_s2  ;;  %v776_v28 = vld.sshfl [vmem:[#allocation1] sm:$0xff pattern:$0x75316420]  ;;  %v777_v32 = vld.sshfl [vmem:[#allocation1 + $0x8] sm:$0xff pattern:$0x75316420] }
  0x66   : > { %780 = vst [vmem:[#allocation2] sm:$0xf0] %v776_v28  ;;  %vm5640_vm14 = vcmask 908288   ;;  %vm5628_vm15 = vcmask 916480   ;;  %vm5639_vm0 = vcmask 1031168   ;;  %s5697_s6 = sld [smem:[#allocation30_spill]] }
  0x67   : > { %781 = vst [vmem:[#allocation2 + $0x8] sm:$0xf0] %v777_v32  ;;  %1036 = vrot.lane.b32.xlu2 %v1033_v31, %s5654_s1  ;;  %s5698_s7 = sld [smem:[#allocation31_spill]]  ;;  %s3414_s30 = scalar_lea.sflag [#allocation7], %s4606_s19 }
  0x68   : > { %s5707_s9 = sld [smem:[#allocation33_spill]] }
  0x69   : > { %s5708_s10 = sld [smem:[#allocation34_spill]] }
  0x6d   : > { %1000 = vrot.lane.b32.xlu1 %v997_v21, %s5649_s26 }
  0x6f   : > { %962 = vrot.lane.b32.xlu2 %v960_v36, %s5651_s0 }
  0x75   : > { %927 = vrot.lane.b32.xlu1 %v925_v26, %s5643_s17 }
  0x77   : > { %929 = vrot.lane.b32.xlu2 %v926_v37, %s5643_s17 }
  0x7d   : > { %893 = vrot.lane.b32.xlu1 %v890_v30, %s5647_s8 }
  0x7f   : > { %855 = vrot.lane.b32.xlu2 %v853_v39, %s5645_s14 }
  0x85   : > { %819 = vrot.lane.b32.xlu1 %v817_v34, %s5641_s3 }
  0x87   : > { %821 = vrot.lane.b32.xlu2 %v818_v42, %s5641_s3 }
  0xb9   : > { %v1035_v50 = vpop.permute.xlu2 %1034 }
  0xc1   : > { %v1037_v53 = vpop.permute.xlu2 %1036 }
  0xc2   : > { %v1039_v10 = vsel %vm1038_vm5, %v1035_v50, %v1037_v53 }
  0xc9   : > { %v963_v57 = vpop.permute.xlu2 %962 }
  0xcf   : > { %v1071_v49 = vpop.permute.xlu1 %1070 }
  0xd0   : > { %v999_v51 = vpop.permute.xlu0 %998 }
  0xd1   : > { %v930_v0 = vpop.permute.xlu2 %929 }
  0xd7   : > { %v1073_v52 = vpop.permute.xlu1 %1072 }
  0xd8   : > { %v1074_v9 = vsel %vm704_vm1, %v1071_v49, %v1073_v52 }
  0xd9   : > { %v856_v12 = vpop.permute.xlu2 %855 }
  0xdf   : > { %v1001_v55 = vpop.permute.xlu1 %1000 }
  0xe0   : > { %v1003_v24 = vsel %vm1002_vm7, %v999_v51, %v1001_v55 }
  0xe1   : > { %v747_v40 = vpop.f32.mrf.mxu0  ;;  %v822_v32 = vpop.permute.xlu2 %821 }
  0xe2   : > { %770 = vst [vmem:[#allocation2] sm:$0xf] %v747_v40  ;;  %v767_v41 = vpop.f32.mrf.mxu1 }
  0xe3   : > { %771 = vst [vmem:[#allocation2 + $0x8] sm:$0xf] %v767_v41 }
  0xe7   : > { %v928_v58 = vpop.permute.xlu1 %927 }
  0xe8   : > { %v931_v23 = vsel %vm790_vm3, %v928_v58, %v930_v0 }
  0xe9   : > { %v782_v43 = vld [vmem:[#allocation2] sm:$0xff] }
  0xea   : > { %786 = vrot.lane.b32.xlu0 %v782_v43, %s5643_s17  ;;  %v783_v44 = vld [vmem:[#allocation2 + $0x8] sm:$0xff] }
  0xef   : > { %v894_v2 = vpop.permute.xlu1 %893 }
  0xf2   : > { %788 = vrot.lane.b32.xlu0 %v783_v44, %s5643_s17 }
  0xf7   : > { %v820_v31 = vpop.permute.xlu1 %819 }
  0xf8   : > { %v824_v36 = vsel %vm823_vm8, %v820_v31, %v822_v32 }
  0xfa   : > { %964 = vrot.lane.b32.xlu0 %v961_v45, %s5651_s0 }
 0x102   : > { %891 = vrot.lane.b32.xlu0 %v889_v46, %s5647_s8 }
 0x10a   : > { %857 = vrot.lane.b32.xlu0 %v854_v47, %s5645_s14 }
 0x15c   : > { %v787_v54 = vpop.permute.xlu0 %786 }
 0x15d   : > { %796 = vst.msk [vmem:[#allocation3] sm:$0xff] %vm795_vm2, %v787_v54 }
 0x164   : > { %v789_v56 = vpop.permute.xlu0 %788  ;;  %v4688_v7 = vld [vmem:[#allocation3] sm:$0xff] }
 0x165   : > { %798 = vst.msk [vmem:[#allocation3 + $0x10] sm:$0xff] %vm790_vm3, %v789_v56  ;;  %v4691_v8 = vsel %vm790_vm3, %v787_v54, %v789_v56  ;;  %v1078_v13 = vmul.f32 %v1071_v49, %v4688_v7  ;;  %v1043_v15 = vmul.f32 %v1035_v50, %v4688_v7  ;;  %v971_v17 = vmul.f32 %v963_v57, %v4688_v7 }
 0x166   : > { %v1079_v14 = vmul.f32 %v1074_v9, %v4691_v8  ;;  %v1044_v16 = vmul.f32 %v1039_v10, %v4691_v8  ;;  %v1007_v26 = vmul.f32 %v999_v51, %v4688_v7  ;;  %v1008_v27 = vmul.f32 %v1003_v24, %v4691_v8 }
 0x167   : > { %v935_v28 = vmul.f32 %v928_v58, %v4688_v7  ;;  %v936_v29 = vmul.f32 %v931_v23, %v4691_v8  ;;  %v864_v30 = vmul.f32 %v856_v12, %v4688_v7  ;;  %v828_v38 = vmul.f32 %v4688_v7, %v820_v31 }
 0x168   : > { %v3750_v21 = vpack.i.bf16 %v1079_v14, %v1078_v13  ;;  %v3755_v22 = vpack.i.bf16 %v1044_v16, %v1043_v15  ;;  %v3760_v34 = vpack.i.bf16 %v1008_v27, %v1007_v26  ;;  %v829_v39 = vmul.f32 %v824_v36, %v4691_v8 }
 0x169   : > { %v3770_v35 = vpack.i.bf16 %v936_v29, %v935_v28 }
 0x16a   : > { %v3785_v44 = vpack.i.bf16 %v829_v39, %v828_v38  ;;  %v1225_v38 = vld [vmem:[%s5697_s6 + $0x8] sm:$0xff]  ;;  %v4386_v39 = vmov 0  }
 0x16b   : > { %3790 = vset.pattern.permute.xlu0 %v4386_v39  ;;  %3951 = vset.pattern.permute.xlu1 %v4386_v39 }
 0x16c   : > { %v4676_v59 = vld [vmem:[#allocation3 + $0x10] sm:$0xff]  ;;  %v965_v60 = vpop.permute.xlu0 %964  ;;  %4072 = vset.pattern.permute.xlu2 %v4386_v39 }
 0x16d   : > { %v1080_v61 = vmul.f32 %v1073_v52, %v4676_v59  ;;  %v1045_v62 = vmul.f32 %v1037_v53, %v4676_v59  ;;  %v1009_v63 = vmul.f32 %v1001_v55, %v4676_v59  ;;  %v973_v3 = vmul.f32 %v965_v60, %v4676_v59 }
 0x16e   : > { %v967_v4 = vsel %vm966_vm4, %v963_v57, %v965_v60  ;;  %v937_v5 = vmul.f32 %v930_v0, %v4676_v59  ;;  %v902_v6 = vmul.f32 %v894_v2, %v4676_v59  ;;  %v830_v45 = vmul.f32 %v822_v32, %v4676_v59 }
 0x16f   : > { %1088 = vrot.lane.b32.xlu2 %v1080_v61, %s5619_s11  ;;  %1053 = vrot.lane.b32.xlu1 %v1045_v62, %s5635_s22  ;;  %v972_v11 = vmul.f32 %v967_v4, %v4691_v8 }
 0x170   : > { %1017 = vrot.lane.b32.xlu0 %v1009_v63, %s5633_s18 }
 0x171   : > { %v3765_v19 = vpack.i.bf16 %v972_v11, %v971_v17 }
 0x174   : > { %v892_v1 = vpop.permute.xlu0 %891 }
 0x175   : > { %v896_v37 = vsel %vm895_vm9, %v892_v1, %v894_v2  ;;  %v900_v40 = vmul.f32 %v892_v1, %v4688_v7 }
 0x176   : > { %v901_v41 = vmul.f32 %v896_v37, %v4691_v8 }
 0x177   : > { %981 = vrot.lane.b32.xlu2 %v973_v3, %s5621_s27  ;;  %945 = vrot.lane.b32.xlu1 %v937_v5, %s5631_s20 }
 0x178   : > { %910 = vrot.lane.b32.xlu0 %v902_v6, %s5629_s29  ;;  %v3775_v43 = vpack.i.bf16 %v901_v41, %v900_v40  ;;  %v1241_v40 = vld [vmem:[%s5698_s7 + $0x8] sm:$0xff] }
 0x17c   : > { %v858_v18 = vpop.permute.xlu0 %857 }
 0x17d   : > { %v860_v20 = vsel %vm859_vm6, %v856_v12, %v858_v18  ;;  %v866_v42 = vmul.f32 %v858_v18, %v4676_v59 }
 0x17e   : > { %v865_v25 = vmul.f32 %v860_v20, %v4691_v8 }
 0x17f   : > { %3766 = vrot.lane.b32.xlu2 %v3765_v19, %s5621_s27  ;;  %3756 = vrot.lane.b32.xlu1 %v3755_v22, %s5635_s22  ;;  %s5623_s27 = smov 127   ;;  %v801_v22 = vld [vmem:[%s5694_s25] ss:$8 sm:$0x3] }
 0x180   : > { %3751 = vrot.lane.b32.xlu0 %v3750_v21, %s5619_s11  ;;  %v3780_v33 = vpack.i.bf16 %v865_v25, %v864_v30  ;;  %s5625_s11 = smov 126   ;;  %v803_v28 = vperm.slane %v801_v22, 0  ;;  %v804_v31 = vperm.slane %v801_v22, 1 }
 0x182   : > { %v808_v37 = vmul.f32 %v804_v31, %v4691_v8  ;;  %v1224_v8 = vld [vmem:[%s5697_s6] sm:$0xff] }
 0x187   : > { %3781 = vrot.lane.b32.xlu2 %v3780_v33, %s5625_s11  ;;  %3771 = vrot.lane.b32.xlu1 %v3770_v35, %s5631_s20  ;;  %v1097_v35 = vld [vmem:[%s5696_s5] sm:$0xff]  ;;  %s5701_s20 = smov 110  }
 0x188   : > { %3761 = vrot.lane.b32.xlu0 %v3760_v34, %s5633_s18  ;;  %v807_v34 = vmul.f32 %v4688_v7, %v803_v28  ;;  %v1098_v7 = vld [vmem:[%s5696_s5 + $0x8] sm:$0xff]  ;;  %s5726_s5 = smov 33  }
 0x18f   : > { %874 = vrot.lane.b32.xlu2 %v866_v42, %s5625_s11  ;;  %3786 = vrot.lane.b32.xlu1 %v3785_v44, %s5623_s27  ;;  %v1240_v44 = vld [vmem:[%s5698_s7] sm:$0xff]  ;;  %s5703_s11 = smov 112   ;;  %s5728_s7 = smov 32  }
 0x190   : > { %3776 = vrot.lane.b32.xlu0 %v3775_v43, %s5629_s29  ;;  %s5702_s29 = smov 111  }
 0x198   : > { %838 = vrot.lane.b32.xlu0 %v830_v45, %s5623_s27  ;;  %s5704_s27 = smov 126  }
 0x1a0   : > { %1233 = vperm.xlu0 %3790, %v1225_v38  }
 0x1a8   : > { %1228 = vperm.xlu0 %3790, %v1224_v8  }
 0x1b0   : > { %1249 = vperm.xlu0 %3790, %v1241_v40  }
 0x1b8   : > { %1244 = vperm.xlu0 %3790, %v1240_v44  }
 0x1c9   : > { %v1089_v46 = vpop.permute.xlu2 %1088 }
 0x1d1   : > { %v982_v49 = vpop.permute.xlu2 %981 }
 0x1d9   : > { %v3767_v52 = vpop.permute.xlu2 %3766 }
 0x1da   : > { %v3769_v2 = vunpack.i.h.bf16 %v3767_v52  ;;  %v3768_v3 = vunpack.i.l.bf16 %v3767_v52 }
 0x1dc   : > { %v984_v12 = vsel %vm5653_vm13, %v3768_v3, %v3769_v2  ;;  %v985_v13 = vsel %vm5653_vm13, %v3769_v2, %v982_v49 }
 0x1e1   : > { %v1054_v47 = vpop.permute.xlu1 %1053  ;;  %v3782_v63 = vpop.permute.xlu2 %3781 }
 0x1e2   : > { %v1018_v48 = vpop.permute.xlu0 %1017  ;;  %v3784_v18 = vunpack.i.h.bf16 %v3782_v63  ;;  %v3783_v19 = vunpack.i.l.bf16 %v3782_v63 }
 0x1e4   : > { %v877_v29 = vsel %vm5639_vm0, %v3783_v19, %v3784_v18 }
 0x1e9   : > { %v946_v50 = vpop.permute.xlu1 %945  ;;  %v875_v23 = vpop.permute.xlu2 %874 }
 0x1ea   : > { %v911_v51 = vpop.permute.xlu0 %910  ;;  %v878_v30 = vsel %vm5639_vm0, %v3784_v18, %v875_v23  ;;  %v3588_v18 = vld [vmem:[%s5694_s25 + $0x7] ss:$8 sm:$0x3] }
 0x1eb   : > { %v1736_v19 = vperm.slane %v3588_v18, 0 }
 0x1ed   : > { %1738 = vrot.lane.b32.xlu0 %v1736_v19, %s5654_s1 }
 0x1f1   : > { %v3757_v54 = vpop.permute.xlu1 %3756 }
 0x1f2   : > { %v3752_v53 = vpop.permute.xlu0 %3751  ;;  %v3759_v57 = vunpack.i.h.bf16 %v3757_v54  ;;  %v3758_v58 = vunpack.i.l.bf16 %v3757_v54 }
 0x1f3   : > { %v3754_v55 = vunpack.i.h.bf16 %v3752_v53  ;;  %v3753_v56 = vunpack.i.l.bf16 %v3752_v53 }
 0x1f4   : > { %v1056_v61 = vsel %vm1055_vm11, %v3758_v58, %v3759_v57  ;;  %v1057_v62 = vsel %vm1055_vm11, %v3759_v57, %v1054_v47 }
 0x1f5   : > { %v1091_v60 = vsel %vm5627_vm10, %v3753_v56, %v3754_v55  ;;  %v1092_v59 = vsel %vm5627_vm10, %v3754_v55, %v1089_v46  ;;  %vm5638_vm10 = vcmask 1039360  }
 0x1f6   : > { %1131 = vmatpush.msra.mxu2 %v1091_v60  ;;  %1154 = vmatpush.msra.mxu3 %v1092_v59 }
 0x1f8   : > { %1132 = vmatpush.msra.mxu2 %v1056_v61  ;;  %1155 = vmatpush.msra.mxu3 %v1057_v62 }
 0x1f9   : > { %v3772_v1 = vpop.permute.xlu1 %3771 }
 0x1fa   : > { %v3762_v0 = vpop.permute.xlu0 %3761  ;;  %v3774_v6 = vunpack.i.h.bf16 %v3772_v1  ;;  %v3773_v9 = vunpack.i.l.bf16 %v3772_v1 }
 0x1fb   : > { %v3764_v4 = vunpack.i.h.bf16 %v3762_v0  ;;  %v3763_v5 = vunpack.i.l.bf16 %v3762_v0 }
 0x1fc   : > { %v948_v14 = vsel %vm5640_vm14, %v3773_v9, %v3774_v6  ;;  %v949_v15 = vsel %vm5640_vm14, %v3774_v6, %v946_v50 }
 0x1fd   : > { %v1020_v10 = vsel %vm5658_vm12, %v3763_v5, %v3764_v4  ;;  %v1021_v11 = vsel %vm5658_vm12, %v3764_v4, %v1018_v48 }
 0x1fe   : > { %1133 = vmatpush.msra.mxu2 %v1020_v10  ;;  %1156 = vmatpush.msra.mxu3 %v1021_v11 }
 0x200   : > { %1134 = vmatpush.msra.mxu2 %v984_v12  ;;  %1157 = vmatpush.msra.mxu3 %v985_v13 }
 0x201   : > { %v3787_v17 = vpop.permute.xlu1 %3786 }
 0x202   : > { %1135 = vmatpush.msra.mxu2 %v948_v14  ;;  %1158 = vmatpush.msra.mxu3 %v949_v15  ;;  %v3777_v16 = vpop.permute.xlu0 %3776  ;;  %v3789_v24 = vunpack.i.h.bf16 %v3787_v17  ;;  %v3788_v25 = vunpack.i.l.bf16 %v3787_v17 }
 0x203   : > { %v3779_v20 = vunpack.i.h.bf16 %v3777_v16  ;;  %v3778_v21 = vunpack.i.l.bf16 %v3777_v16 }
 0x204   : > { %v841_v32 = vsel %vm5638_vm10, %v3788_v25, %v3789_v24  ;;  %v3586_v25 = vld [vmem:[%s5694_s25 + $0x5] ss:$8 sm:$0x3] }
 0x205   : > { %v913_v26 = vsel %vm5628_vm15, %v3778_v21, %v3779_v20  ;;  %v914_v27 = vsel %vm5628_vm15, %v3779_v20, %v911_v51  ;;  %vm5637_vm15 = vcmask 588800   ;;  %v3587_v20 = vld [vmem:[%s5694_s25 + $0x6] ss:$8 sm:$0x3]  ;;  %v1737_v21 = vperm.slane %v3588_v18, 1 }
 0x206   : > { %1136 = vmatpush.msra.mxu2 %v913_v26  ;;  %1159 = vmatpush.msra.mxu3 %v914_v27  ;;  %v1682_v22 = vperm.slane %v3587_v20, 0  ;;  %v1683_v27 = vperm.slane %v3587_v20, 1  ;;  %v1628_v28 = vperm.slane %v3586_v25, 0  ;;  %v1629_v31 = vperm.slane %v3586_v25, 1 }
 0x208   : > { %1137 = vmatpush.msra.mxu2 %v877_v29  ;;  %1160 = vmatpush.msra.mxu3 %v878_v30 }
 0x209   : > { %1686 = vrot.lane.b32.xlu0 %v1683_v27, %s5649_s26 }
 0x20a   : > { %v839_v33 = vpop.permute.xlu0 %838  ;;  %1138 = vmatpush.msra.mxu2 %v841_v32 }
 0x20b   : > { %v842_v36 = vsel %vm5638_vm10, %v3789_v24, %v839_v33  ;;  %v4810_v33 = vld [vmem:[%s5694_s25 + $0x4] ss:$8 sm:$0x3] }
 0x20c   : > { %1139 = vmatpush.msra.mxu2 %v807_v34  ;;  %1161 = vmatpush.msra.mxu3 %v842_v36  ;;  %v1574_v39 = vperm.slane %v4810_v33, 0 }
 0x20d   : > { %3578 = vmatmul.msk.f32.vlgmr.msra.gmra.mxu2 %vm5637_vm15, %v1097_v35 }
 0x20e   : > { %1162 = vmatpush.msra.mxu3 %v808_v37 }
 0x20f   : > { %3580 = vmatmul.msk.f32.vlgmr.msra.gmra.mxu3 %vm5637_vm15, %v1097_v35 }
 0x211   : > { %1576 = vrot.lane.b32.xlu0 %v1574_v39, %s5643_s17 }
 0x212   : > { %v1234_v10 = vpop.permute.xlu0 %1233 }
 0x215   : > { %3579 = vmatmul.msk.f32.gmra.mxu2 %vm5637_vm15, %v1098_v7 }
 0x217   : > { %3581 = vmatmul.msk.f32.gmra.mxu3 %vm5637_vm15, %v1098_v7 }
 0x21a   : > { %v1229_v17 = vpop.permute.xlu0 %1228 }
 0x222   : > { %v1250_v29 = vpop.permute.xlu0 %1249 }
 0x290   : > { %v4771_v41 = vpop.f32.mrf.mxu2 }
 0x291   : > { %v1183_v45 = vmul.f32 %v4771_v41, %v4771_v41 }
 0x292   : > { %v4773_v42 = vpop.f32.mrf.mxu3 }
 0x293   : > { %v1184_v43 = vmul.f32 %v4773_v42, %v4773_v42  ;;  %v1170_v46 = vadd.f32 %v4773_v42, %v4771_v41 }
 0x295   : > { %v1187_v50 = vadd.f32 %v1184_v43, %v1183_v45 }
 0x298   : > { %v4784_v47 = vpop.f32.mrf.mxu2 }
 0x299   : > { %v1185_v48 = vmul.f32 %v4784_v47, %v4784_v47  ;;  %v1171_v49 = vadd.f32 %v1170_v46, %v4784_v47 }
 0x29a   : > { %v4789_v51 = vpop.f32.mrf.mxu3 }
 0x29b   : > { %v1172_v52 = vadd.f32 %v1171_v49, %v4789_v51  ;;  %v1186_v53 = vmul.f32 %v4789_v51, %v4789_v51  ;;  %v1188_v54 = vadd.f32 %v1187_v50, %v1185_v48  ;;  %v1245_v50 = vpop.permute.xlu0 %1244 }
 0x29d   : > { %1173 = vadd.xlane.f32.xlu1 %v1172_v52  ;;  %v1189_v55 = vadd.f32 %v1188_v54, %v1186_v53 }
 0x29f   : > { %1190 = vadd.xlane.f32.xlu2 %v1189_v55 }
 0x2b6   : > { %1684 = vrot.lane.b32.xlu1 %v1682_v22, %s5649_s26  ;;  %s5731_s26 = smov 17  }
 0x2b7   : > { %1740 = vrot.lane.b32.xlu2 %v1737_v21, %s5654_s1 }
 0x2be   : > { %1632 = vrot.lane.b32.xlu1 %v1629_v31, %s5651_s0 }
 0x2bf   : > { %1630 = vrot.lane.b32.xlu2 %v1628_v28, %s5651_s0  ;;  %s5729_s0 = smov 16  }
 0x310   : > { %v1174_v56 = vpop.xlane.xlu1 %1173 }
 0x311   : > { %v1175_v57 = vrot.slane %v1174_v56, 4 }
 0x312   : > { %v1191_v58 = vpop.xlane.xlu2 %1190 }
 0x313   : > { %v1176_v60 = vadd.f32 %v1175_v57, %v1174_v56  ;;  %v1192_v59 = vrot.slane %v1191_v58, 4 }
 0x315   : > { %v1177_v61 = vrot.slane %v1176_v60, 2  ;;  %v1193_v62 = vadd.f32 %v1192_v59, %v1191_v58 }
 0x317   : > { %v1194_v63 = vrot.slane %v1193_v62, 2  ;;  %v1178_v0 = vadd.f32 %v1177_v61, %v1176_v60 }
 0x319   : > { %v1179_v1 = vrot.slane %v1178_v0, 1  ;;  %v1195_v2 = vadd.f32 %v1194_v63, %v1193_v62 }
 0x31b   : > { %v1180_v3 = vadd.f32 %v1179_v1, %v1178_v0  ;;  %v1196_v4 = vrot.slane %v1195_v2, 1 }
 0x31d   : > { %3624 = vpush %v1180_v3  ;;  %v1197_v5 = vadd.f32 %v1196_v4, %v1195_v2 }
 0x31f   : > { %3626 = vpush %v1197_v5 }
 0x34e   : > { %s3625_s22 = spop %3624 }
 0x34f   : > { %v1182_v6 = vstv %s3625_s22  ;;  %s5699_s22 = smov 95  }
 0x350   : > { %v1200_v9 = vmul.f32 0.00024414063, %v1182_v6  ;;  %s3627_s18 = spop %3626 }
 0x351   : > { %v1199_v11 = vstv %s3627_s18  ;;  %s5700_s18 = smov 96  }
 0x352   : > { %v1201_v12 = vmul.f32 0.00024414063, %v1199_v11  ;;  %v1202_v13 = vmul.f32 %v1200_v9, %v1200_v9  ;;  %v1207_v35 = vsub.f32 %v4784_v47, %v1200_v9  ;;  %v1208_v36 = vsub.f32 %v4789_v51, %v1200_v9 }
 0x353   : > { %v1205_v37 = vsub.f32 %v4771_v41, %v1200_v9  ;;  %v1206_v7 = vsub.f32 %v4773_v42, %v1200_v9 }
 0x354   : > { %v1203_v14 = vsub.f32 %v1201_v12, %v1202_v13 }
 0x356   : > { %v1204_v15 = vmax.f32 %v1203_v14, 0.0 }
 0x358   : > { %v1209_v16 = vadd.f32 1e-05, %v1204_v15 }
 0x35a   : > { %4073 = vrsqrt.f32 %v1209_v16  ;;  %vm1216_vm10 = vweird.f32 %v1209_v16 }
 0x360   : > { %v4074_v23 = vpop.eup %4073 }
 0x361   : > { %v1211_v24 = vmul.f32 %v4074_v23, %v1209_v16  ;;  %vm1217_vm15 = vweird.f32 %v4074_v23 }
 0x362   : > { %vm1218_vm0 = vmor %vm1216_vm10, %vm1217_vm15 }
 0x363   : > { %v1212_v26 = vmul.f32 %v4074_v23, %v1211_v24 }
 0x365   : > { %v1213_v30 = vmul.f32 0.5, %v1212_v26 }
 0x367   : > { %v1214_v32 = vsub.f32 1.5, %v1213_v30 }
 0x369   : > { %v1215_v34 = vmul.f32 %v4074_v23, %v1214_v32 }
 0x36b   : > { %v1219_v38 = vsel %vm1218_vm0, %v4074_v23, %v1215_v34 }
 0x36c   : > { %v1220_v8 = vmul.f32 %v1219_v38, %v1205_v37  ;;  %v1221_v40 = vmul.f32 %v1219_v38, %v1206_v7  ;;  %v1223_v43 = vmul.f32 %v1219_v38, %v1208_v36  ;;  %v1222_v44 = vmul.f32 %v1219_v38, %v1207_v35 }
 0x36e   : > { %v1236_v45 = vmul.f32 %v1229_v17, %v1220_v8  ;;  %v1237_v46 = vmul.f32 %v1229_v17, %v1221_v40  ;;  %v1239_v48 = vmul.f32 %v1234_v10, %v1223_v43  ;;  %v1238_v49 = vmul.f32 %v1234_v10, %v1222_v44 }
 0x370   : > { %v4819_v47 = vadd.f32 %v1245_v50, %v1236_v45  ;;  %v4821_v51 = vadd.f32 %v1245_v50, %v1237_v46  ;;  %v4824_v41 = vadd.f32 %v1250_v29, %v1239_v48  ;;  %v4826_v42 = vadd.f32 %v1250_v29, %v1238_v49 }
 0x372   : > { %v4829_v52 = vmul.f32 0.70710677, %v4819_v47  ;;  %v4832_v53 = vmul.f32 0.70710677, %v4821_v51  ;;  %v4835_v54 = vmul.f32 0.70710677, %v4824_v41 }
 0x373   : > { %v4841_v58 = vmul.f32 0.70710677, %v4826_v42 }
 0x374   : > { %v1268_v55 = vand.u32 2147483647, %v4829_v52  ;;  %v1269_v56 = vand.u32 2147483647, %v4832_v53  ;;  %v1271_v57 = vand.u32 2147483647, %v4835_v54 }
 0x375   : > { %v1270_v0 = vand.u32 2147483647, %v4841_v58  ;;  %vm1260_vm10 = vcmp.ge.f32.partialorder %v4829_v52, 0.0  ;;  %vm1261_vm15 = vcmp.ge.f32.partialorder %v4832_v53, 0.0  ;;  %vm1263_vm0 = vcmp.ge.f32.partialorder %v4835_v54, 0.0 }
 0x376   : > { %v1272_v60 = vmul.f32 0.3275911, %v1268_v55  ;;  %v1273_v59 = vmul.f32 0.3275911, %v1269_v56  ;;  %v1275_v61 = vmul.f32 0.3275911, %v1271_v57  ;;  %v1320_v5 = vmul.f32 %v1268_v55, %v1268_v55 }
 0x377   : > { %v1274_v2 = vmul.f32 0.3275911, %v1270_v0  ;;  %v1321_v9 = vmul.f32 %v1269_v56, %v1269_v56  ;;  %v1323_v15 = vmul.f32 %v1271_v57, %v1271_v57  ;;  %v1322_v21 = vmul.f32 %v1270_v0, %v1270_v0 }
 0x378   : > { %v1276_v62 = vadd.f32 1.0, %v1272_v60  ;;  %v1277_v63 = vadd.f32 1.0, %v1273_v59  ;;  %v1279_v1 = vadd.f32 1.0, %v1275_v61  ;;  %v1324_v14 = vsub.f32 0.0, %v1320_v5 }
 0x379   : > { %v1278_v3 = vadd.f32 1.0, %v1274_v2  ;;  %v1325_v17 = vsub.f32 0.0, %v1321_v9  ;;  %v1327_v27 = vsub.f32 0.0, %v1323_v15  ;;  %v1326_v34 = vsub.f32 0.0, %v1322_v21 }
 0x37a   : > { %4075 = vrcp.f32 %v1276_v62  ;;  %v1328_v26 = vmul.f32 1.442695, %v1324_v14  ;;  %v1348_v15 = vmul.f32 0.5, %v4819_v47  ;;  %vm1262_vm14 = vcmp.ge.f32.partialorder %v4841_v58, 0.0 }
 0x37b   : > { %4077 = vrcp.f32 %v1277_v63  ;;  %v1330_v29 = vmul.f32 1.442695, %v1325_v17  ;;  %v1334_v38 = vmul.f32 1.442695, %v1327_v27  ;;  %v1332_v44 = vmul.f32 1.442695, %v1326_v34 }
 0x37c   : > { %4079 = vrcp.f32 %v1279_v1  ;;  %v1350_v58 = vmul.f32 0.5, %v4826_v42 }
 0x37d   : > { %4081 = vrcp.f32 %v1278_v3 }
 0x37e   : > { %4083 = vpow2.f32 %v1328_v26 }
 0x37f   : > { %4085 = vpow2.f32 %v1330_v29 }
 0x380   : > { %v4076_v4 = vpop.eup %4075  ;;  %4087 = vpow2.f32 %v1334_v38 }
 0x381   : > { %v4078_v6 = vpop.eup %4077  ;;  %v1284_v10 = vmul.f32 1.0614054, %v4076_v4  ;;  %4089 = vpow2.f32 %v1332_v44 }
 0x382   : > { %v1285_v11 = vmul.f32 1.0614054, %v4078_v6  ;;  %v4080_v13 = vpop.eup %4079 }
 0x383   : > { %v1288_v12 = vadd.f32 -1.4531521, %v1284_v10  ;;  %v1287_v18 = vmul.f32 1.0614054, %v4080_v13  ;;  %v4082_v20 = vpop.eup %4081  ;;  %v4387_v10 = vmov -1.0  }
 0x384   : > { %v1289_v16 = vadd.f32 -1.4531521, %v1285_v11  ;;  %v1286_v24 = vmul.f32 1.0614054, %v4082_v20  ;;  %v4084_v60 = vpop.eup %4083  ;;  %v1264_v11 = vsel %vm1260_vm10, 1.0, %v4387_v10  ;;  %v1267_v53 = vsel %vm1263_vm0, 1.0, %v4387_v10 }
 0x385   : > { %v1292_v19 = vmul.f32 %v4076_v4, %v1288_v12  ;;  %v1291_v23 = vadd.f32 -1.4531521, %v1287_v18  ;;  %v4086_v61 = vpop.eup %4085  ;;  %v1265_v18 = vsel %vm1261_vm15, 1.0, %v4387_v10  ;;  %vm5711_vm15 = vcmask 916480  }
 0x386   : > { %v1293_v22 = vmul.f32 %v4078_v6, %v1289_v16  ;;  %v1290_v31 = vadd.f32 -1.4531521, %v1286_v24  ;;  %v4088_v9 = vpop.eup %4087 }
 0x387   : > { %v1296_v25 = vadd.f32 1.4214138, %v1292_v19  ;;  %v1295_v30 = vmul.f32 %v4080_v13, %v1291_v23  ;;  %v4090_v52 = vpop.eup %4089  ;;  %v1351_v23 = vmul.f32 0.5, %v4824_v41 }
 0x388   : > { %v1297_v28 = vadd.f32 1.4214138, %v1293_v22  ;;  %v1294_v37 = vmul.f32 %v4082_v20, %v1290_v31 }
 0x389   : > { %v1300_v32 = vmul.f32 %v4076_v4, %v1296_v25  ;;  %v1299_v36 = vadd.f32 1.4214138, %v1295_v30  ;;  %v3584_v30 = vld [vmem:[%s5694_s25 + $0x3] ss:$8 sm:$0x3] }
 0x38a   : > { %v1301_v35 = vmul.f32 %v4078_v6, %v1297_v28  ;;  %v1298_v40 = vadd.f32 1.4214138, %v1294_v37  ;;  %v1349_v28 = vmul.f32 0.5, %v4821_v51  ;;  %v1520_v31 = vperm.slane %v3584_v30, 0 }
 0x38b   : > { %v1304_v7 = vadd.f32 -0.28449672, %v1300_v32  ;;  %v1303_v8 = vmul.f32 %v4080_v13, %v1299_v36  ;;  %v1575_v32 = vperm.slane %v4810_v33, 1  ;;  %v1521_v42 = vperm.slane %v3584_v30, 1 }
 0x38c   : > { %v1305_v39 = vadd.f32 -0.28449672, %v1301_v35  ;;  %v1302_v48 = vmul.f32 %v4082_v20, %v1298_v40  ;;  %v3583_v51 = vld [vmem:[%s5694_s25 + $0x2] ss:$8 sm:$0x3]  ;;  %v1739_v40 = vpop.permute.xlu0 %1738 }
 0x38d   : > { %v1308_v43 = vmul.f32 %v4076_v4, %v1304_v7  ;;  %v1307_v46 = vadd.f32 -0.28449672, %v1303_v8  ;;  %v1467_v34 = vperm.slane %v3583_v51, 1  ;;  %v3582_v35 = vld [vmem:[%s5694_s25 + $0x1] ss:$8 sm:$0x3]  ;;  %v1741_v8 = vpop.permute.xlu2 %1740 }
 0x38e   : > { %v1309_v45 = vmul.f32 %v4078_v6, %v1305_v39  ;;  %v1306_v56 = vadd.f32 -0.28449672, %v1302_v48  ;;  %v1466_v36 = vperm.slane %v3583_v51, 0  ;;  %v1412_v33 = vperm.slane %v3582_v35, 0 }
 0x38f   : > { %v1312_v49 = vadd.f32 0.2548296, %v1308_v43  ;;  %v1311_v55 = vmul.f32 %v4080_v13, %v1307_v46  ;;  %v3589_v37 = vld [vmem:[%s5694_s25 + $0x10] ss:$8 sm:$0x3]  ;;  %v1413_v38 = vperm.slane %v3582_v35, 1  ;;  %v1685_v46 = vpop.permute.xlu1 %1684 }
 0x390   : > { %v1313_v50 = vadd.f32 0.2548296, %v1309_v45  ;;  %v1310_v63 = vmul.f32 %v4082_v20, %v1306_v56  ;;  %v1790_v7 = vperm.slane %v3589_v37, 0  ;;  %v1791_v39 = vperm.slane %v3589_v37, 1 }
 0x391   : > { %v1316_v57 = vmul.f32 %v4076_v4, %v1312_v49  ;;  %v1315_v62 = vadd.f32 0.2548296, %v1311_v55 }
 0x392   : > { %v1317_v59 = vmul.f32 %v4078_v6, %v1313_v50  ;;  %v1314_v3 = vadd.f32 0.2548296, %v1310_v63 }
 0x393   : > { %v1336_v0 = vmul.f32 %v4084_v60, %v1316_v57  ;;  %v1319_v2 = vmul.f32 %v4080_v13, %v1315_v62  ;;  %v1742_v57 = vsel %vm1038_vm5, %v1739_v40, %v1741_v8 }
 0x394   : > { %v1337_v1 = vmul.f32 %v4086_v61, %v1317_v59  ;;  %v1318_v6 = vmul.f32 %v4082_v20, %v1314_v3  ;;  %v1266_v20 = vsel %vm1262_vm14, 1.0, %v4387_v10  ;;  %v1687_v44 = vpop.permute.xlu0 %1686  ;;  %vm5709_vm14 = vcmask 908288  }
 0x395   : > { %v1340_v5 = vsub.f32 1.0, %v1336_v0  ;;  %v1339_v4 = vmul.f32 %v4088_v9, %v1319_v2  ;;  %v1631_v43 = vpop.permute.xlu2 %1630  ;;  %vm5710_vm10 = vmmov %vm5709_vm14 }
 0x396   : > { %v1341_v14 = vsub.f32 1.0, %v1337_v1  ;;  %v1338_v13 = vmul.f32 %v4090_v52, %v1318_v6  ;;  %vm5712_vm0 = vmmov %vm5710_vm10 }
 0x397   : > { %v1344_v12 = vmul.f32 %v1340_v5, %v1264_v11  ;;  %v1343_v16 = vsub.f32 1.0, %v1339_v4  ;;  %v1633_v49 = vpop.permute.xlu1 %1632  ;;  %v1688_v5 = vsel %vm1002_vm7, %v1685_v46, %v1687_v44 }
 0x398   : > { %v1342_v21 = vsub.f32 1.0, %v1338_v13  ;;  %v1345_v54 = vmul.f32 %v1341_v14, %v1265_v18 }
 0x399   : > { %v1352_v17 = vadd.f32 1.0, %v1344_v12  ;;  %v1347_v19 = vmul.f32 %v1343_v16, %v1267_v53  ;;  %v1634_v16 = vsel %vm966_vm4, %v1631_v43, %v1633_v49 }
 0x39a   : > { %v1346_v25 = vmul.f32 %v1342_v21, %v1266_v20  ;;  %v1353_v27 = vadd.f32 1.0, %v1345_v54 }
 0x39b   : > { %v1356_v22 = vmul.f32 %v1352_v17, %v1348_v15  ;;  %v1355_v24 = vadd.f32 1.0, %v1347_v19 }
 0x39c   : > { %v1354_v26 = vadd.f32 1.0, %v1346_v25  ;;  %v1357_v41 = vmul.f32 %v1353_v27, %v1349_v28  ;;  %v1577_v48 = vpop.permute.xlu0 %1576 }
 0x39d   : > { %1364 = vrot.lane.b32.xlu0 %v1356_v22, %s5643_s17  ;;  %v1359_v47 = vmul.f32 %v1355_v24, %v1351_v23 }
 0x39e   : > { %v1358_v29 = vmul.f32 %v1354_v26, %v1350_v58 }
 0x39f   : > { %1370 = vrot.lane.b32.xlu1 %v1359_v47, %s5643_s17 }
 0x3a0   : > { %1368 = vrot.lane.b32.xlu2 %v1358_v29, %s5643_s17 }
 0x3a5   : > { %1366 = vrot.lane.b32.xlu0 %v1357_v41, %s5643_s17 }
 0x3a7   : > { %1522 = vrot.lane.b32.xlu1 %v1520_v31, %s5647_s8 }
 0x3a8   : > { %1578 = vrot.lane.b32.xlu2 %v1575_v32, %s5643_s17  ;;  %s5706_s17 = smov 94  }
 0x3ad   : > { %1524 = vrot.lane.b32.xlu0 %v1521_v42, %s5647_s8 }
 0x3af   : > { %1470 = vrot.lane.b32.xlu1 %v1467_v34, %s5645_s14 }
 0x3b0   : > { %1468 = vrot.lane.b32.xlu2 %v1466_v36, %s5645_s14 }
 0x3b5   : > { %1414 = vrot.lane.b32.xlu0 %v1412_v33, %s5641_s3 }
 0x3b7   : > { %1792 = vrot.lane.b32.xlu1 %v1790_v7, %s5656_s2 }
 0x3b8   : > { %1416 = vrot.lane.b32.xlu2 %v1413_v38, %s5641_s3  ;;  %s5705_s3 = smov 127  }
 0x3bd   : > { %1794 = vrot.lane.b32.xlu0 %v1791_v39, %s5656_s2 }
 0x3fa   : > { %v1369_v45 = vpop.permute.xlu2 %1368 }
 0x3fb   : > { %1383 = vst.msk [vmem:[#allocation3 + $0x18] sm:$0xff] %vm795_vm2, %v1369_v45 }
 0x402   : > { %v4884_v55 = vld [vmem:[#allocation3 + $0x18] sm:$0xff]  ;;  %v1579_v25 = vpop.permute.xlu2 %1578 }
 0x403   : > { %v1749_v59 = vmul.f32 %v1739_v40, %v4884_v55  ;;  %v1695_v4 = vmul.f32 %v1685_v46, %v4884_v55  ;;  %v1641_v21 = vmul.f32 %v1631_v43, %v4884_v55  ;;  %v1580_v47 = vsel %vm790_vm3, %v1577_v48, %v1579_v25 }
 0x404   : > { %v1587_v29 = vmul.f32 %v1577_v48, %v4884_v55 }
 0x40a   : > { %v1469_v39 = vpop.permute.xlu2 %1468 }
 0x40f   : > { %v1365_v50 = vpop.permute.xlu0 %1364 }
 0x410   : > { %1380 = vst.msk [vmem:[#allocation3] sm:$0xff] %vm795_vm2, %v1365_v50 }
 0x411   : > { %v1371_v56 = vpop.permute.xlu1 %1370 }
 0x412   : > { %v4888_v60 = vsel %vm790_vm3, %v1369_v45, %v1371_v56  ;;  %1385 = vst.msk [vmem:[#allocation3 + $0x28] sm:$0xff] %vm790_vm3, %v1371_v56  ;;  %v1479_v56 = vmul.f32 %v4884_v55, %v1469_v39 }
 0x413   : > { %v1750_v61 = vmul.f32 %v1742_v57, %v4888_v60  ;;  %v1696_v11 = vmul.f32 %v1688_v5, %v4888_v60  ;;  %v1642_v19 = vmul.f32 %v1634_v16, %v4888_v60  ;;  %v1588_v28 = vmul.f32 %v1580_v47, %v4888_v60 }
 0x415   : > { %v3821_v0 = vpack.i.bf16 %v1750_v61, %v1749_v59  ;;  %v3831_v14 = vpack.i.bf16 %v1696_v11, %v1695_v4  ;;  %v3841_v54 = vpack.i.bf16 %v1642_v19, %v1641_v21  ;;  %v3851_v31 = vpack.i.bf16 %v1588_v28, %v1587_v29  ;;  %v1417_v61 = vpop.permute.xlu2 %1416 }
 0x417   : > { %v1367_v62 = vpop.permute.xlu0 %1366  ;;  %v4893_v63 = vld [vmem:[#allocation3] sm:$0xff]  ;;  %3822 = vrot.lane.b32.xlu2 %v3821_v0, %s5699_s22 }
 0x418   : > { %v4896_v1 = vsel %vm790_vm3, %v1365_v50, %v1367_v62  ;;  %1382 = vst.msk [vmem:[#allocation3 + $0x10] sm:$0xff] %vm790_vm3, %v1367_v62  ;;  %v1746_v2 = vmul.f32 %v1739_v40, %v4893_v63  ;;  %v1692_v52 = vmul.f32 %v1685_v46, %v4893_v63  ;;  %v1638_v20 = vmul.f32 %v1631_v43, %v4893_v63 }
 0x419   : > { %v1747_v3 = vmul.f32 %v1742_v57, %v4896_v1  ;;  %v4905_v6 = vld [vmem:[#allocation3 + $0x28] sm:$0xff]  ;;  %v1693_v15 = vmul.f32 %v1688_v5, %v4896_v1  ;;  %v1639_v23 = vmul.f32 %v1634_v16, %v4896_v1  ;;  %v1523_v26 = vpop.permute.xlu1 %1522  ;;  %v1584_v32 = vmul.f32 %v1577_v48, %v4893_v63 }
 0x41a   : > { %v1751_v17 = vmul.f32 %v1741_v8, %v4905_v6  ;;  %v1697_v24 = vmul.f32 %v1687_v44, %v4905_v6  ;;  %v1585_v42 = vmul.f32 %v1580_v47, %v4896_v1  ;;  %v1643_v34 = vmul.f32 %v1633_v49, %v4905_v6 }
 0x41b   : > { %v3826_v9 = vpack.i.bf16 %v1747_v3, %v1746_v2  ;;  %v3836_v53 = vpack.i.bf16 %v1693_v15, %v1692_v52  ;;  %v3846_v27 = vpack.i.bf16 %v1639_v23, %v1638_v20  ;;  %v1533_v37 = vmul.f32 %v4884_v55, %v1523_v26 }
 0x41c   : > { %v3856_v33 = vpack.i.bf16 %v1585_v42, %v1584_v32  ;;  %v1530_v45 = vmul.f32 %v1523_v26, %v4893_v63  ;;  %v1476_v3 = vmul.f32 %v4893_v63, %v1469_v39 }
 0x41d   : > { %3827 = vrot.lane.b32.xlu1 %v3826_v9, %s5699_s22 }
 0x41f   : > { %v4908_v12 = vld [vmem:[#allocation3 + $0x10] sm:$0xff]  ;;  %3832 = vrot.lane.b32.xlu2 %v3831_v14, %s5700_s18  ;;  %v1525_v30 = vpop.permute.xlu0 %1524 }
 0x420   : > { %v1748_v13 = vmul.f32 %v1741_v8, %v4908_v12  ;;  %v1694_v22 = vmul.f32 %v1687_v44, %v4908_v12  ;;  %v1640_v41 = vmul.f32 %v1633_v49, %v4908_v12  ;;  %v1526_v51 = vsel %vm895_vm9, %v1523_v26, %v1525_v30 }
 0x421   : > { %v1534_v36 = vmul.f32 %v1526_v51, %v4888_v60  ;;  %v1471_v7 = vpop.permute.xlu1 %1470  ;;  %v1586_v38 = vmul.f32 %v1579_v25, %v4908_v12  ;;  %v1531_v8 = vmul.f32 %v1526_v51, %v4896_v1  ;;  %v1589_v44 = vmul.f32 %v1579_v25, %v4905_v6 }
 0x422   : > { %v3791_v18 = vpack.i.bf16 %v1748_v13, %v1751_v17  ;;  %v3796_v58 = vpack.i.bf16 %v1694_v22, %v1697_v24  ;;  %v3801_v35 = vpack.i.bf16 %v1640_v41, %v1643_v34  ;;  %v1472_v43 = vsel %vm859_vm6, %v1469_v39, %v1471_v7 }
 0x423   : > { %v3861_v40 = vpack.i.bf16 %v1534_v36, %v1533_v37  ;;  %v3806_v46 = vpack.i.bf16 %v1586_v38, %v1589_v44  ;;  %v1480_v48 = vmul.f32 %v1472_v43, %v4888_v60  ;;  %v3866_v50 = vpack.i.bf16 %v1531_v8, %v1530_v45 }
 0x424   : > { %3792 = vrot.lane.b32.xlu0 %v3791_v18, %s5699_s22  ;;  %v1532_v57 = vmul.f32 %v1525_v30, %v4908_v12  ;;  %v1535_v59 = vmul.f32 %v1525_v30, %v4905_v6  ;;  %v1477_v62 = vmul.f32 %v1472_v43, %v4896_v1  ;;  %v1478_v52 = vmul.f32 %v4908_v12, %v1471_v7  ;;  %v2009_v30 = vld [vmem:[%s5708_s10] sm:$0xff] }
 0x425   : > { %3837 = vrot.lane.b32.xlu1 %v3836_v53, %s5700_s18  ;;  %v3871_v0 = vpack.i.bf16 %v1480_v48, %v1479_v56  ;;  %v1481_v15 = vmul.f32 %v1471_v7, %v4905_v6  ;;  %v1424_v20 = vmul.f32 %v4908_v12, %v1417_v61  ;;  %v1427_v25 = vmul.f32 %v1417_v61, %v4905_v6 }
 0x426   : > { %v3811_v5 = vpack.i.bf16 %v1532_v57, %v1535_v59  ;;  %v3876_v4 = vpack.i.bf16 %v1477_v62, %v1476_v3 }
 0x427   : > { %3842 = vrot.lane.b32.xlu2 %v3841_v54, %s5701_s20  ;;  %v1415_v49 = vpop.permute.xlu0 %1414  ;;  %v3816_v19 = vpack.i.bf16 %v1478_v52, %v1481_v15 }
 0x428   : > { %v1418_v2 = vsel %vm823_vm8, %v1415_v49, %v1417_v61  ;;  %v1425_v9 = vmul.f32 %v4884_v55, %v1415_v49  ;;  %v1422_v16 = vmul.f32 %v4893_v63, %v1415_v49 }
 0x429   : > { %v1426_v11 = vmul.f32 %v1418_v2, %v4888_v60  ;;  %v1423_v13 = vmul.f32 %v1418_v2, %v4896_v1  ;;  %v1793_v17 = vpop.permute.xlu1 %1792 }
 0x42a   : > { %v1803_v54 = vmul.f32 %v1793_v17, %v4884_v55  ;;  %v1800_v47 = vmul.f32 %v1793_v17, %v4893_v63 }
 0x42b   : > { %v3881_v18 = vpack.i.bf16 %v1426_v11, %v1425_v9  ;;  %v3886_v22 = vpack.i.bf16 %v1423_v13, %v1422_v16 }
 0x42c   : > { %3797 = vrot.lane.b32.xlu0 %v3796_v58, %s5700_s18  ;;  %v3891_v58 = vpack.i.bf16 %v1424_v20, %v1427_v25 }
 0x42d   : > { %3847 = vrot.lane.b32.xlu1 %v3846_v27, %s5701_s20 }
 0x42f   : > { %3852 = vrot.lane.b32.xlu2 %v3851_v31, %s5702_s29  ;;  %v1795_v14 = vpop.permute.xlu0 %1794 }
 0x430   : > { %v1796_v53 = vsel %vm704_vm1, %v1793_v17, %v1795_v14  ;;  %v1805_v23 = vmul.f32 %v1795_v14, %v4905_v6  ;;  %v1802_v28 = vmul.f32 %v1795_v14, %v4908_v12  ;;  %v2001_v6 = vld [vmem:[%s5707_s9] sm:$0xff] }
 0x431   : > { %v1804_v21 = vmul.f32 %v1796_v53, %v4888_v60  ;;  %v1801_v27 = vmul.f32 %v1796_v53, %v4896_v1 }
 0x432   : > { %v3901_v26 = vpack.i.bf16 %v1800_v47, %v1805_v23 }
 0x433   : > { %v3896_v24 = vpack.i.bf16 %v1804_v21, %v1803_v54  ;;  %v3906_v29 = vpack.i.bf16 %v1802_v28, %v1801_v27 }
 0x434   : > { %3802 = vrot.lane.b32.xlu0 %v3801_v35, %s5701_s20 }
 0x435   : > { %3857 = vrot.lane.b32.xlu1 %v3856_v33, %s5702_s29 }
 0x437   : > { %3862 = vrot.lane.b32.xlu2 %v3861_v40, %s5703_s11 }
 0x43c   : > { %3807 = vrot.lane.b32.xlu0 %v3806_v46, %s5702_s29 }
 0x43d   : > { %3867 = vrot.lane.b32.xlu1 %v3866_v50, %s5703_s11 }
 0x43f   : > { %3872 = vrot.lane.b32.xlu2 %v3871_v0, %s5704_s27 }
 0x444   : > { %3812 = vrot.lane.b32.xlu0 %v3811_v5, %s5703_s11 }
 0x445   : > { %3877 = vrot.lane.b32.xlu1 %v3876_v4, %s5704_s27 }
 0x447   : > { %3882 = vrot.lane.b32.xlu2 %v3881_v18, %s5705_s3 }
 0x44c   : > { %3817 = vrot.lane.b32.xlu0 %v3816_v19, %s5704_s27 }
 0x44d   : > { %3887 = vrot.lane.b32.xlu1 %v3886_v22, %s5705_s3 }
 0x44f   : > { %3897 = vrot.lane.b32.xlu2 %v3896_v24, %s5706_s17 }
 0x454   : > { %3892 = vrot.lane.b32.xlu0 %v3891_v58, %s5705_s3 }
 0x455   : > { %3902 = vrot.lane.b32.xlu1 %v3901_v26, %s5706_s17 }
 0x45c   : > { %3907 = vrot.lane.b32.xlu0 %v3906_v29, %s5706_s17 }
 0x464   : > { %2004 = vperm.xlu0 %3790, %v2001_v6  }
 0x46c   : > { %2012 = vperm.xlu0 %3790, %v2009_v30  }
 0x471   : > { %v3823_v41 = vpop.permute.xlu2 %3822 }
 0x472   : > { %v3825_v31 = vunpack.i.h.bf16 %v3823_v41  ;;  %v3824_v32 = vunpack.i.l.bf16 %v3823_v41 }
 0x474   : > { %v1772_v42 = vsel %vm1055_vm11, %v3824_v32, %v3825_v31 }
 0x475   : > { %1877 = vmatpush.msrb.mxu0 %v1772_v42 }
 0x479   : > { %v3833_v12 = vpop.permute.xlu2 %3832 }
 0x47a   : > { %v3835_v35 = vunpack.i.h.bf16 %v3833_v12  ;;  %v3834_v36 = vunpack.i.l.bf16 %v3833_v12 }
 0x47c   : > { %v1718_v38 = vsel %vm5658_vm12, %v3834_v36, %v3835_v35 }
 0x481   : > { %v3843_v51 = vpop.permute.xlu2 %3842 }
 0x482   : > { %v3845_v45 = vunpack.i.h.bf16 %v3843_v51  ;;  %v3844_v46 = vunpack.i.l.bf16 %v3843_v51 }
 0x484   : > { %v1664_v59 = vsel %vm5653_vm13, %v3844_v46, %v3845_v45 }
 0x489   : > { %v3853_v8 = vpop.permute.xlu2 %3852 }
 0x48a   : > { %v3855_v3 = vunpack.i.h.bf16 %v3853_v8  ;;  %v3854_v5 = vunpack.i.l.bf16 %v3853_v8 }
 0x48c   : > { %v1610_v16 = vsel %vm5709_vm14, %v3854_v5, %v3855_v3  ;;  %vm5713_vm14 = vmmov %vm5711_vm15 }
 0x48f   : > { %v3828_v34 = vpop.permute.xlu1 %3827 }
 0x490   : > { %v3830_v33 = vunpack.i.h.bf16 %v3828_v34  ;;  %v3829_v37 = vunpack.i.l.bf16 %v3828_v34 }
 0x491   : > { %v3863_v4 = vpop.permute.xlu2 %3862 }
 0x492   : > { %v1770_v7 = vsel %vm1055_vm11, %v3829_v37, %v3830_v33  ;;  %v3865_v19 = vunpack.i.h.bf16 %v3863_v4  ;;  %v3864_v21 = vunpack.i.l.bf16 %v3863_v4  ;;  %v1836_v4 = vld [vmem:[#allocation10] sm:$0xff] }
 0x493   : > { %1878 = vmatpush.msrb.mxu0 %v1770_v7 }
 0x494   : > { %v1556_v47 = vsel %vm5711_vm15, %v3864_v21, %v3865_v19  ;;  %vm5716_vm15 = vmmov %vm5713_vm14 }
 0x495   : > { %1879 = vmatpush.msrb.mxu0 %v1718_v38 }
 0x496   : > { %v3793_v39 = vpop.permute.xlu0 %3792 }
 0x497   : > { %v3795_v40 = vunpack.i.h.bf16 %v3793_v39  ;;  %v3794_v43 = vunpack.i.l.bf16 %v3793_v39  ;;  %v3838_v44 = vpop.permute.xlu1 %3837 }
 0x498   : > { %v3840_v48 = vunpack.i.h.bf16 %v3838_v44  ;;  %v3839_v49 = vunpack.i.l.bf16 %v3838_v44 }
 0x499   : > { %v1773_v50 = vsel %vm1055_vm11, %v3825_v31, %v3794_v43  ;;  %v1771_v57 = vsel %vm1055_vm11, %v3830_v33, %v3795_v40  ;;  %v3873_v24 = vpop.permute.xlu2 %3872 }
 0x49a   : > { %1917 = vmatpush.msrb.mxu2 %v1773_v50  ;;  %v1716_v56 = vsel %vm5658_vm12, %v3839_v49, %v3840_v48  ;;  %v3875_v29 = vunpack.i.h.bf16 %v3873_v24  ;;  %v3874_v6 = vunpack.i.l.bf16 %v3873_v24  ;;  %v1837_v24 = vld [vmem:[#allocation10 + $0x8] sm:$0xff] }
 0x49b   : > { %1880 = vmatpush.msrb.mxu0 %v1716_v56 }
 0x49c   : > { %1918 = vmatpush.msrb.mxu2 %v1771_v57 }
 0x49d   : > { %1881 = vmatpush.msrb.mxu0 %v1664_v59 }
 0x49e   : > { %v3798_v61 = vpop.permute.xlu0 %3797 }
 0x49f   : > { %v3800_v62 = vunpack.i.h.bf16 %v3798_v61  ;;  %v3799_v0 = vunpack.i.l.bf16 %v3798_v61  ;;  %v3848_v2 = vpop.permute.xlu1 %3847 }
 0x4a0   : > { %v3850_v9 = vunpack.i.h.bf16 %v3848_v2  ;;  %v3849_v11 = vunpack.i.l.bf16 %v3848_v2 }
 0x4a1   : > { %v1719_v14 = vsel %vm5658_vm12, %v3835_v35, %v3799_v0  ;;  %v1717_v15 = vsel %vm5658_vm12, %v3840_v48, %v3800_v62  ;;  %v3883_v51 = vpop.permute.xlu2 %3882 }
 0x4a2   : > { %1919 = vmatpush.msrb.mxu2 %v1719_v14  ;;  %v1662_v52 = vsel %vm5653_vm13, %v3849_v11, %v3850_v9  ;;  %v3885_v37 = vunpack.i.h.bf16 %v3883_v51  ;;  %v3884_v7 = vunpack.i.l.bf16 %v3883_v51 }
 0x4a3   : > { %1882 = vmatpush.msrb.mxu0 %v1662_v52 }
 0x4a4   : > { %1920 = vmatpush.msrb.mxu2 %v1717_v15 }
 0x4a5   : > { %1883 = vmatpush.msrb.mxu0 %v1610_v16 }
 0x4a6   : > { %v3803_v13 = vpop.permute.xlu0 %3802 }
 0x4a7   : > { %v3805_v17 = vunpack.i.h.bf16 %v3803_v13  ;;  %v3804_v18 = vunpack.i.l.bf16 %v3803_v13  ;;  %v3858_v53 = vpop.permute.xlu1 %3857 }
 0x4a8   : > { %v3860_v22 = vunpack.i.h.bf16 %v3858_v53  ;;  %v3859_v54 = vunpack.i.l.bf16 %v3858_v53 }
 0x4a9   : > { %v1665_v20 = vsel %vm5653_vm13, %v3845_v45, %v3804_v18  ;;  %v1663_v25 = vsel %vm5653_vm13, %v3850_v9, %v3805_v17  ;;  %vm5715_vm13 = vcmask 1031168   ;;  %v1390_v45 = vld [vmem:[%s5694_s25] ss:$8 sm:$0x3]  ;;  %v3898_v61 = vpop.permute.xlu2 %3897 }
 0x4aa   : > { %1921 = vmatpush.msrb.mxu2 %v1665_v20  ;;  %v1608_v23 = vsel %vm5710_vm10, %v3859_v54, %v3860_v22  ;;  %vm5714_vm10 = vmmov %vm5712_vm0  ;;  %v1502_v12 = vsel %vm5715_vm13, %v3874_v6, %v3875_v29  ;;  %v1392_v56 = vperm.slane %v1390_v45, 0  ;;  %v3900_v5 = vunpack.i.h.bf16 %v3898_v61 }
 0x4ab   : > { %1884 = vmatpush.msrb.mxu0 %v1608_v23  ;;  %v3899_v9 = vunpack.i.l.bf16 %v3898_v61  ;;  %v1393_v13 = vperm.slane %v1390_v45, 1 }
 0x4ac   : > { %1922 = vmatpush.msrb.mxu2 %v1663_v25  ;;  %v1396_v11 = vmul.f32 %v4893_v63, %v1392_v56 }
 0x4ad   : > { %1885 = vmatpush.msrb.mxu0 %v1556_v47  ;;  %v1399_v63 = vmul.f32 %v1393_v13, %v4888_v60 }
 0x4ae   : > { %v3808_v58 = vpop.permute.xlu0 %3807 }
 0x4af   : > { %v3810_v26 = vunpack.i.h.bf16 %v3808_v58  ;;  %v3809_v27 = vunpack.i.l.bf16 %v3808_v58  ;;  %v3868_v28 = vpop.permute.xlu1 %3867 }
 0x4b0   : > { %v3870_v30 = vunpack.i.h.bf16 %v3868_v28  ;;  %v3869_v41 = vunpack.i.l.bf16 %v3868_v28 }
 0x4b1   : > { %v1611_v31 = vsel %vm5712_vm0, %v3855_v3, %v3809_v27  ;;  %v1609_v42 = vsel %vm5714_vm10, %v3860_v22, %v3810_v26  ;;  %vm5717_vm0 = vmmov %vm5715_vm13  ;;  %vm5718_vm13 = vcmask 1039360   ;;  %v1398_v3 = vmul.f32 %v4884_v55, %v1392_v56 }
 0x4b2   : > { %1923 = vmatpush.msrb.mxu2 %v1611_v31  ;;  %v1554_v32 = vsel %vm5713_vm14, %v3869_v41, %v3870_v30  ;;  %v1448_v44 = vsel %vm5718_vm13, %v3884_v7, %v3885_v37  ;;  %vm5719_vm10 = vmmov %vm5717_vm0  ;;  %v1397_v22 = vmul.f32 %v1393_v13, %v4896_v1 }
 0x4b3   : > { %1886 = vmatpush.msrb.mxu0 %v1554_v32 }
 0x4b4   : > { %1924 = vmatpush.msrb.mxu2 %v1609_v42 }
 0x4b5   : > { %1887 = vmatpush.msrb.mxu0 %v1502_v12 }
 0x4b6   : > { %v3813_v34 = vpop.permute.xlu0 %3812 }
 0x4b7   : > { %v3815_v35 = vunpack.i.h.bf16 %v3813_v34  ;;  %v3814_v36 = vunpack.i.l.bf16 %v3813_v34  ;;  %v3878_v33 = vpop.permute.xlu1 %3877 }
 0x4b8   : > { %v3880_v38 = vunpack.i.h.bf16 %v3878_v33  ;;  %v3879_v39 = vunpack.i.l.bf16 %v3878_v33 }
 0x4b9   : > { %v1557_v8 = vsel %vm5716_vm15, %v3865_v19, %v3814_v36  ;;  %v1555_v43 = vsel %vm5713_vm14, %v3870_v30, %v3815_v35  ;;  %vm5720_vm15 = vmmov %vm5718_vm13  ;;  %vm5721_vm14 = vcmask 769024  }
 0x4ba   : > { %1925 = vmatpush.msrb.mxu2 %v1557_v8  ;;  %v1500_v40 = vsel %vm5717_vm0, %v3879_v39, %v3880_v38  ;;  %v1826_v18 = vsel %vm5721_vm14, %v3899_v9, %v3900_v5 }
 0x4bb   : > { %1888 = vmatpush.msrb.mxu0 %v1500_v40  ;;  %v3599_v40 = vld [vmem:[%s5694_s25 + $0x10] ss:$8 sm:$0x3] }
 0x4bc   : > { %1926 = vmatpush.msrb.mxu2 %v1555_v43  ;;  %v3598_v43 = vld [vmem:[%s5694_s25 + $0x7] ss:$8 sm:$0x3] }
 0x4bd   : > { %1889 = vmatpush.msrb.mxu0 %v1448_v44  ;;  %v2332_v44 = vperm.slane %v3599_v40, 0  ;;  %v2299_v45 = vperm.slane %v3598_v43, 0  ;;  %v2300_v61 = vperm.slane %v3598_v43, 1 }
 0x4be   : > { %v3818_v46 = vpop.permute.xlu0 %3817 }
 0x4bf   : > { %v3820_v48 = vunpack.i.h.bf16 %v3818_v46  ;;  %v3819_v49 = vunpack.i.l.bf16 %v3818_v46  ;;  %v3888_v50 = vpop.permute.xlu1 %3887  ;;  %v2333_v46 = vperm.slane %v3599_v40, 1  ;;  %2334 = vrot.lane.b32.xlu0 %v2332_v44, %s5656_s2 }
 0x4c0   : > { %v3890_v57 = vunpack.i.h.bf16 %v3888_v50  ;;  %v3889_v59 = vunpack.i.l.bf16 %v3888_v50  ;;  %v5049_v50 = vld [vmem:[%s5694_s25 + $0x5] ss:$8 sm:$0x3] }
 0x4c1   : > { %v1503_v62 = vsel %vm5719_vm10, %v3875_v29, %v3819_v49  ;;  %v1501_v2 = vsel %vm5717_vm0, %v3880_v38, %v3820_v48  ;;  %vm5722_vm10 = vmmov %vm5721_vm14 }
 0x4c2   : > { %1927 = vmatpush.msrb.mxu2 %v1503_v62  ;;  %v1446_v0 = vsel %vm5720_vm15, %v3889_v59, %v3890_v57  ;;  %vm5723_vm15 = vmmov %vm5718_vm13  ;;  %v2234_v62 = vperm.slane %v5049_v50, 1 }
 0x4c3   : > { %1890 = vmatpush.msrb.mxu0 %v1446_v0  ;;  %vm5724_vm0 = vmmov %vm5722_vm10 }
 0x4c4   : > { %1928 = vmatpush.msrb.mxu2 %v1501_v2  ;;  %vm5725_vm14 = vmmov %vm5724_vm0 }
 0x4c5   : > { %1891 = vmatpush.msrb.mxu0 %v1398_v3 }
 0x4c6   : > { %v3893_v14 = vpop.permute.xlu0 %3892 }
 0x4c7   : > { %v3895_v52 = vunpack.i.h.bf16 %v3893_v14  ;;  %v3894_v15 = vunpack.i.l.bf16 %v3893_v14  ;;  %v3903_v16 = vpop.permute.xlu1 %3902  ;;  %1892 = vmatpush.msrb.mxu0 %v1396_v11  ;;  %2303 = vrot.lane.b32.xlu0 %v2300_v61, %s5726_s5  ;;  %v3595_v61 = vld [vmem:[%s5694_s25 + $0x4] ss:$8 sm:$0x3] }
 0x4c8   : > { %v3904_v17 = vunpack.i.l.bf16 %v3903_v16  ;;  %1893 = vmatmul.f32.vlgmr.msrb.gmra.mxu0 %v1836_v4  ;;  %v3905_v23 = vunpack.i.h.bf16 %v3903_v16 }
 0x4c9   : > { %v1449_v53 = vsel %vm5718_vm13, %v3885_v37, %v3894_v15  ;;  %1911 = vmatpush.msra.mxu0 %v1826_v18  ;;  %v1447_v19 = vsel %vm5723_vm15, %v3890_v57, %v3895_v52 }
 0x4ca   : > { %1929 = vmatpush.msrb.mxu2 %v1449_v53  ;;  %v1827_v55 = vsel %vm5722_vm10, %v3900_v5, %v3904_v17  ;;  %v3597_v5 = vld [vmem:[%s5694_s25 + $0x6] ss:$8 sm:$0x3] }
 0x4cb   : > { %1951 = vmatpush.msrb.mxu1 %v1827_v55  ;;  %v2266_v9 = vperm.slane %v3597_v5, 0  ;;  %v2267_v52 = vperm.slane %v3597_v5, 1 }
 0x4cc   : > { %1930 = vmatpush.msrb.mxu2 %v1447_v19 }
 0x4ce   : > { %v3908_v21 = vpop.permute.xlu0 %3907  ;;  %1931 = vmatpush.msrb.mxu2 %v1399_v63 }
 0x4cf   : > { %v3910_v54 = vunpack.i.h.bf16 %v3908_v21  ;;  %v3909_v20 = vunpack.i.l.bf16 %v3908_v21  ;;  %2268 = vrot.lane.b32.xlu0 %v2266_v9, %s5728_s7 }
 0x4d0   : > { %1932 = vmatpush.msrb.mxu2 %v1397_v22 }
 0x4d1   : > { %1933 = vmatmul.f32.vlgmr.msrb.gmra.mxu2 %v1836_v4  ;;  %v1824_v25 = vsel %vm5724_vm0, %v3905_v23, %v3909_v20  ;;  %v1825_v47 = vsel %vm5725_vm14, %v3909_v20, %v3910_v54 }
 0x4d2   : > { %1912 = vmatpush.msra.mxu0 %v1824_v25  ;;  %1952 = vmatpush.msrb.mxu1 %v1825_v47  ;;  %v4134_v47 = vld [vmem:[#allocation2 + $0x8] sm:$0xff] }
 0x4d3   : > { %3590 = vmatmul.msk.f32.vlgmr.msra.gmra.mxu0 %vm895_vm9, %v1837_v24  ;;  %3591 = vmatmul.msk.f32.vlgmr.msrb.gmra.mxu1 %vm895_vm9, %v1837_v24  ;;  %v4133_v24 = vld [vmem:[#allocation2] sm:$0xff] }
 0x4d6   : > { %v2005_v15 = vpop.permute.xlu0 %2004 }
 0x4d7   : > { %2270 = vrot.lane.b32.xlu0 %v2267_v52, %s5728_s7 }
 0x4de   : > { %v2013_v54 = vpop.permute.xlu0 %2012 }
 0x545   : > { %v1894_v60 = vpop.f32.mrf.mxu0 }
 0x550   : > { %v1914_v58 = vpop.f32.mrf.mxu0  ;;  %v1954_v26 = vpop.f32.mrf.mxu1 }
 0x551   : > { %v5027_v1 = vadd.f32 %v1914_v58, %v1894_v60 }
 0x553   : > { %v1968_v6 = vmul.f32 %v5027_v1, %v5027_v1 }
 0x554   : > { %v1934_v27 = vpop.f32.mrf.mxu2 }
 0x555   : > { %v5029_v28 = vadd.f32 %v1954_v26, %v1934_v27 }
 0x557   : > { %v1957_v29 = vadd.f32 %v5029_v28, %v5027_v1  ;;  %v1969_v30 = vmul.f32 %v5029_v28, %v5029_v28 }
 0x559   : > { %1958 = vadd.xlane.f32.xlu2 %v1957_v29  ;;  %v1970_v41 = vadd.f32 %v1969_v30, %v1968_v6 }
 0x55b   : > { %1971 = vadd.xlane.f32.xlu1 %v1970_v41  ;;  %v5073_v41 = vld [vmem:[%s5694_s25 + $0x3] ss:$8 sm:$0x3] }
 0x571   : > { %2336 = vrot.lane.b32.xlu2 %v2333_v46, %s5656_s2  ;;  %s5732_s2 = smov 1  }
 0x574   : > { %2301 = vrot.lane.b32.xlu1 %v2299_v45, %s5726_s5 }
 0x5cc   : > { %v1959_v31 = vpop.xlane.xlu2 %1958 }
 0x5cd   : > { %v1960_v32 = vrot.slane %v1959_v31, 4 }
 0x5ce   : > { %v1972_v42 = vpop.xlane.xlu1 %1971 }
 0x5cf   : > { %v1961_v12 = vadd.f32 %v1960_v32, %v1959_v31  ;;  %v1973_v51 = vrot.slane %v1972_v42, 4  ;;  %v2167_v31 = vperm.slane %v5073_v41, 0 }
 0x5d1   : > { %v1962_v34 = vrot.slane %v1961_v12, 2  ;;  %v1974_v35 = vadd.f32 %v1973_v51, %v1972_v42 }
 0x5d3   : > { %v1975_v36 = vrot.slane %v1974_v35, 2  ;;  %v1963_v33 = vadd.f32 %v1962_v34, %v1961_v12 }
 0x5d5   : > { %v1964_v37 = vrot.slane %v1963_v33, 1  ;;  %v1976_v7 = vadd.f32 %v1975_v36, %v1974_v35 }
 0x5d7   : > { %v1965_v38 = vadd.f32 %v1964_v37, %v1963_v33  ;;  %v1977_v39 = vrot.slane %v1976_v7, 1 }
 0x5d9   : > { %3628 = vpush %v1965_v38  ;;  %v1978_v8 = vadd.f32 %v1977_v39, %v1976_v7  ;;  %v3593_v39 = vld [vmem:[%s5694_s25 + $0x2] ss:$8 sm:$0x3] }
 0x5da   : > { %v2135_v43 = vperm.slane %v3593_v39, 1 }
 0x5db   : > { %3630 = vpush %v1978_v8  ;;  %v2233_v8 = vperm.slane %v5049_v50, 0 }
 0x60a   : > { %s3629_s1 = spop %3628 }
 0x60b   : > { %v1967_v48 = vstv %s3629_s1  ;;  %s5727_s1 = smov 18  }
 0x60c   : > { %v1981_v49 = vmul.f32 0.00048828125, %v1967_v48  ;;  %s3631_s6 = spop %3630  ;;  %2237 = vrot.lane.b32.xlu1 %v2234_v62, %s5727_s1  ;;  %2235 = vrot.lane.b32.xlu2 %v2233_v8, %s5727_s1  ;;  %v2201_v62 = vperm.slane %v3595_v61, 1 }
 0x60d   : > { %v1980_v56 = vstv %s3631_s6  ;;  %s5730_s6 = smov 2  }
 0x60e   : > { %v1982_v57 = vmul.f32 0.00048828125, %v1980_v56  ;;  %v1983_v59 = vmul.f32 %v1981_v49, %v1981_v49  ;;  %v1986_v18 = vsub.f32 %v5027_v1, %v1981_v49  ;;  %v1987_v53 = vsub.f32 %v5029_v28, %v1981_v49 }
 0x610   : > { %v1984_v0 = vsub.f32 %v1982_v57, %v1983_v59 }
 0x612   : > { %v1985_v2 = vmax.f32 %v1984_v0, 0.0 }
 0x614   : > { %v1988_v3 = vadd.f32 1e-05, %v1985_v2  ;;  %2169 = vrot.lane.b32.xlu1 %v2167_v31, %s5729_s0  ;;  %2204 = vrot.lane.b32.xlu2 %v2201_v62, %s5731_s26 }
 0x616   : > { %4091 = vrsqrt.f32 %v1988_v3  ;;  %vm1995_vm10 = vweird.f32 %v1988_v3 }
 0x61c   : > { %v4092_v11 = vpop.eup %4091  ;;  %2138 = vrot.lane.b32.xlu1 %v2135_v43, %s5730_s6 }
 0x61d   : > { %v1990_v4 = vmul.f32 %v4092_v11, %v1988_v3  ;;  %vm1996_vm13 = vweird.f32 %v4092_v11 }
 0x61e   : > { %vm1997_vm15 = vmor %vm1995_vm10, %vm1996_vm13  ;;  %vm5733_vm13 = vcmask 769024  }
 0x61f   : > { %v1991_v14 = vmul.f32 %v4092_v11, %v1990_v4  ;;  %vm5734_vm10 = vmmov %vm5733_vm13 }
 0x621   : > { %v1992_v16 = vmul.f32 0.5, %v1991_v14 }
 0x623   : > { %v1993_v13 = vsub.f32 1.5, %v1992_v16  ;;  %v2134_v16 = vperm.slane %v3593_v39, 0 }
 0x625   : > { %v1994_v17 = vmul.f32 %v4092_v11, %v1993_v13  ;;  %2136 = vrot.lane.b32.xlu2 %v2134_v16, %s5730_s6 }
 0x627   : > { %v1998_v55 = vsel %vm1997_vm15, %v4092_v11, %v1994_v17  ;;  %vm5735_vm15 = vcmask 900096  }
 0x628   : > { %v1999_v19 = vmul.f32 %v1998_v55, %v1986_v18  ;;  %v2000_v63 = vmul.f32 %v1998_v55, %v1987_v53 }
 0x62a   : > { %v2007_v21 = vmul.f32 %v2005_v15, %v1999_v19  ;;  %v2008_v22 = vmul.f32 %v2005_v15, %v2000_v63 }
 0x62c   : > { %v2015_v20 = vadd.f32 %v2013_v54, %v2007_v21  ;;  %v2016_v23 = vadd.f32 %v2013_v54, %v2008_v22  ;;  %v3592_v22 = vld [vmem:[%s5694_s25 + $0x1] ss:$8 sm:$0x3] }
 0x62d   : > { %v2102_v54 = vperm.slane %v3592_v22, 1 }
 0x62e   : > { %v5061_v25 = vadd.f32 %v4133_v24, %v2015_v20  ;;  %v5063_v60 = vadd.f32 %v4134_v47, %v2016_v23  ;;  %v2168_v47 = vperm.slane %v5073_v41, 1 }
 0x62f   : > { %2105 = vrot.lane.b32.xlu2 %v2102_v54, %s5732_s2 }
 0x630   : > { %v2019_v58 = vmul.f32 0.70710677, %v5061_v25  ;;  %v5067_v26 = vmul.f32 0.70710677, %v5063_v60  ;;  %v2065_v53 = vmul.f32 0.5, %v5061_v25  ;;  %v2066_v23 = vmul.f32 0.5, %v5063_v60  ;;  %v2337_v60 = vpop.permute.xlu2 %2336 }
 0x631   : > { %v2200_v25 = vperm.slane %v3595_v61, 0 }
 0x632   : > { %v2025_v1 = vand.u32 2147483647, %v2019_v58  ;;  %v2026_v27 = vand.u32 2147483647, %v5067_v26  ;;  %vm2021_vm0 = vcmp.ge.f32.partialorder %v2019_v58, 0.0  ;;  %vm2022_vm14 = vcmp.ge.f32.partialorder %v5067_v26, 0.0  ;;  %v2335_v26 = vpop.permute.xlu0 %2334 }
 0x633   : > { %v2023_v13 = vsel %vm2021_vm0, 1.0, %v4387_v10  ;;  %v2024_v19 = vsel %vm2022_vm14, 1.0, %v4387_v10  ;;  %v2101_v58 = vperm.slane %v3592_v22, 0  ;;  %vm5736_vm0 = vmmov %vm5735_vm15  ;;  %vm5737_vm14 = vcmask 908288  }
 0x634   : > { %v2027_v28 = vmul.f32 0.3275911, %v2025_v1  ;;  %v2028_v29 = vmul.f32 0.3275911, %v2026_v27  ;;  %v2051_v42 = vmul.f32 %v2025_v1, %v2025_v1  ;;  %v2052_v34 = vmul.f32 %v2026_v27, %v2026_v27 }
 0x636   : > { %v2029_v6 = vadd.f32 1.0, %v2027_v28  ;;  %v2030_v30 = vadd.f32 1.0, %v2028_v29  ;;  %v2053_v33 = vsub.f32 0.0, %v2051_v42  ;;  %v2054_v38 = vsub.f32 0.0, %v2052_v34 }
 0x638   : > { %4093 = vrcp.f32 %v2029_v6  ;;  %v2055_v45 = vmul.f32 1.442695, %v2053_v33  ;;  %v2057_v49 = vmul.f32 1.442695, %v2054_v38 }
 0x639   : > { %4095 = vrcp.f32 %v2030_v30  ;;  %v2302_v30 = vpop.permute.xlu1 %2301 }
 0x63a   : > { %4097 = vpow2.f32 %v2055_v45  ;;  %v2304_v1 = vpop.permute.xlu0 %2303 }
 0x63b   : > { %4099 = vpow2.f32 %v2057_v49 }
 0x63e   : > { %v4094_v32 = vpop.eup %4093 }
 0x63f   : > { %v4096_v12 = vpop.eup %4095  ;;  %v2033_v51 = vmul.f32 1.0614054, %v4094_v32 }
 0x640   : > { %v2034_v35 = vmul.f32 1.0614054, %v4096_v12  ;;  %v4098_v9 = vpop.eup %4097 }
 0x641   : > { %v2035_v36 = vadd.f32 -1.4531521, %v2033_v51  ;;  %v4100_v4 = vpop.eup %4099 }
 0x642   : > { %v2036_v37 = vadd.f32 -1.4531521, %v2034_v35  ;;  %v2269_v27 = vpop.permute.xlu0 %2268 }
 0x643   : > { %v2037_v7 = vmul.f32 %v4094_v32, %v2035_v36 }
 0x644   : > { %v2038_v40 = vmul.f32 %v4096_v12, %v2036_v37  ;;  %v2338_v37 = vsel %vm704_vm1, %v2335_v26, %v2337_v60 }
 0x645   : > { %v2039_v44 = vadd.f32 1.4214138, %v2037_v7  ;;  %v2305_v7 = vsel %vm1038_vm5, %v2302_v30, %v2304_v1 }
 0x646   : > { %v2040_v46 = vadd.f32 1.4214138, %v2038_v40 }
 0x647   : > { %v2041_v48 = vmul.f32 %v4094_v32, %v2039_v44 }
 0x648   : > { %v2042_v56 = vmul.f32 %v4096_v12, %v2040_v46 }
 0x649   : > { %v2043_v57 = vadd.f32 -0.28449672, %v2041_v48 }
 0x64a   : > { %v2044_v59 = vadd.f32 -0.28449672, %v2042_v56  ;;  %v2271_v28 = vpop.permute.xlu0 %2270 }
 0x64b   : > { %v2045_v50 = vmul.f32 %v4094_v32, %v2043_v57 }
 0x64c   : > { %v2046_v0 = vmul.f32 %v4096_v12, %v2044_v59  ;;  %v2272_v59 = vsel %vm1002_vm7, %v2269_v27, %v2271_v28 }
 0x64d   : > { %v2047_v2 = vadd.f32 0.2548296, %v2045_v50 }
 0x64e   : > { %v2048_v3 = vadd.f32 0.2548296, %v2046_v0 }
 0x64f   : > { %v2049_v5 = vmul.f32 %v4094_v32, %v2047_v2 }
 0x650   : > { %v2050_v11 = vmul.f32 %v4096_v12, %v2048_v3 }
 0x651   : > { %v2059_v14 = vmul.f32 %v4098_v9, %v2049_v5 }
 0x652   : > { %v2060_v52 = vmul.f32 %v4100_v4, %v2050_v11 }
 0x653   : > { %v2061_v15 = vsub.f32 1.0, %v2059_v14 }
 0x654   : > { %v2062_v18 = vsub.f32 1.0, %v2060_v52 }
 0x655   : > { %v2063_v17 = vmul.f32 %v2061_v15, %v2023_v13 }
 0x656   : > { %v2064_v21 = vmul.f32 %v2062_v18, %v2024_v19 }
 0x657   : > { %v2067_v55 = vadd.f32 1.0, %v2063_v17 }
 0x658   : > { %v2068_v20 = vadd.f32 1.0, %v2064_v21 }
 0x659   : > { %v5092_v63 = vmul.f32 %v2067_v55, %v2065_v53 }
 0x65a   : > { %v5101_v24 = vmul.f32 %v2068_v20, %v2066_v23 }
 0x65b   : > { %2073 = vrot.lane.b32.xlu0 %v5092_v63, %s5731_s26 }
 0x663   : > { %2075 = vrot.lane.b32.xlu0 %v5101_v24, %s5731_s26 }
 0x666   : > { %v2236_v6 = vpop.permute.xlu2 %2235 }
 0x66b   : > { %2202 = vrot.lane.b32.xlu0 %v2200_v25, %s5731_s26 }
 0x66e   : > { %v2205_v41 = vpop.permute.xlu2 %2204 }
 0x673   : > { %2171 = vrot.lane.b32.xlu0 %v2168_v47, %s5729_s0 }
 0x67b   : > { %2103 = vrot.lane.b32.xlu0 %v2101_v58, %s5732_s2 }
 0x67e   : > { %v2238_v32 = vpop.permute.xlu1 %2237 }
 0x67f   : > { %v2137_v44 = vpop.permute.xlu2 %2136  ;;  %v2239_v49 = vsel %vm966_vm4, %v2236_v6, %v2238_v32 }
 0x686   : > { %v2170_v43 = vpop.permute.xlu1 %2169 }
 0x689   : > { %v2106_v4 = vpop.permute.xlu2 %2105 }
 0x68e   : > { %v2139_v9 = vpop.permute.xlu1 %2138 }
 0x68f   : > { %v2140_v13 = vsel %vm859_vm6, %v2137_v44, %v2139_v9 }
 0x6cd   : > { %v2074_v29 = vpop.permute.xlu0 %2073 }
 0x6ce   : > { %2081 = vst.msk [vmem:[#allocation3] sm:$0xff] %vm795_vm2, %v2074_v29 }
 0x6d5   : > { %v2076_v31 = vpop.permute.xlu0 %2075  ;;  %v5116_v36 = vld [vmem:[#allocation3] sm:$0xff] }
 0x6d6   : > { %2083 = vst.msk [vmem:[#allocation3 + $0x10] sm:$0xff] %vm790_vm3, %v2076_v31  ;;  %v5119_v33 = vsel %vm790_vm3, %v2074_v29, %v2076_v31  ;;  %v2309_v38 = vmul.f32 %v2302_v30, %v5116_v36  ;;  %v2342_v8 = vmul.f32 %v2335_v26, %v5116_v36  ;;  %v2243_v62 = vmul.f32 %v2236_v6, %v5116_v36 }
 0x6d7   : > { %v2310_v39 = vmul.f32 %v2305_v7, %v5119_v33  ;;  %v2343_v40 = vmul.f32 %v2338_v37, %v5119_v33  ;;  %v2244_v0 = vmul.f32 %v2239_v49, %v5119_v33  ;;  %v2276_v2 = vmul.f32 %v2269_v27, %v5116_v36 }
 0x6d8   : > { %v2277_v3 = vmul.f32 %v2272_v59, %v5119_v33  ;;  %v2144_v55 = vmul.f32 %v5116_v36, %v2137_v44  ;;  %v2145_v19 = vmul.f32 %v2140_v13, %v5119_v33  ;;  %v2177_v21 = vmul.f32 %v2170_v43, %v5116_v36  ;;  %v2360_v13 = vld [vmem:[#allocation11] sm:$0xff] }
 0x6d9   : > { %v3916_v46 = vpack.i.bf16 %v2310_v39, %v2309_v38  ;;  %v3911_v48 = vpack.i.bf16 %v2343_v40, %v2342_v8  ;;  %v3926_v14 = vpack.i.bf16 %v2244_v0, %v2243_v62 }
 0x6da   : > { %v3921_v16 = vpack.i.bf16 %v2277_v3, %v2276_v2  ;;  %v3941_v20 = vpack.i.bf16 %v2145_v19, %v2144_v55  ;;  %v2086_v2 = vld [vmem:[%s5694_s25] ss:$8 sm:$0x3] }
 0x6db   : > { %v2089_v19 = vperm.slane %v2086_v2, 1 }
 0x6dd   : > { %v5111_v42 = vld [vmem:[#allocation3 + $0x10] sm:$0xff]  ;;  %v2203_v12 = vpop.permute.xlu0 %2202 }
 0x6de   : > { %v2311_v51 = vmul.f32 %v2304_v1, %v5111_v42  ;;  %v2278_v34 = vmul.f32 %v2271_v28, %v5111_v42  ;;  %v2344_v35 = vmul.f32 %v2337_v60, %v5111_v42  ;;  %v2206_v56 = vsel %vm790_vm3, %v2203_v12, %v2205_v41 }
 0x6df   : > { %v2245_v57 = vmul.f32 %v2238_v32, %v5111_v42  ;;  %v2210_v61 = vmul.f32 %v2203_v12, %v5116_v36  ;;  %v2211_v50 = vmul.f32 %v2206_v56, %v5119_v33  ;;  %v2212_v25 = vmul.f32 %v2205_v41, %v5111_v42 }
 0x6e0   : > { %2319 = vrot.lane.b32.xlu0 %v2311_v51, %s5699_s22  ;;  %2286 = vrot.lane.b32.xlu1 %v2278_v34, %s5700_s18  ;;  %v2146_v47 = vmul.f32 %v2139_v9, %v5111_v42  ;;  %v2113_v58 = vmul.f32 %v5111_v42, %v2106_v4 }
 0x6e1   : > { %2352 = vrot.lane.b32.xlu2 %v2344_v35, %s5706_s17  ;;  %v3931_v11 = vpack.i.bf16 %v2211_v50, %v2210_v61 }
 0x6e5   : > { %v2172_v45 = vpop.permute.xlu0 %2171 }
 0x6e6   : > { %v2173_v52 = vsel %vm895_vm9, %v2170_v43, %v2172_v45  ;;  %v2179_v23 = vmul.f32 %v2172_v45, %v5111_v42 }
 0x6e7   : > { %v2178_v17 = vmul.f32 %v2173_v52, %v5119_v33 }
 0x6e8   : > { %3917 = vrot.lane.b32.xlu0 %v3916_v46, %s5699_s22  ;;  %3912 = vrot.lane.b32.xlu1 %v3911_v48, %s5706_s17 }
 0x6e9   : > { %2253 = vrot.lane.b32.xlu2 %v2245_v57, %s5701_s20  ;;  %v3936_v54 = vpack.i.bf16 %v2178_v17, %v2177_v21 }
 0x6ed   : > { %v2104_v5 = vpop.permute.xlu0 %2103 }
 0x6ee   : > { %v2107_v15 = vsel %vm823_vm8, %v2104_v5, %v2106_v4  ;;  %v2111_v18 = vmul.f32 %v5116_v36, %v2104_v5 }
 0x6ef   : > { %v2112_v53 = vmul.f32 %v2107_v15, %v5119_v33 }
 0x6f0   : > { %3927 = vrot.lane.b32.xlu1 %v3926_v14, %s5701_s20  ;;  %3932 = vrot.lane.b32.xlu0 %v3931_v11, %s5702_s29  ;;  %v2088_v11 = vperm.slane %v2086_v2, 0  ;;  %v3610_v2 = vld [vmem:[%s5694_s25 + $0x7] ss:$8 sm:$0x3] }
 0x6f1   : > { %3922 = vrot.lane.b32.xlu2 %v3921_v16, %s5700_s18  ;;  %v3946_v22 = vpack.i.bf16 %v2112_v53, %v2111_v18 }
 0x6f2   : > { %v2092_v16 = vmul.f32 %v5116_v36, %v2088_v11  ;;  %v2093_v36 = vmul.f32 %v2089_v19, %v5119_v33  ;;  %v2503_v33 = vld [vmem:[%s5603_s13 + $0x8] sm:$0xff] }
 0x6f3   : > { %v3609_v11 = vld [vmem:[%s5694_s25 + $0x6] ss:$8 sm:$0x3] }
 0x6f8   : > { %3937 = vrot.lane.b32.xlu1 %v3936_v54, %s5703_s11  ;;  %3947 = vrot.lane.b32.xlu0 %v3946_v22, %s5705_s3  ;;  %v2361_v22 = vld [vmem:[#allocation11 + $0x8] sm:$0xff] }
 0x6f9   : > { %3942 = vrot.lane.b32.xlu2 %v3941_v20, %s5704_s27  ;;  %v2487_v20 = vld [vmem:[%s5602_s12 + $0x8] sm:$0xff] }
 0x700   : > { %2220 = vrot.lane.b32.xlu1 %v2212_v25, %s5702_s29  ;;  %2187 = vrot.lane.b32.xlu0 %v2179_v23, %s5703_s11  ;;  %v2486_v23 = vld [vmem:[%s5602_s12] sm:$0xff] }
 0x701   : > { %2154 = vrot.lane.b32.xlu2 %v2146_v47, %s5704_s27 }
 0x708   : > { %2121 = vrot.lane.b32.xlu1 %v2113_v58, %s5705_s3 }
 0x710   : > { %2495 = vperm.xlu1 %3951, %v2487_v20  }
 0x718   : > { %2490 = vperm.xlu1 %3951, %v2486_v23  }
 0x720   : > { %2511 = vperm.xlu1 %3951, %v2503_v33  }
 0x73b   : > { %v2353_v26 = vpop.permute.xlu2 %2352 }
 0x743   : > { %v2254_v1 = vpop.permute.xlu2 %2253 }
 0x74b   : > { %v3923_v60 = vpop.permute.xlu2 %3922 }
 0x74c   : > { %v3925_v12 = vunpack.i.h.bf16 %v3923_v60  ;;  %v3924_v51 = vunpack.i.l.bf16 %v3923_v60 }
 0x74e   : > { %v2288_v7 = vsel %vm5658_vm12, %v3924_v51, %v3925_v12 }
 0x752   : > { %v2287_v27 = vpop.permute.xlu1 %2286  ;;  %v2320_v28 = vpop.permute.xlu0 %2319 }
 0x753   : > { %v2289_v38 = vsel %vm5658_vm12, %v3925_v12, %v2287_v27  ;;  %v3943_v56 = vpop.permute.xlu2 %3942 }
 0x754   : > { %v3945_v61 = vunpack.i.h.bf16 %v3943_v56  ;;  %v3944_v50 = vunpack.i.l.bf16 %v3943_v56 }
 0x75a   : > { %v3918_v29 = vpop.permute.xlu0 %3917  ;;  %v3913_v6 = vpop.permute.xlu1 %3912 }
 0x75b   : > { %v3920_v30 = vunpack.i.h.bf16 %v3918_v29  ;;  %v3919_v31 = vunpack.i.l.bf16 %v3918_v29  ;;  %v3915_v32 = vunpack.i.h.bf16 %v3913_v6  ;;  %v3914_v41 = vunpack.i.l.bf16 %v3913_v6  ;;  %v2155_v18 = vpop.permute.xlu2 %2154 }
 0x75d   : > { %v2354_v34 = vsel %vm5733_vm13, %v3914_v41, %v3915_v32  ;;  %v2355_v35 = vsel %vm5734_vm10, %v3915_v32, %v2353_v26  ;;  %v2321_v42 = vsel %vm1055_vm11, %v3919_v31, %v3920_v30  ;;  %v2322_v37 = vsel %vm1055_vm11, %v3920_v30, %v2320_v28  ;;  %v2502_v26 = vld [vmem:[%s5603_s13] sm:$0xff] }
 0x75e   : > { %2393 = vmatpush.msrb.mxu3 %v2354_v34  ;;  %2416 = vmatpush.msra.mxu1 %v2355_v35  ;;  %vm5738_vm13 = vcmask 916480   ;;  %vm5739_vm10 = vcmask 1031168  }
 0x75f   : > { %v2156_v4 = vsel %vm5739_vm10, %v3944_v50, %v3945_v61  ;;  %v2157_v55 = vsel %vm5739_vm10, %v3945_v61, %v2155_v18  ;;  %2506 = vperm.xlu1 %3951, %v2502_v26   ;;  %v3608_v18 = vld [vmem:[%s5694_s25 + $0x5] ss:$8 sm:$0x3] }
 0x760   : > { %2394 = vmatpush.msrb.mxu3 %v2321_v42  ;;  %2417 = vmatpush.msra.mxu1 %v2322_v37 }
 0x762   : > { %v3928_v39 = vpop.permute.xlu1 %3927  ;;  %v3933_v8 = vpop.permute.xlu0 %3932  ;;  %2395 = vmatpush.msrb.mxu3 %v2288_v7  ;;  %2418 = vmatpush.msra.mxu1 %v2289_v38 }
 0x763   : > { %v3930_v40 = vunpack.i.h.bf16 %v3928_v39  ;;  %v3929_v43 = vunpack.i.l.bf16 %v3928_v39  ;;  %v3935_v44 = vunpack.i.h.bf16 %v3933_v8  ;;  %v3934_v45 = vunpack.i.l.bf16 %v3933_v8 }
 0x765   : > { %v2255_v46 = vsel %vm5735_vm15, %v3929_v43, %v3930_v40  ;;  %v2256_v48 = vsel %vm5736_vm0, %v3930_v40, %v2254_v1  ;;  %v2222_v49 = vsel %vm5737_vm14, %v3934_v45, %v3935_v44  ;;  %vm5740_vm15 = vcmask 1039360   ;;  %vm5741_vm0 = vmmov %vm5737_vm14 }
 0x766   : > { %2396 = vmatpush.msrb.mxu3 %v2255_v46  ;;  %2419 = vmatpush.msra.mxu1 %v2256_v48  ;;  %vm5742_vm14 = vcmask 588800  }
 0x768   : > { %2397 = vmatpush.msrb.mxu3 %v2222_v49 }
 0x76a   : > { %v3938_v57 = vpop.permute.xlu1 %3937  ;;  %v3948_v59 = vpop.permute.xlu0 %3947 }
 0x76b   : > { %v3940_v62 = vunpack.i.h.bf16 %v3938_v57  ;;  %v3939_v0 = vunpack.i.l.bf16 %v3938_v57  ;;  %v3950_v3 = vunpack.i.h.bf16 %v3948_v59  ;;  %v3949_v5 = vunpack.i.l.bf16 %v3948_v59 }
 0x76d   : > { %v2189_v9 = vsel %vm5738_vm13, %v3939_v0, %v3940_v62  ;;  %v2123_v14 = vsel %vm5740_vm15, %v3949_v5, %v3950_v3 }
 0x76e   : > { %2398 = vmatpush.msrb.mxu3 %v2189_v9 }
 0x770   : > { %2399 = vmatpush.msrb.mxu3 %v2156_v4 }
 0x772   : > { %v2221_v52 = vpop.permute.xlu1 %2220  ;;  %v2188_v15 = vpop.permute.xlu0 %2187  ;;  %2400 = vmatpush.msrb.mxu3 %v2123_v14  ;;  %v2999_v14 = vperm.slane %v3610_v2, 1 }
 0x773   : > { %v2223_v17 = vsel %vm5741_vm0, %v3935_v44, %v2221_v52  ;;  %v2190_v53 = vsel %vm5738_vm13, %v3940_v62, %v2188_v15  ;;  %vm5743_vm0 = vmmov %vm5742_vm14  ;;  %v2944_v52 = vperm.slane %v3609_v11, 0 }
 0x774   : > { %2401 = vmatpush.msrb.mxu3 %v2092_v16  ;;  %2420 = vmatpush.msra.mxu1 %v2223_v17  ;;  %vm5744_vm12 = vmmov %vm5743_vm0 }
 0x775   : > { %3600 = vmatmul.msk.f32.vlgmr.msrb.gmra.mxu3 %vm5742_vm14, %v2360_v13  ;;  %vm5745_vm14 = vmmov %vm5743_vm0 }
 0x776   : > { %2421 = vmatpush.msra.mxu1 %v2190_v53 }
 0x778   : > { %2422 = vmatpush.msra.mxu1 %v2157_v55  ;;  %v2891_v55 = vperm.slane %v3608_v18, 1 }
 0x77a   : > { %v2122_v21 = vpop.permute.xlu1 %2121 }
 0x77b   : > { %v2124_v54 = vsel %vm5740_vm15, %v3950_v3, %v2122_v21  ;;  %v2998_v3 = vperm.slane %v3610_v2, 0 }
 0x77c   : > { %2423 = vmatpush.msra.mxu1 %v2124_v54 }
 0x77d   : > { %3601 = vmatmul.msk.f32.gmra.mxu3 %vm5743_vm0, %v2361_v22  ;;  %3000 = vrot.lane.b32.xlu1 %v2998_v3, %s5726_s5 }
 0x77e   : > { %2424 = vmatpush.msra.mxu1 %v2093_v36 }
 0x77f   : > { %3602 = vmatmul.msk.f32.vlgmr.msra.gmra.mxu1 %vm5744_vm12, %v2360_v13 }
 0x782   : > { %v2496_v56 = vpop.permute.xlu1 %2495 }
 0x785   : > { %2946 = vrot.lane.b32.xlu1 %v2944_v52, %s5728_s7 }
 0x787   : > { %3603 = vmatmul.msk.f32.gmra.mxu1 %vm5745_vm14, %v2361_v22 }
 0x78a   : > { %v2491_v5 = vpop.permute.xlu1 %2490 }
 0x78d   : > { %2894 = vrot.lane.b32.xlu1 %v2891_v55, %s5727_s1 }
 0x792   : > { %v2512_v13 = vpop.permute.xlu1 %2511 }
 0x7f8   : > { %v5200_v25 = vpop.f32.mrf.mxu3 }
 0x7f9   : > { %v2445_v27 = vmul.f32 %v5200_v25, %v5200_v25 }
 0x7fc   : > { %v5202_v47 = vpop.f32.mrf.mxu1 }
 0x7fd   : > { %v2446_v58 = vmul.f32 %v5202_v47, %v5202_v47  ;;  %v2432_v28 = vadd.f32 %v5202_v47, %v5200_v25 }
 0x7ff   : > { %v2449_v6 = vadd.f32 %v2446_v58, %v2445_v27 }
 0x800   : > { %v5209_v1 = vpop.f32.mrf.mxu3 }
 0x801   : > { %v2447_v60 = vmul.f32 %v5209_v1, %v5209_v1  ;;  %v2433_v29 = vadd.f32 %v2432_v28, %v5209_v1 }
 0x803   : > { %v2450_v41 = vadd.f32 %v2449_v6, %v2447_v60 }
 0x804   : > { %v5218_v30 = vpop.f32.mrf.mxu1 }
 0x805   : > { %v2434_v31 = vadd.f32 %v2433_v29, %v5218_v30  ;;  %v2448_v32 = vmul.f32 %v5218_v30, %v5218_v30  ;;  %v2507_v29 = vpop.permute.xlu1 %2506 }
 0x807   : > { %2435 = vadd.xlane.f32.xlu0 %v2434_v31  ;;  %v2451_v12 = vadd.f32 %v2450_v41, %v2448_v32  ;;  %v2890_v31 = vperm.slane %v3608_v18, 0  ;;  %v2945_v41 = vperm.slane %v3609_v11, 1 }
 0x809   : > { %2452 = vadd.xlane.f32.xlu2 %v2451_v12 }
 0x81b   : > { %3002 = vrot.lane.b32.xlu0 %v2999_v14, %s5726_s5 }
 0x821   : > { %2948 = vrot.lane.b32.xlu2 %v2945_v41, %s5728_s7 }
 0x823   : > { %2892 = vrot.lane.b32.xlu0 %v2890_v31, %s5727_s1 }
 0x87a   : > { %v2436_v51 = vpop.xlane.xlu0 %2435 }
 0x87b   : > { %v2437_v34 = vrot.slane %v2436_v51, 4 }
 0x87c   : > { %v2453_v35 = vpop.xlane.xlu2 %2452 }
 0x87d   : > { %v2438_v42 = vadd.f32 %v2437_v34, %v2436_v51  ;;  %v2454_v37 = vrot.slane %v2453_v35, 4 }
 0x87f   : > { %v2439_v7 = vrot.slane %v2438_v42, 2  ;;  %v2455_v38 = vadd.f32 %v2454_v37, %v2453_v35 }
 0x881   : > { %v2456_v39 = vrot.slane %v2455_v38, 2  ;;  %v2440_v8 = vadd.f32 %v2439_v7, %v2438_v42 }
 0x883   : > { %v2441_v40 = vrot.slane %v2440_v8, 1  ;;  %v2457_v43 = vadd.f32 %v2456_v39, %v2455_v38 }
 0x885   : > { %v2442_v44 = vadd.f32 %v2441_v40, %v2440_v8  ;;  %v2458_v45 = vrot.slane %v2457_v43, 1 }
 0x887   : > { %3632 = vpush %v2442_v44  ;;  %v2459_v46 = vadd.f32 %v2458_v45, %v2457_v43 }
 0x889   : > { %3634 = vpush %v2459_v46 }
 0x8b8   : > { %s3633_s9 = spop %3632 }
 0x8b9   : > { %v2444_v48 = vstv %s3633_s9 }
 0x8ba   : > { %v2462_v49 = vmul.f32 0.00024414063, %v2444_v48  ;;  %s3635_s10 = spop %3634 }
 0x8bb   : > { %v2461_v57 = vstv %s3635_s10 }
 0x8bc   : > { %v2463_v59 = vmul.f32 0.00024414063, %v2461_v57  ;;  %v2464_v61 = vmul.f32 %v2462_v49, %v2462_v49  ;;  %v2469_v19 = vsub.f32 %v5209_v1, %v2462_v49  ;;  %v2470_v21 = vsub.f32 %v5218_v30, %v2462_v49 }
 0x8bd   : > { %v2467_v22 = vsub.f32 %v5200_v25, %v2462_v49  ;;  %v2468_v54 = vsub.f32 %v5202_v47, %v2462_v49  ;;  %v5251_v47 = vld [vmem:[%s5694_s25 + $0x3] ss:$8 sm:$0x3]  ;;  %v3607_v49 = vld [vmem:[%s5694_s25 + $0x4] ss:$8 sm:$0x3] }
 0x8be   : > { %v2465_v50 = vsub.f32 %v2463_v59, %v2464_v61  ;;  %v2782_v32 = vperm.slane %v5251_v47, 0  ;;  %v2837_v57 = vperm.slane %v3607_v49, 1 }
 0x8c0   : > { %v2466_v62 = vmax.f32 %v2465_v50, 0.0  ;;  %2784 = vrot.lane.b32.xlu1 %v2782_v32, %s5729_s0  ;;  %2840 = vrot.lane.b32.xlu0 %v2837_v57, %s5731_s26 }
 0x8c2   : > { %v2471_v0 = vadd.f32 1e-05, %v2466_v62 }
 0x8c4   : > { %4101 = vrsqrt.f32 %v2471_v0  ;;  %vm2478_vm13 = vweird.f32 %v2471_v0 }
 0x8ca   : > { %v4102_v9 = vpop.eup %4101 }
 0x8cb   : > { %v2473_v4 = vmul.f32 %v4102_v9, %v2471_v0  ;;  %vm2479_vm12 = vweird.f32 %v4102_v9 }
 0x8cc   : > { %vm2480_vm10 = vmor %vm2478_vm13, %vm2479_vm12 }
 0x8cd   : > { %v2474_v15 = vmul.f32 %v4102_v9, %v2473_v4 }
 0x8cf   : > { %v2475_v16 = vmul.f32 0.5, %v2474_v15 }
 0x8d1   : > { %v2476_v17 = vsub.f32 1.5, %v2475_v16 }
 0x8d3   : > { %v2477_v53 = vmul.f32 %v4102_v9, %v2476_v17 }
 0x8d5   : > { %v2481_v36 = vsel %vm2480_vm10, %v4102_v9, %v2477_v53  ;;  %vm5757_vm10 = vcmask 908288  }
 0x8d6   : > { %v2484_v20 = vmul.f32 %v2481_v36, %v2469_v19  ;;  %v2485_v23 = vmul.f32 %v2481_v36, %v2470_v21  ;;  %v2482_v33 = vmul.f32 %v2481_v36, %v2467_v22  ;;  %v2483_v58 = vmul.f32 %v2481_v36, %v2468_v54 }
 0x8d8   : > { %v2500_v26 = vmul.f32 %v2496_v56, %v2484_v20  ;;  %v2501_v27 = vmul.f32 %v2496_v56, %v2485_v23  ;;  %v2498_v28 = vmul.f32 %v2491_v5, %v2482_v33  ;;  %v2499_v60 = vmul.f32 %v2491_v5, %v2483_v58 }
 0x8d9   : > { %v2836_v56 = vperm.slane %v3607_v49, 0 }
 0x8da   : > { %v5240_v6 = vadd.f32 %v2512_v13, %v2500_v26  ;;  %v5242_v1 = vadd.f32 %v2512_v13, %v2501_v27  ;;  %v5244_v30 = vadd.f32 %v2507_v29, %v2498_v28  ;;  %v5246_v25 = vadd.f32 %v2507_v29, %v2499_v60 }
 0x8db   : > { %2838 = vrot.lane.b32.xlu2 %v2836_v56, %s5731_s26 }
 0x8dc   : > { %v5255_v12 = vmul.f32 0.70710677, %v5240_v6  ;;  %v5258_v51 = vmul.f32 0.70710677, %v5242_v1  ;;  %v5261_v34 = vmul.f32 0.70710677, %v5244_v30 }
 0x8dd   : > { %v5264_v35 = vmul.f32 0.70710677, %v5246_v25 }
 0x8de   : > { %v2532_v42 = vand.u32 2147483647, %v5255_v12  ;;  %v2533_v37 = vand.u32 2147483647, %v5258_v51  ;;  %v2530_v39 = vand.u32 2147483647, %v5261_v34 }
 0x8df   : > { %v2531_v8 = vand.u32 2147483647, %v5264_v35  ;;  %vm2524_vm15 = vcmp.ge.f32.partialorder %v5255_v12, 0.0  ;;  %vm2525_vm0 = vcmp.ge.f32.partialorder %v5258_v51, 0.0  ;;  %vm2522_vm14 = vcmp.ge.f32.partialorder %v5261_v34, 0.0 }
 0x8e0   : > { %v2536_v7 = vmul.f32 0.3275911, %v2532_v42  ;;  %v2537_v38 = vmul.f32 0.3275911, %v2533_v37  ;;  %v2534_v44 = vmul.f32 0.3275911, %v2530_v39  ;;  %v2584_v59 = vmul.f32 %v2532_v42, %v2532_v42 }
 0x8e1   : > { %v2535_v45 = vmul.f32 0.3275911, %v2531_v8  ;;  %v2585_v62 = vmul.f32 %v2533_v37, %v2533_v37  ;;  %v2582_v4 = vmul.f32 %v2530_v39, %v2530_v39  ;;  %v2583_v15 = vmul.f32 %v2531_v8, %v2531_v8 }
 0x8e2   : > { %v2540_v40 = vadd.f32 1.0, %v2536_v7  ;;  %v2541_v43 = vadd.f32 1.0, %v2537_v38  ;;  %v2538_v46 = vadd.f32 1.0, %v2534_v44  ;;  %v2588_v3 = vsub.f32 0.0, %v2584_v59 }
 0x8e3   : > { %v2539_v48 = vadd.f32 1.0, %v2535_v45  ;;  %v2589_v52 = vsub.f32 0.0, %v2585_v62  ;;  %v2586_v22 = vsub.f32 0.0, %v2582_v4  ;;  %v2587_v20 = vsub.f32 0.0, %v2583_v15 }
 0x8e4   : > { %4103 = vrcp.f32 %v2540_v40  ;;  %v2594_v53 = vmul.f32 1.442695, %v2588_v3  ;;  %vm2523_vm12 = vcmp.ge.f32.partialorder %v5264_v35, 0.0 }
 0x8e5   : > { %4105 = vrcp.f32 %v2541_v43  ;;  %v2596_v36 = vmul.f32 1.442695, %v2589_v52  ;;  %v2590_v29 = vmul.f32 1.442695, %v2586_v22  ;;  %v2592_v32 = vmul.f32 1.442695, %v2587_v20 }
 0x8e6   : > { %4107 = vrcp.f32 %v2538_v46  ;;  %v2611_v20 = vmul.f32 0.5, %v5246_v25 }
 0x8e7   : > { %4109 = vrcp.f32 %v2539_v48 }
 0x8e8   : > { %4111 = vpow2.f32 %v2594_v53 }
 0x8e9   : > { %4113 = vpow2.f32 %v2596_v36 }
 0x8ea   : > { %v4104_v61 = vpop.eup %4103  ;;  %4115 = vpow2.f32 %v2590_v29  ;;  %v2949_v29 = vpop.permute.xlu2 %2948 }
 0x8eb   : > { %v4106_v50 = vpop.eup %4105  ;;  %v2548_v0 = vmul.f32 1.0614054, %v4104_v61  ;;  %4117 = vpow2.f32 %v2592_v32 }
 0x8ec   : > { %v2549_v2 = vmul.f32 1.0614054, %v4106_v50  ;;  %v4108_v9 = vpop.eup %4107 }
 0x8ed   : > { %v2552_v5 = vadd.f32 -1.4531521, %v2548_v0  ;;  %v4110_v14 = vpop.eup %4109  ;;  %v2546_v13 = vmul.f32 1.0614054, %v4108_v9 }
 0x8ee   : > { %v2553_v11 = vadd.f32 -1.4531521, %v2549_v2  ;;  %v2547_v18 = vmul.f32 1.0614054, %v4110_v14  ;;  %v4112_v45 = vpop.eup %4111 }
 0x8ef   : > { %v2556_v16 = vmul.f32 %v4104_v61, %v2552_v5  ;;  %v2550_v19 = vadd.f32 -1.4531521, %v2546_v13  ;;  %v4114_v49 = vpop.eup %4113  ;;  %v2528_v5 = vsel %vm2524_vm15, 1.0, %v4387_v10  ;;  %vm5758_vm15 = vmmov %vm5757_vm10 }
 0x8f0   : > { %v2557_v17 = vmul.f32 %v4106_v50, %v2553_v11  ;;  %v2551_v54 = vadd.f32 -1.4531521, %v2547_v18  ;;  %v4116_v3 = vpop.eup %4115 }
 0x8f1   : > { %v2560_v55 = vadd.f32 1.4214138, %v2556_v16  ;;  %v2554_v33 = vmul.f32 %v4108_v9, %v2550_v19  ;;  %v4118_v4 = vpop.eup %4117  ;;  %v2612_v16 = vmul.f32 0.5, %v5240_v6 }
 0x8f2   : > { %v2561_v21 = vadd.f32 1.4214138, %v2557_v17  ;;  %v2555_v26 = vmul.f32 %v4110_v14, %v2551_v54  ;;  %v2613_v17 = vmul.f32 0.5, %v5242_v1  ;;  %v2610_v54 = vmul.f32 0.5, %v5244_v30 }
 0x8f3   : > { %v2564_v23 = vmul.f32 %v4104_v61, %v2560_v55  ;;  %v2558_v28 = vadd.f32 1.4214138, %v2554_v33  ;;  %v2527_v55 = vsel %vm2523_vm12, 1.0, %v4387_v10  ;;  %v3605_v1 = vld [vmem:[%s5694_s25 + $0x2] ss:$8 sm:$0x3] }
 0x8f4   : > { %v2565_v58 = vmul.f32 %v4106_v50, %v2561_v21  ;;  %v2559_v31 = vadd.f32 1.4214138, %v2555_v26  ;;  %v2783_v30 = vperm.slane %v5251_v47, 1  ;;  %v2729_v26 = vperm.slane %v3605_v1, 1 }
 0x8f5   : > { %v2568_v27 = vadd.f32 -0.28449672, %v2564_v23  ;;  %v2562_v42 = vmul.f32 %v4108_v9, %v2558_v28  ;;  %v2728_v23 = vperm.slane %v3605_v1, 0  ;;  %v3611_v28 = vld [vmem:[%s5694_s25 + $0x10] ss:$8 sm:$0x3] }
 0x8f6   : > { %v2569_v60 = vadd.f32 -0.28449672, %v2565_v58  ;;  %v2563_v7 = vmul.f32 %v4110_v14, %v2559_v31  ;;  %v3604_v58 = vld [vmem:[%s5694_s25 + $0x1] ss:$8 sm:$0x3]  ;;  %v3052_v47 = vperm.slane %v3611_v28, 0  ;;  %v5311_v31 = vpop.permute.xlu1 %3000 }
 0x8f7   : > { %v2572_v41 = vmul.f32 %v4104_v61, %v2568_v27  ;;  %v2566_v39 = vadd.f32 -0.28449672, %v2562_v42  ;;  %v2675_v27 = vperm.slane %v3604_v58, 1  ;;  %v2674_v25 = vperm.slane %v3604_v58, 0  ;;  %v3003_v42 = vpop.permute.xlu0 %3002 }
 0x8f8   : > { %v2573_v37 = vmul.f32 %v4106_v50, %v2569_v60  ;;  %v2567_v40 = vadd.f32 -0.28449672, %v2563_v7  ;;  %v3053_v60 = vperm.slane %v3611_v28, 1  ;;  %vm5761_vm12 = vcmask 916480  }
 0x8f9   : > { %v2576_v38 = vadd.f32 0.2548296, %v2572_v41  ;;  %v2570_v44 = vmul.f32 %v4108_v9, %v2566_v39 }
 0x8fa   : > { %v2577_v8 = vadd.f32 0.2548296, %v2573_v37  ;;  %v2571_v48 = vmul.f32 %v4110_v14, %v2567_v40 }
 0x8fb   : > { %v2580_v43 = vmul.f32 %v4104_v61, %v2576_v38  ;;  %v2574_v57 = vadd.f32 0.2548296, %v2570_v44 }
 0x8fc   : > { %v2581_v46 = vmul.f32 %v4106_v50, %v2577_v8  ;;  %v2575_v62 = vadd.f32 0.2548296, %v2571_v48  ;;  %v2529_v50 = vsel %vm2525_vm0, 1.0, %v4387_v10  ;;  %vm5759_vm0 = vmmov %vm5757_vm10 }
 0x8fd   : > { %v2600_v56 = vmul.f32 %v4112_v45, %v2580_v43  ;;  %v2578_v2 = vmul.f32 %v4108_v9, %v2574_v57  ;;  %v5327_v45 = vsel %vm1038_vm5, %v5311_v31, %v3003_v42 }
 0x8fe   : > { %v2601_v59 = vmul.f32 %v4114_v49, %v2581_v46  ;;  %v2579_v61 = vmul.f32 %v4110_v14, %v2575_v62  ;;  %v2526_v14 = vsel %vm2522_vm14, 1.0, %v4387_v10  ;;  %v2947_v41 = vpop.permute.xlu1 %2946  ;;  %vm5760_vm14 = vmmov %vm5759_vm0 }
 0x8ff   : > { %v2604_v0 = vsub.f32 1.0, %v2600_v56  ;;  %v2598_v12 = vmul.f32 %v4116_v3, %v2578_v2  ;;  %v2893_v7 = vpop.permute.xlu0 %2892  ;;  %v2950_v46 = vsel %vm1002_vm7, %v2947_v41, %v2949_v29  ;;  %vm5753_vm7 = vcmask 900096  }
 0x900   : > { %v2605_v11 = vsub.f32 1.0, %v2601_v59  ;;  %v2599_v51 = vmul.f32 %v4118_v4, %v2579_v61  ;;  %vm5756_vm13 = vmmov %vm5753_vm7 }
 0x901   : > { %v2608_v52 = vmul.f32 %v2604_v0, %v2528_v5  ;;  %v2602_v9 = vsub.f32 1.0, %v2598_v12 }
 0x902   : > { %v2609_v15 = vmul.f32 %v2605_v11, %v2529_v50  ;;  %v2603_v53 = vsub.f32 1.0, %v2599_v51 }
 0x903   : > { %v2616_v13 = vadd.f32 1.0, %v2608_v52  ;;  %v2606_v34 = vmul.f32 %v2602_v9, %v2526_v14 }
 0x904   : > { %v2617_v18 = vadd.f32 1.0, %v2609_v15  ;;  %v2607_v22 = vmul.f32 %v2603_v53, %v2527_v55 }
 0x905   : > { %v2620_v19 = vmul.f32 %v2616_v13, %v2612_v16  ;;  %v2614_v35 = vadd.f32 1.0, %v2606_v34 }
 0x906   : > { %v2621_v21 = vmul.f32 %v2617_v18, %v2613_v17  ;;  %v2615_v36 = vadd.f32 1.0, %v2607_v22  ;;  %v2895_v38 = vpop.permute.xlu1 %2894 }
 0x907   : > { %2630 = vrot.lane.b32.xlu1 %v2620_v19, %s5731_s26  ;;  %v2618_v6 = vmul.f32 %v2614_v35, %v2610_v54  ;;  %v2896_v4 = vsel %vm966_vm4, %v2893_v7, %v2895_v38 }
 0x908   : > { %2632 = vrot.lane.b32.xlu0 %v2621_v21, %s5731_s26  ;;  %v2619_v33 = vmul.f32 %v2615_v36, %v2611_v20 }
 0x909   : > { %2626 = vrot.lane.b32.xlu2 %v2618_v6, %s5731_s26 }
 0x90f   : > { %2628 = vrot.lane.b32.xlu1 %v2619_v33, %s5731_s26  ;;  %s5746_s26 = smov 34  }
 0x910   : > { %2730 = vrot.lane.b32.xlu0 %v2728_v23, %s5730_s6 }
 0x911   : > { %2786 = vrot.lane.b32.xlu2 %v2783_v30, %s5729_s0 }
 0x917   : > { %2732 = vrot.lane.b32.xlu1 %v2729_v26, %s5730_s6  ;;  %s5775_s6 = sld [smem:[#allocation37_spill]] }
 0x918   : > { %2678 = vrot.lane.b32.xlu0 %v2675_v27, %s5732_s2 }
 0x919   : > { %2676 = vrot.lane.b32.xlu2 %v2674_v25, %s5732_s2  ;;  %s5776_s2 = sld [smem:[#allocation38_spill]] }
 0x91f   : > { %3054 = vrot.lane.b32.xlu1 %v3052_v47, %s5746_s26 }
 0x921   : > { %3056 = vrot.lane.b32.xlu2 %v3053_v60, %s5746_s26 }
 0x932   : > { %v5316_v39 = vpop.permute.xlu0 %2840  ;;  %v5318_v8 = vpop.permute.xlu1 %2784 }
 0x935   : > { %v5313_v32 = vpop.permute.xlu2 %2838 }
 0x936   : > { %v2842_v18 = vsel %vm790_vm3, %v5313_v32, %v5316_v39 }
 0x963   : > { %v2627_v37 = vpop.permute.xlu2 %2626 }
 0x964   : > { %2642 = vst.msk [vmem:[#allocation3] sm:$0xff] %vm795_vm2, %v2627_v37 }
 0x96b   : > { %v5344_v5 = vld [vmem:[#allocation3] sm:$0xff]  ;;  %v2787_v6 = vpop.permute.xlu2 %2786 }
 0x96c   : > { %v2954_v12 = vmul.f32 %v2947_v41, %v5344_v5  ;;  %v2900_v55 = vmul.f32 %v2893_v7, %v5344_v5  ;;  %v2788_v23 = vsel %vm895_vm9, %v5318_v8, %v2787_v6  ;;  %v2846_v58 = vmul.f32 %v5313_v32, %v5344_v5 }
 0x979   : > { %v2631_v40 = vpop.permute.xlu1 %2630 }
 0x97a   : > { %2645 = vst.msk [vmem:[#allocation3 + $0x18] sm:$0xff] %vm795_vm2, %v2631_v40  ;;  %v2633_v43 = vpop.permute.xlu0 %2632 }
 0x97b   : > { %v5322_v44 = vsel %vm790_vm3, %v2631_v40, %v2633_v43  ;;  %2647 = vst.msk [vmem:[#allocation3 + $0x28] sm:$0xff] %vm790_vm3, %v2633_v43  ;;  %v3008_v40 = vmul.f32 %v5311_v31, %v5344_v5 }
 0x97c   : > { %v3012_v56 = vmul.f32 %v5327_v45, %v5322_v44  ;;  %v2958_v0 = vmul.f32 %v2950_v46, %v5322_v44  ;;  %v2904_v15 = vmul.f32 %v2896_v4, %v5322_v44  ;;  %v2850_v34 = vmul.f32 %v2842_v18, %v5322_v44 }
 0x97d   : > { %v2796_v26 = vmul.f32 %v2788_v23, %v5322_v44 }
 0x981   : > { %v2629_v48 = vpop.permute.xlu1 %2628  ;;  %v5330_v49 = vld [vmem:[#allocation3 + $0x18] sm:$0xff] }
 0x982   : > { %v5335_v57 = vsel %vm790_vm3, %v2627_v37, %v2629_v48  ;;  %2644 = vst.msk [vmem:[#allocation3 + $0x10] sm:$0xff] %vm790_vm3, %v2629_v48  ;;  %v3011_v59 = vmul.f32 %v5311_v31, %v5330_v49  ;;  %v2957_v62 = vmul.f32 %v2947_v41, %v5330_v49  ;;  %v2903_v61 = vmul.f32 %v2893_v7, %v5330_v49  ;;  %v5351_v52 = vld [vmem:[#allocation3 + $0x28] sm:$0xff]  ;;  %v2731_v1 = vpop.permute.xlu0 %2730 }
 0x983   : > { %v2955_v11 = vmul.f32 %v2950_v46, %v5335_v57  ;;  %v3013_v16 = vmul.f32 %v5351_v52, %v3003_v42  ;;  %v2901_v14 = vmul.f32 %v2896_v4, %v5335_v57  ;;  %v2849_v53 = vmul.f32 %v5313_v32, %v5330_v49 }
 0x984   : > { %v3967_v2 = vpack.i.bf16 %v3012_v56, %v3011_v59  ;;  %v3992_v3 = vpack.i.bf16 %v2958_v0, %v2957_v62  ;;  %v4002_v9 = vpack.i.bf16 %v2904_v15, %v2903_v61  ;;  %v2959_v21 = vmul.f32 %v5351_v52, %v2949_v29 }
 0x985   : > { %v3997_v13 = vpack.i.bf16 %v2955_v11, %v2954_v12  ;;  %v4007_v22 = vpack.i.bf16 %v2901_v14, %v2900_v55  ;;  %v4012_v54 = vpack.i.bf16 %v2850_v34, %v2849_v53  ;;  %v2847_v36 = vmul.f32 %v2842_v18, %v5335_v57 }
 0x986   : > { %3968 = vrot.lane.b32.xlu0 %v3967_v2, %s5699_s22  ;;  %3993 = vrot.lane.b32.xlu2 %v3992_v3, %s5700_s18  ;;  %v2795_v20 = vmul.f32 %v5318_v8, %v5330_v49  ;;  %v2905_v27 = vmul.f32 %v5351_v52, %v2895_v38  ;;  %v2793_v41 = vmul.f32 %v2788_v23, %v5335_v57  ;;  %vm5749_vm3 = vcmask 785408  }
 0x987   : > { %v4017_v25 = vpack.i.bf16 %v2847_v36, %v2846_v58  ;;  %v2792_v32 = vmul.f32 %v5318_v8, %v5344_v5  ;;  %v3009_v7 = vmul.f32 %v5327_v45, %v5335_v57  ;;  %v2738_v45 = vmul.f32 %v5344_v5, %v2731_v1  ;;  %vm5750_vm4 = vmmov %vm5749_vm3 }
 0x988   : > { %v4022_v28 = vpack.i.bf16 %v2796_v26, %v2795_v20  ;;  %v2851_v61 = vmul.f32 %v5351_v52, %v5316_v39  ;;  %v2797_v18 = vmul.f32 %v5351_v52, %v2787_v6  ;;  %vm5751_vm5 = vmmov %vm5749_vm3 }
 0x989   : > { %v5349_v50 = vld [vmem:[#allocation3 + $0x10] sm:$0xff]  ;;  %v2733_v33 = vpop.permute.xlu1 %2732  ;;  %v4027_v43 = vpack.i.bf16 %v2793_v41, %v2792_v32  ;;  %v3972_v56 = vpack.i.bf16 %v3009_v7, %v3008_v40 }
 0x98a   : > { %v3010_v51 = vmul.f32 %v5349_v50, %v3003_v42  ;;  %v2956_v19 = vmul.f32 %v5349_v50, %v2949_v29  ;;  %v2902_v30 = vmul.f32 %v5349_v50, %v2895_v38  ;;  %v2734_v47 = vsel %vm859_vm6, %v2731_v1, %v2733_v33  ;;  %v2679_v37 = vpop.permute.xlu0 %2678  ;;  %v2677_v38 = vpop.permute.xlu2 %2676  ;;  %vm5752_vm6 = vmmov %vm5749_vm3 }
 0x98b   : > { %v2742_v29 = vmul.f32 %v2734_v47, %v5322_v44  ;;  %v2741_v42 = vmul.f32 %v2731_v1, %v5330_v49  ;;  %v2680_v48 = vsel %vm823_vm8, %v2677_v38, %v2679_v37  ;;  %v2739_v8 = vmul.f32 %v2734_v47, %v5335_v57  ;;  %vm5754_vm8 = vmmov %vm5753_vm7 }
 0x98c   : > { %v3952_v17 = vpack.i.bf16 %v3010_v51, %v3013_v16  ;;  %v3957_v35 = vpack.i.bf16 %v2956_v19, %v2959_v21  ;;  %v3962_v60 = vpack.i.bf16 %v2902_v30, %v2905_v27  ;;  %v2688_v59 = vmul.f32 %v2680_v48, %v5322_v44 }
 0x98d   : > { %v4032_v46 = vpack.i.bf16 %v2742_v29, %v2741_v42  ;;  %v2687_v62 = vmul.f32 %v5330_v49, %v2677_v38  ;;  %v2848_v0 = vmul.f32 %v5349_v50, %v5316_v39  ;;  %v4037_v3 = vpack.i.bf16 %v2739_v8, %v2738_v45 }
 0x98e   : > { %3998 = vrot.lane.b32.xlu0 %v3997_v13, %s5700_s18  ;;  %4003 = vrot.lane.b32.xlu2 %v4002_v9, %s5701_s20  ;;  %v2685_v15 = vmul.f32 %v2680_v48, %v5335_v57  ;;  %v2684_v16 = vmul.f32 %v5344_v5, %v2677_v38  ;;  %v2794_v9 = vmul.f32 %v5349_v50, %v2787_v6 }
 0x98f   : > { %3953 = vrot.lane.b32.xlu1 %v3952_v17, %s5699_s22  ;;  %v4042_v11 = vpack.i.bf16 %v2688_v59, %v2687_v62  ;;  %v3977_v12 = vpack.i.bf16 %v2848_v0, %v2851_v61  ;;  %v2686_v53 = vmul.f32 %v5349_v50, %v2679_v37  ;;  %v2689_v55 = vmul.f32 %v5351_v52, %v2679_v37 }
 0x990   : > { %v4047_v39 = vpack.i.bf16 %v2685_v15, %v2684_v16  ;;  %v3982_v14 = vpack.i.bf16 %v2794_v9, %v2797_v18  ;;  %v2740_v21 = vmul.f32 %v5349_v50, %v2733_v33 }
 0x991   : > { %v3055_v31 = vpop.permute.xlu1 %3054 }
 0x992   : > { %v3057_v2 = vpop.permute.xlu2 %3056  ;;  %v3062_v19 = vmul.f32 %v3055_v31, %v5344_v5  ;;  %v3065_v34 = vmul.f32 %v3055_v31, %v5330_v49 }
 0x993   : > { %v3058_v4 = vsel %vm704_vm1, %v3055_v31, %v3057_v2  ;;  %v3067_v13 = vmul.f32 %v3057_v2, %v5351_v52  ;;  %v3064_v36 = vmul.f32 %v3057_v2, %v5349_v50  ;;  %vm5747_vm1 = vcmask 769024  }
 0x994   : > { %v3066_v51 = vmul.f32 %v3058_v4, %v5322_v44  ;;  %v3063_v1 = vmul.f32 %v3058_v4, %v5335_v57  ;;  %vm5748_vm2 = vmmov %vm5747_vm1 }
 0x996   : > { %4008 = vrot.lane.b32.xlu0 %v4007_v22, %s5701_s20  ;;  %4013 = vrot.lane.b32.xlu2 %v4012_v54, %s5702_s29  ;;  %v4057_v17 = vpack.i.bf16 %v3067_v13, %v3066_v51  ;;  %v2743_v22 = vmul.f32 %v5351_v52, %v2733_v33  ;;  %v4052_v54 = vpack.i.bf16 %v2686_v53, %v2689_v55 }
 0x997   : > { %3958 = vrot.lane.b32.xlu1 %v3957_v35, %s5700_s18  ;;  %v4067_v35 = vpack.i.bf16 %v3062_v19, %v3065_v34  ;;  %v4062_v20 = vpack.i.bf16 %v3064_v36, %v3063_v1 }
 0x998   : > { %v3987_v6 = vpack.i.bf16 %v2740_v21, %v2743_v22 }
 0x99e   : > { %4018 = vrot.lane.b32.xlu0 %v4017_v25, %s5702_s29  ;;  %4023 = vrot.lane.b32.xlu2 %v4022_v28, %s5703_s11 }
 0x99f   : > { %3963 = vrot.lane.b32.xlu1 %v3962_v60, %s5701_s20  ;;  %s5777_s20 = sld [smem:[#allocation39_spill]] }
 0x9a6   : > { %4028 = vrot.lane.b32.xlu0 %v4027_v43, %s5703_s11  ;;  %4033 = vrot.lane.b32.xlu2 %v4032_v46, %s5704_s27 }
 0x9a7   : > { %3973 = vrot.lane.b32.xlu1 %v3972_v56, %s5699_s22 }
 0x9ae   : > { %4038 = vrot.lane.b32.xlu0 %v4037_v3, %s5704_s27  ;;  %4043 = vrot.lane.b32.xlu2 %v4042_v11, %s5705_s3 }
 0x9af   : > { %3978 = vrot.lane.b32.xlu1 %v3977_v12, %s5702_s29  ;;  %s5778_s29 = smov %s5777_s20 }
 0x9b0   : > { %s4305_s14 = scalar_lea.hbm %s5778_s29, 32 }
 0x9b6   : > { %4058 = vrot.lane.b32.xlu2 %v4057_v17, %s5706_s17  ;;  %4048 = vrot.lane.b32.xlu0 %v4047_v39, %s5705_s3 }
 0x9b7   : > { %3983 = vrot.lane.b32.xlu1 %v3982_v14, %s5703_s11 }
 0x9be   : > { %4068 = vrot.lane.b32.xlu2 %v4067_v35, %s5706_s17  ;;  %4053 = vrot.lane.b32.xlu0 %v4052_v54, %s5705_s3  ;;  %s3623_s3 = sshll.u32 %s4512_s24, 4 }
 0x9bf   : > { %3988 = vrot.lane.b32.xlu1 %v3987_v6, %s5704_s27  ;;  %s3425_s11 = scalar_lea.hbm %s5777_s20, %s3623_s3 }
 0x9c0   : > { %s3429_s0 = sshll.u32 %s3425_s11, 4  ;;  %s3430_s0 = int_to_ptr.hbm [resolvable:$true] %s3429_s0 }
 0x9c1   : > { %s4299_s7 = sshra.s32 %s3430_s0, 4  ;;  %s4300_s7 = int_to_ptr.hbm [resolvable:$true] %s4299_s7 }
 0x9c2   : > { %s4301_s28 = scalar_lea.hbm %s4300_s7, 16  ;;  %p4306_p7 = scmp.lt.s32.totalorder %s4300_s7, %s5778_s29 }
 0x9c3   : > { %p4302_p3 = scmp.ne.s32.totalorder %s4300_s7, %s4301_s28  ;;  %p4307_p8 = scmp.lt.s32.totalorder %s4305_s14, %s4301_s28 }
 0x9c5   : > { %p4303_p5 = pnand %p4302_p3, %p4575_p4  ;;  %p4308_p9 = por %p4307_p8, %p4306_p7 }
 0x9c7   : > { %4063 = vrot.lane.b32.xlu1 %v4062_v20, %s5706_s17  ;;  %s3565_s17 = sshll.u32 %s4606_s19, 4  ;;  %p4304_p12 = pneg %p4303_p5 }
 0x9c8   : > { %s696_s24 = scalar_lea.vmem [#allocation14], %s3565_s17 }
 0x9c9   : > { %s3427_s27 = sshll.u32 %s696_s24, 4  ;;  %p4309_p10 = pnand %p4308_p9, %p4304_p12  ;;  %s3428_s27 = int_to_ptr.vmem [resolvable:$true] %s3427_s27 }
 0x9e0   : > { %v3994_v23 = vpop.permute.xlu2 %3993 }
 0x9e1   : > { %v3996_v59 = vunpack.i.h.bf16 %v3994_v23  ;;  %v3995_v45 = vunpack.i.l.bf16 %v3994_v23 }
 0x9e3   : > { %v2980_v39 = vsel %vm5749_vm3, %v3995_v45, %v3996_v59  ;;  %vm5764_vm3 = vcmask 1031168  }
 0x9e8   : > { %v5433_v30 = vpop.permute.xlu2 %4003 }
 0x9e9   : > { %v4006_v16 = vunpack.i.h.bf16 %v5433_v30  ;;  %v4005_v13 = vunpack.i.l.bf16 %v5433_v30 }
 0x9eb   : > { %v2926_v22 = vsel %vm5753_vm7, %v4005_v13, %v4006_v16 }
 0x9f0   : > { %v5435_v52 = vpop.permute.xlu2 %4013 }
 0x9f1   : > { %v4016_v54 = vunpack.i.h.bf16 %v5435_v52  ;;  %v4015_v35 = vunpack.i.l.bf16 %v5435_v52 }
 0x9f3   : > { %v2872_v52 = vsel %vm5757_vm10, %v4015_v35, %v4016_v54 }
 0x9f8   : > { %v5437_v33 = vpop.permute.xlu2 %4023  ;;  %v3969_v58 = vpop.permute.xlu0 %3968 }
 0x9f9   : > { %v3971_v26 = vunpack.i.h.bf16 %v3969_v58  ;;  %v3970_v27 = vunpack.i.l.bf16 %v3969_v58 }
 0x9fb   : > { %v3034_v25 = vsel %vm1055_vm11, %v3970_v27, %v3971_v26  ;;  %v4025_v27 = vunpack.i.l.bf16 %v5437_v33 }
 0x9fc   : > { %3139 = vmatpush.msra.mxu3 %v3034_v25 }
 0xa00   : > { %v5440_v28 = vpop.permute.xlu2 %4033  ;;  %v3999_v47 = vpop.permute.xlu0 %3998 }
 0xa01   : > { %v3954_v50 = vpop.permute.xlu1 %3953  ;;  %v4001_v61 = vunpack.i.h.bf16 %v3999_v47  ;;  %v4000_v4 = vunpack.i.l.bf16 %v3999_v47 }
 0xa02   : > { %v3955_v60 = vunpack.i.l.bf16 %v3954_v50  ;;  %v3956_v62 = vunpack.i.h.bf16 %v3954_v50 }
 0xa03   : > { %v2978_v19 = vsel %vm5751_vm5, %v4000_v4, %v4001_v61  ;;  %vm5766_vm5 = vmmov %vm5764_vm3 }
 0xa04   : > { %v3035_v29 = vsel %vm1055_vm11, %v3971_v26, %v3955_v60  ;;  %v4026_v26 = vunpack.i.h.bf16 %v5437_v33 }
 0xa05   : > { %3179 = vmatpush.msrb.mxu1 %v3035_v29 }
 0xa06   : > { %v2818_v33 = vsel %vm5761_vm12, %v4025_v27, %v4026_v26 }
 0xa08   : > { %v5443_v41 = vpop.permute.xlu2 %4043  ;;  %v4009_v32 = vpop.permute.xlu0 %4008 }
 0xa09   : > { %v3959_v42 = vpop.permute.xlu1 %3958  ;;  %v4011_v18 = vunpack.i.h.bf16 %v4009_v32  ;;  %v4010_v14 = vunpack.i.l.bf16 %v4009_v32  ;;  %v4045_v45 = vunpack.i.l.bf16 %v5443_v41 }
 0xa0a   : > { %v3960_v0 = vunpack.i.l.bf16 %v3959_v42  ;;  %v3961_v12 = vunpack.i.h.bf16 %v3959_v42 }
 0xa0c   : > { %v2981_v17 = vsel %vm5750_vm4, %v3996_v59, %v3960_v0  ;;  %v2979_v34 = vsel %vm5752_vm6, %v4001_v61, %v3961_v12  ;;  %v4046_v59 = vunpack.i.h.bf16 %v5443_v41  ;;  %vm5767_vm6 = vcmask 1039360  }
 0xa0d   : > { %vm5772_vm10 = vmmov %vm5767_vm6 }
 0xa0e   : > { %v2710_v41 = vsel %vm5767_vm6, %v4045_v45, %v4046_v59  ;;  %v3354_v45 = vld [vmem:[%s5775_s6] sm:$0xff] }
 0xa10   : > { %v4059_v37 = vpop.permute.xlu2 %4058  ;;  %v5445_v7 = vpop.permute.xlu0 %4018 }
 0xa11   : > { %v4061_v38 = vunpack.i.h.bf16 %v4059_v37  ;;  %v4060_v40 = vunpack.i.l.bf16 %v4059_v37  ;;  %v3964_v43 = vpop.permute.xlu1 %3963  ;;  %v4021_v20 = vunpack.i.h.bf16 %v5445_v7  ;;  %v4020_v23 = vunpack.i.l.bf16 %v5445_v7 }
 0xa12   : > { %v3965_v9 = vunpack.i.l.bf16 %v3964_v43  ;;  %v3966_v55 = vunpack.i.h.bf16 %v3964_v43  ;;  %v4036_v37 = vunpack.i.h.bf16 %v5440_v28  ;;  %v4035_v7 = vunpack.i.l.bf16 %v5440_v28 }
 0xa13   : > { %v3089_v46 = vsel %vm5747_vm1, %v4060_v40, %v4061_v38  ;;  %v2870_v29 = vsel %vm5759_vm0, %v4020_v23, %v4021_v20  ;;  %vm5762_vm1 = vmmov %vm5761_vm12 }
 0xa14   : > { %3213 = vmatpush.msra.mxu2 %v3089_v46  ;;  %v2927_v1 = vsel %vm5754_vm8, %v4006_v16, %v3965_v9  ;;  %v2925_v58 = vsel %vm5756_vm13, %v4011_v18, %v3966_v55  ;;  %vm5765_vm4 = vmmov %vm5762_vm1 }
 0xa15   : > { %vm5769_vm8 = vmmov %vm5764_vm3 }
 0xa16   : > { %vm5771_vm13 = vmmov %vm5767_vm6 }
 0xa18   : > { %v5448_v48 = vpop.permute.xlu2 %4068  ;;  %v5450_v56 = vpop.permute.xlu0 %4028 }
 0xa19   : > { %v4070_v8 = vunpack.i.l.bf16 %v5448_v48  ;;  %v3974_v31 = vpop.permute.xlu1 %3973  ;;  %v4031_v50 = vunpack.i.h.bf16 %v5450_v56  ;;  %v4030_v60 = vunpack.i.l.bf16 %v5450_v56 }
 0xa1a   : > { %v3976_v2 = vunpack.i.h.bf16 %v3974_v31  ;;  %v3975_v3 = vunpack.i.l.bf16 %v3974_v31 }
 0xa1b   : > { %v3088_v11 = vsel %vm5748_vm2, %v4070_v8, %v4060_v40  ;;  %v2816_v56 = vsel %vm5762_vm1, %v4030_v60, %v4031_v50  ;;  %vm5763_vm2 = vmmov %vm5762_vm1 }
 0xa1c   : > { %3173 = vmatpush.msrb.mxu0 %v3088_v11  ;;  %v3032_v15 = vsel %vm1055_vm11, %v3975_v3, %v3976_v2  ;;  %v3033_v51 = vsel %vm1055_vm11, %v3976_v2, %v3956_v62  ;;  %vm5755_vm11 = vmmov %vm5753_vm7  ;;  %v2764_v62 = vsel %vm5764_vm3, %v4035_v7, %v4036_v37  ;;  %v2652_v3 = vld [vmem:[%s5694_s25] ss:$8 sm:$0x3]  ;;  %v3357_v7 = vld [vmem:[%s5775_s6 + $0x18] sm:$0xff] }
 0xa1d   : > { %3140 = vmatpush.msra.mxu3 %v3032_v15  ;;  %3180 = vmatpush.msrb.mxu1 %v3033_v51  ;;  %v2924_v36 = vsel %vm5755_vm11, %v4010_v14, %v4011_v18  ;;  %v2654_v15 = vperm.slane %v2652_v3, 0  ;;  %vm5768_vm7 = vmmov %vm5767_vm6  ;;  %v2655_v14 = vperm.slane %v2652_v3, 1 }
 0xa1e   : > { %vm5770_vm11 = vmmov %vm5764_vm3 }
 0xa1f   : > { %3141 = vmatpush.msra.mxu3 %v2980_v39  ;;  %3181 = vmatpush.msrb.mxu1 %v2981_v17  ;;  %v2660_v9 = vmul.f32 %v5330_v49, %v2654_v15  ;;  %v2658_v18 = vmul.f32 %v5344_v5, %v2654_v15 }
 0xa20   : > { %v5460_v53 = vpop.permute.xlu0 %4038 }
 0xa21   : > { %v3979_v21 = vpop.permute.xlu1 %3978  ;;  %3142 = vmatpush.msra.mxu3 %v2978_v19  ;;  %3182 = vmatpush.msrb.mxu1 %v2979_v34  ;;  %v4041_v43 = vunpack.i.h.bf16 %v5460_v53  ;;  %v4040_v46 = vunpack.i.l.bf16 %v5460_v53  ;;  %v3098_v53 = vld [vmem:[#allocation13] sm:$0xff]  ;;  %v4071_v34 = vunpack.i.h.bf16 %v5448_v48  ;;  %v3271_v48 = vld [vmem:[%s5606_s16] sm:$0xff] }
 0xa22   : > { %v3980_v6 = vunpack.i.l.bf16 %v3979_v21  ;;  %v3981_v30 = vunpack.i.h.bf16 %v3979_v21 }
 0xa23   : > { %3143 = vmatpush.msra.mxu3 %v2926_v22  ;;  %3183 = vmatpush.msrb.mxu1 %v2927_v1  ;;  %v2762_v2 = vsel %vm5766_vm5, %v4040_v46, %v4041_v43  ;;  %v2659_v1 = vmul.f32 %v2655_v14, %v5335_v57  ;;  %v3355_v46 = vld [vmem:[%s5775_s6 + $0x8] sm:$0xff] }
 0xa24   : > { %v2873_v25 = vsel %vm5758_vm15, %v4016_v54, %v3980_v6  ;;  %v2871_v32 = vsel %vm5760_vm14, %v4021_v20, %v3981_v30  ;;  %v2661_v54 = vmul.f32 %v2655_v14, %v5322_v44  ;;  %vm5773_vm15 = vcmask 769024   ;;  %v3099_v6 = vld [vmem:[#allocation13 + $0x8] sm:$0xff]  ;;  %v3263_v44 = vld [vmem:[%s5605_s15] sm:$0xff] }
 0xa25   : > { %3144 = vmatpush.msra.mxu3 %v2924_v36  ;;  %3184 = vmatpush.msrb.mxu1 %v2925_v58  ;;  %vm5774_vm0 = vmmov %vm5773_vm15 }
 0xa26   : > { %3266 = vperm.xlu2 %4072, %v3263_v44  }
 0xa27   : > { %3145 = vmatpush.msra.mxu3 %v2872_v52  ;;  %3185 = vmatpush.msrb.mxu1 %v2873_v25 }
 0xa28   : > { %v4049_v47 = vpop.permute.xlu0 %4048 }
 0xa29   : > { %v3984_v42 = vpop.permute.xlu1 %3983  ;;  %3146 = vmatpush.msra.mxu3 %v2870_v29  ;;  %3186 = vmatpush.msrb.mxu1 %v2871_v32  ;;  %v4051_v31 = vunpack.i.h.bf16 %v4049_v47  ;;  %v4050_v0 = vunpack.i.l.bf16 %v4049_v47  ;;  %v3333_v47 = vld [vmem:[%s5594_s4] sm:$0x1] }
 0xa2a   : > { %v3986_v38 = vunpack.i.h.bf16 %v3984_v42  ;;  %v3985_v40 = vunpack.i.l.bf16 %v3984_v42 }
 0xa2b   : > { %3147 = vmatpush.msra.mxu3 %v2818_v33  ;;  %v2708_v16 = vsel %vm5768_vm7, %v4050_v0, %v4051_v31 }
 0xa2c   : > { %v2819_v8 = vsel %vm5763_vm2, %v4026_v26, %v3985_v40  ;;  %v2817_v28 = vsel %vm5765_vm4, %v4031_v50, %v3986_v38  ;;  %v3614_v50 = vmul.f32 -1.442695, %v3333_v47 }
 0xa2d   : > { %3148 = vmatpush.msra.mxu3 %v2816_v56  ;;  %3187 = vmatpush.msrb.mxu1 %v2819_v8  ;;  %v3356_v8 = vld [vmem:[%s5775_s6 + $0x10] sm:$0xff] }
 0xa2e   : > { %3274 = vperm.xlu2 %4072, %v3271_v48   ;;  %4119 = vpow2.f32 %v3614_v50 }
 0xa2f   : > { %3149 = vmatpush.msra.mxu3 %v2764_v62  ;;  %3188 = vmatpush.msrb.mxu1 %v2817_v28 }
 0xa30   : > { %v4054_v61 = vpop.permute.xlu0 %4053 }
 0xa31   : > { %v3989_v11 = vpop.permute.xlu1 %3988  ;;  %3150 = vmatpush.msra.mxu3 %v2762_v2  ;;  %v4055_v51 = vunpack.i.l.bf16 %v4054_v61  ;;  %v4056_v39 = vunpack.i.h.bf16 %v4054_v61 }
 0xa32   : > { %v3991_v4 = vunpack.i.h.bf16 %v3989_v11  ;;  %v3990_v12 = vunpack.i.l.bf16 %v3989_v11 }
 0xa33   : > { %3151 = vmatpush.msra.mxu3 %v2710_v41  ;;  %v2711_v55 = vsel %vm5771_vm13, %v4046_v59, %v4055_v51  ;;  %v2709_v49 = vsel %vm5772_vm10, %v4051_v31, %v4056_v39 }
 0xa34   : > { %v2765_v13 = vsel %vm5769_vm8, %v4036_v37, %v3990_v12  ;;  %v2763_v17 = vsel %vm5770_vm11, %v4041_v43, %v3991_v4  ;;  %v4120_v60 = vpop.eup %4119 }
 0xa35   : > { %3152 = vmatpush.msra.mxu3 %v2708_v16  ;;  %3189 = vmatpush.msrb.mxu1 %v2765_v13  ;;  %v3337_v29 = vadd.f32 1.0, %v4120_v60 }
 0xa37   : > { %3153 = vmatpush.msra.mxu3 %v2660_v9  ;;  %3190 = vmatpush.msrb.mxu1 %v2763_v17  ;;  %4121 = vrcp.f32 %v3337_v29  ;;  %v3349_v38 = vand.u32 2147483648, %v3337_v29  ;;  %vm3343_vm14 = vweird.f32 %v3337_v29  ;;  %v3347_v43 = vand.u32 2147483647, %v3337_v29 }
 0xa39   : > { %v4064_v19 = vpop.permute.xlu1 %4063  ;;  %3154 = vmatpush.msra.mxu3 %v2658_v18  ;;  %3191 = vmatpush.msrb.mxu1 %v2711_v55  ;;  %v3350_v56 = vor.u32 1.1754944e-38, %v3349_v38  ;;  %vm3348_vm2 = vcmp.eq.f32.partialorder %v3347_v43, 8.507059e+37 }
 0xa3a   : > { %v4066_v21 = vunpack.i.h.bf16 %v4064_v19  ;;  %v4065_v22 = vunpack.i.l.bf16 %v4064_v19  ;;  %3155 = vmatmul.f32.vlgmr.msra.gmra.mxu3 %v3098_v53 }
 0xa3b   : > { %3192 = vmatpush.msrb.mxu1 %v2709_v49 }
 0xa3c   : > { %v3086_v35 = vsel %vm5773_vm15, %v4071_v34, %v4065_v22  ;;  %v3087_v5 = vsel %vm5774_vm0, %v4065_v22, %v4066_v21 }
 0xa3d   : > { %3174 = vmatpush.msrb.mxu0 %v3086_v35  ;;  %3193 = vmatpush.msrb.mxu1 %v2661_v54  ;;  %v4122_v32 = vpop.eup %4121 }
 0xa3e   : > { %3214 = vmatpush.msra.mxu2 %v3087_v5  ;;  %3612 = vmatmul.msk.f32.vlgmr.msrb.gmra.mxu0 %vm895_vm9, %v3099_v6  ;;  %v3339_v42 = vmul.f32 %v4122_v32, %v3337_v29  ;;  %vm3344_vm12 = vweird.f32 %v4122_v32 }
 0xa3f   : > { %3613 = vmatmul.msk.f32.vlgmr.msra.gmra.mxu2 %vm895_vm9, %v3099_v6  ;;  %3194 = vmatpush.msrb.mxu1 %v2659_v1  ;;  %vm3345_vm1 = vmor %vm3343_vm14, %vm3344_vm12 }
 0xa40   : > { %3195 = vmatmul.f32.vlgmr.msrb.gmra.mxu1 %v3098_v53  ;;  %v3340_v33 = vsub.f32 1.0, %v3339_v42  ;;  %3401 = vmatpush.msrb.mxu2 %v3357_v7 }
 0xa41   : > { %3381 = vmatpush.msra.mxu0 %v3356_v8 }
 0xa42   : > { %v3341_v37 = vmul.f32 %v4122_v32, %v3340_v33  ;;  %3402 = vmatpush.msrb.mxu2 %v3355_v46 }
 0xa43   : > { %3382 = vmatpush.msra.mxu0 %v3354_v45 }
 0xa44   : > { %v3342_v40 = vadd.f32 %v4122_v32, %v3341_v37 }
 0xa46   : > { %v3346_v59 = vsel %vm3345_vm1, %v4122_v32, %v3342_v40 }
 0xa47   : > { %v3351_v62 = vsel %vm3348_vm2, %v3350_v56, %v3346_v59 }
 0xa48   : > { %v3353_v28 = vmul.f32 %v3351_v62, %v3333_v47 }
 0xa4a   : > { %3616 = vmatmul.msk.f32.vlgmr.msrb.gmra.mxu2 %vm895_vm9, %v3353_v28  ;;  %3615 = vmatmul.msk.f32.vlgmr.msra.gmra.mxu0 %vm895_vm9, %v3353_v28 }
 0xa80   : > { %v3267_v35 = vpop.permute.xlu2 %3266 }
 0xabb   : > { %v3176_v36 = vpop.f32.mrf.mxu0 }
 0xabd   : > { %v3156_v20 = vpop.f32.mrf.mxu3  ;;  %v3196_v23 = vpop.f32.mrf.mxu1 }
 0xabe   : > { %v5516_v57 = vadd.f32 %v3176_v36, %v3156_v20 }
 0xac0   : > { %v3230_v58 = vmul.f32 %v5516_v57, %v5516_v57 }
 0xac2   : > { %v3216_v30 = vpop.f32.mrf.mxu2 }
 0xac3   : > { %v5520_v26 = vadd.f32 %v3216_v30, %v3196_v23 }
 0xac5   : > { %v3231_v27 = vmul.f32 %v5520_v26, %v5520_v26  ;;  %v3219_v52 = vadd.f32 %v5520_v26, %v5516_v57 }
 0xac7   : > { %3220 = vadd.xlane.f32.xlu0 %v3219_v52  ;;  %v3232_v25 = vadd.f32 %v3231_v27, %v3230_v58  ;;  %v3275_v58 = vpop.permute.xlu2 %3274 }
 0xac9   : > { %3233 = vadd.xlane.f32.xlu1 %v3232_v25 }
 0xb3a   : > { %v3221_v31 = vpop.xlane.xlu0 %3220 }
 0xb3b   : > { %v3222_v0 = vrot.slane %v3221_v31, 4 }
 0xb3c   : > { %v3234_v2 = vpop.xlane.xlu1 %3233 }
 0xb3d   : > { %v3223_v3 = vadd.f32 %v3222_v0, %v3221_v31  ;;  %v3235_v11 = vrot.slane %v3234_v2, 4 }
 0xb3f   : > { %v3224_v61 = vrot.slane %v3223_v3, 2  ;;  %v3236_v4 = vadd.f32 %v3235_v11, %v3234_v2 }
 0xb41   : > { %v3225_v12 = vadd.f32 %v3224_v61, %v3223_v3  ;;  %v3237_v41 = vrot.slane %v3236_v4, 2 }
 0xb43   : > { %v3238_v15 = vadd.f32 %v3237_v41, %v3236_v4  ;;  %v3226_v51 = vrot.slane %v3225_v12, 1 }
 0xb45   : > { %v3227_v16 = vadd.f32 %v3226_v51, %v3225_v12  ;;  %v3239_v13 = vrot.slane %v3238_v15, 1  ;;  %v3358_v12 = vld [vmem:[%s5776_s2] sm:$0x3] }
 0xb47   : > { %3636 = vpush %v3227_v16  ;;  %v3240_v9 = vadd.f32 %v3239_v13, %v3238_v15  ;;  %v3360_v13 = vperm.slane %v3358_v12, 0 }
 0xb49   : > { %3638 = vpush %v3240_v9 }
 0xb78   : > { %s3637_s9 = spop %3636 }
 0xb79   : > { %v3229_v39 = vstv %s3637_s9 }
 0xb7a   : > { %v3243_v17 = vmul.f32 0.00048828125, %v3229_v39  ;;  %s3639_s10 = spop %3638  ;;  %v3384_v39 = vpop.f32.mrf.mxu0 }
 0xb7b   : > { %v3242_v18 = vstv %s3639_s10 }
 0xb7c   : > { %v3244_v14 = vmul.f32 0.00048828125, %v3242_v18  ;;  %v3245_v53 = vmul.f32 %v3243_v17, %v3243_v17  ;;  %v3248_v1 = vsub.f32 %v5516_v57, %v3243_v17  ;;  %v3249_v44 = vsub.f32 %v5520_v26, %v3243_v17 }
 0xb7d   : > { %v3361_v18 = vperm.slane %v3358_v12, 1 }
 0xb7e   : > { %v3246_v55 = vsub.f32 %v3244_v14, %v3245_v53 }
 0xb80   : > { %v3247_v19 = vmax.f32 %v3246_v55, 0.0  ;;  %v3404_v55 = vpop.f32.mrf.mxu2 }
 0xb82   : > { %v3250_v34 = vadd.f32 1e-05, %v3247_v19 }
 0xb84   : > { %4123 = vrsqrt.f32 %v3250_v34  ;;  %vm3257_vm3 = vweird.f32 %v3250_v34 }
 0xb8a   : > { %v4124_v21 = vpop.eup %4123 }
 0xb8b   : > { %v3252_v22 = vmul.f32 %v4124_v21, %v3250_v34  ;;  %vm3258_vm9 = vweird.f32 %v4124_v21 }
 0xb8c   : > { %vm3259_vm4 = vmor %vm3257_vm3, %vm3258_vm9 }
 0xb8d   : > { %v3253_v49 = vmul.f32 %v4124_v21, %v3252_v22 }
 0xb8f   : > { %v3254_v54 = vmul.f32 0.5, %v3253_v49 }
 0xb91   : > { %v3255_v5 = vsub.f32 1.5, %v3254_v54  ;;  %v3405_v54 = vadd.f32 %v3404_v55, %v3361_v18 }
 0xb93   : > { %v3256_v6 = vmul.f32 %v4124_v21, %v3255_v5 }
 0xb95   : > { %v3260_v48 = vsel %vm3259_vm4, %v4124_v21, %v3256_v6  ;;  %v3385_v21 = vadd.f32 %v3384_v39, %v3360_v13 }
 0xb96   : > { %v3261_v36 = vmul.f32 %v3260_v48, %v3248_v1  ;;  %v3262_v20 = vmul.f32 %v3260_v48, %v3249_v44 }
 0xb97   : > { %v3407_v48 = vperm.slane %v3385_v21, 0 }
 0xb98   : > { %v3269_v23 = vmul.f32 %v3267_v35, %v3261_v36  ;;  %v3270_v30 = vmul.f32 %v3267_v35, %v3262_v20 }
 0xb9a   : > { %v3277_v27 = vadd.f32 %v3275_v58, %v3269_v23  ;;  %v3278_v52 = vadd.f32 %v3275_v58, %v3270_v30  ;;  %v3408_v23 = vperm.slane %v3405_v54, 0 }
 0xb9c   : > { %v3279_v25 = vadd.f32 %v3277_v27, %v5092_v63  ;;  %v5547_v47 = vadd.f32 %v3278_v52, %v5101_v24 }
 0xb9e   : > { %v3281_v50 = vmul.f32 0.70710677, %v3279_v25  ;;  %v3282_v60 = vmul.f32 0.70710677, %v5547_v47  ;;  %v3327_v1 = vmul.f32 0.5, %v3279_v25  ;;  %v3328_v36 = vmul.f32 0.5, %v5547_v47 }
 0xba0   : > { %v3287_v57 = vand.u32 2147483647, %v3281_v50  ;;  %v3288_v29 = vand.u32 2147483647, %v3282_v60  ;;  %vm3283_vm5 = vcmp.ge.f32.partialorder %v3281_v50, 0.0  ;;  %vm3284_vm6 = vcmp.ge.f32.partialorder %v3282_v60, 0.0 }
 0xba1   : > { %v3285_v22 = vsel %vm3283_vm5, 1.0, %v4387_v10  ;;  %v3286_v35 = vsel %vm3284_vm6, 1.0, %v4387_v10 }
 0xba2   : > { %v3289_v26 = vmul.f32 0.3275911, %v3287_v57  ;;  %v3290_v32 = vmul.f32 0.3275911, %v3288_v29  ;;  %v3313_v7 = vmul.f32 %v3287_v57, %v3287_v57  ;;  %v3314_v40 = vmul.f32 %v3288_v29, %v3288_v29 }
 0xba4   : > { %v3291_v42 = vadd.f32 1.0, %v3289_v26  ;;  %v3292_v33 = vadd.f32 1.0, %v3290_v32  ;;  %v3315_v24 = vsub.f32 0.0, %v3313_v7  ;;  %v3316_v8 = vsub.f32 0.0, %v3314_v40 }
 0xba6   : > { %4125 = vrcp.f32 %v3291_v42  ;;  %v3317_v28 = vmul.f32 1.442695, %v3315_v24  ;;  %v3319_v0 = vmul.f32 1.442695, %v3316_v8 }
 0xba7   : > { %4127 = vrcp.f32 %v3292_v33 }
 0xba8   : > { %4129 = vpow2.f32 %v3317_v28 }
 0xba9   : > { %4131 = vpow2.f32 %v3319_v0 }
 0xbac   : > { %v4126_v37 = vpop.eup %4125 }
 0xbad   : > { %v4128_v38 = vpop.eup %4127  ;;  %v3295_v43 = vmul.f32 1.0614054, %v4126_v37 }
 0xbae   : > { %v3296_v63 = vmul.f32 1.0614054, %v4128_v38  ;;  %v4130_v9 = vpop.eup %4129 }
 0xbaf   : > { %v3297_v46 = vadd.f32 -1.4531521, %v3295_v43  ;;  %v4132_v14 = vpop.eup %4131 }
 0xbb0   : > { %v3298_v56 = vadd.f32 -1.4531521, %v3296_v63 }
 0xbb1   : > { %v3299_v59 = vmul.f32 %v4126_v37, %v3297_v46 }
 0xbb2   : > { %v3300_v45 = vmul.f32 %v4128_v38, %v3298_v56 }
 0xbb3   : > { %v3301_v62 = vadd.f32 1.4214138, %v3299_v59 }
 0xbb4   : > { %v3302_v31 = vadd.f32 1.4214138, %v3300_v45 }
 0xbb5   : > { %v3303_v2 = vmul.f32 %v4126_v37, %v3301_v62 }
 0xbb6   : > { %v3304_v3 = vmul.f32 %v4128_v38, %v3302_v31 }
 0xbb7   : > { %v3305_v11 = vadd.f32 -0.28449672, %v3303_v2 }
 0xbb8   : > { %v3306_v61 = vadd.f32 -0.28449672, %v3304_v3 }
 0xbb9   : > { %v3307_v4 = vmul.f32 %v4126_v37, %v3305_v11 }
 0xbba   : > { %v3308_v41 = vmul.f32 %v4128_v38, %v3306_v61 }
 0xbbb   : > { %v3309_v15 = vadd.f32 0.2548296, %v3307_v4 }
 0xbbc   : > { %v3310_v51 = vadd.f32 0.2548296, %v3308_v41 }
 0xbbd   : > { %v3311_v16 = vmul.f32 %v4126_v37, %v3309_v15 }
 0xbbe   : > { %v3312_v17 = vmul.f32 %v4128_v38, %v3310_v51 }
 0xbbf   : > { %v3321_v53 = vmul.f32 %v4130_v9, %v3311_v16 }
 0xbc0   : > { %v3322_v19 = vmul.f32 %v4132_v14, %v3312_v17 }
 0xbc1   : > { %v3323_v34 = vsub.f32 1.0, %v3321_v53 }
 0xbc2   : > { %v3324_v49 = vsub.f32 1.0, %v3322_v19 }
 0xbc3   : > { %v3325_v5 = vmul.f32 %v3323_v34, %v3285_v22 }
 0xbc4   : > { %v3326_v6 = vmul.f32 %v3324_v49, %v3286_v35 }
 0xbc5   : > { %v3329_v44 = vadd.f32 1.0, %v3325_v5 }
 0xbc6   : > { %v3330_v20 = vadd.f32 1.0, %v3326_v6 }
 0xbc7   : > { %v3331_v30 = vmul.f32 %v3329_v44, %v3327_v1 }
 0xbc8   : > { %v3332_v10 = vmul.f32 %v3330_v20, %v3328_v36 }
 0xbc9   : > { %v3409_v58 = vadd.f32 %v3407_v48, %v3331_v30 }
 0xbca   : > { %v3410_v27 = vadd.f32 %v3408_v23, %v3332_v10 }
 0xbcb   : > { %3411 = vst [vmem:[%s696_s24] sm:$0xff] %v3409_v58 }
 0xbcc   : > { %3412 = vst [vmem:[%s696_s24 + $0x8] sm:$0xff] %v3410_v27 }
 0xbcd   : > { %4312 = shalt.err (!%p4309_p10)
}
 0xbce   : > { %3658 = dma.vmem_to_hbm [thread:$0]  (%p4575_p4), %s3428_s27, 256, %s3430_s0, %s3414_s30  }
 0xbcf PF: > { %s5779_s19 = sld [smem:[#allocation19_spill]]  ;;  %p5781_p13 = scmp.ge.s32.totalorder %s4359_s21, 2 }
 0xbd1   : > { %p3678_p11 = pnand %p5781_p13, %p4579_p6 }
 0xbd3   : > { %p3679_p0 = pneg %p3678_p11 }
 0xbd5   : > { %s3441_s26 = sand.u32 1, %s5779_s19  }
 0xbd6   : > { %s3442_s2 = scalar_lea.sflag [#allocation7], %s3441_s26 }
 0xbd7   : > { %4342 = dma.done.wait (%p3679_p0), %s3442_s2, 256  }
 0xbd8   : > { %4344 = vsyncadd (%p3679_p0), %s3442_s2, 4294967040  ;;  %s5782_s21 = sld [smem:[#allocation22_spill]] }
 0xbd9   : > { %s5783_s0 = sld [smem:[#allocation20_spill]] }
 0xbda   : > { %s5784_s30 = sld [smem:[#allocation21_spill]] }
 0xbdb   : > { %s5785_s20 = sld [smem:[#allocation23_spill]] }
 0xbde   : > { %p34_p2 = scmp.ge.s32.totalorder %s5782_s21, 4  }
 0xbe0   :  { %36 = sbr.rel (!%p34_p2) target bundleno = 23 (0x17), region = 169 }
 0xbe5   :  { %3448 = vsyncpa [#allocation6], 1 }
 0xbe6   :  { %3450 = vsyncpa [#allocation6 + $0x1], 1 }
 0xbe7   :  { %3451 = vsyncpa [#allocation9], 1 }
 0xbe8   :  { %3452 = vsyncpa [#allocation12], 1 }
 0xbe9   :  { %3453 = vsyncpa [#allocation7], 1 }
 0xbea   :  { %3455 = vsyncpa [#allocation7 + $0x1], 1 }

</bundles_post_ra>
